<compile_context>
chip_gen: v7x
topology: tpu7x:2x2x1
jax: 0.10.0
libtpu: 0.0.40
codegen_flags: <defaults>
</compile_context>

<pallas_src>
import functools

import numpy as np
import jax
import jax.numpy as jnp
from jax.experimental import pallas as pl
from jax.experimental.pallas import tpu as pltpu


# ----------------------------------------------------------------------------
# Module configuration & static sizes
# ----------------------------------------------------------------------------
class Config:
    use_layer_norm = True
    bev_semantics_height = 32
    bev_semantics_width = 32
    obs_num_channels = 3
    obs_num_measurements = 4


CNN_OUT_SHAPE = (2, 8, 4, 4)                    # (B, C, H, W) of the encoder CNN
CNN_N_FLATTEN = CNN_OUT_SHAPE[1] * CNN_OUT_SHAPE[2] * CNN_OUT_SHAPE[3]   # 128
STATES_NEURONS = 8
FEATURES_DIM = 32
LN_EPS = 1e-5
N_SEM_PAD = 8                # pad semantic channels 4 -> 8 for unmasked stores
PAD_OFF = 128                # lane-aligned center offset inside the shift scratch


# ----------------------------------------------------------------------------
# pallas_call plumbing (single full-array block, grid=(1,))
# ----------------------------------------------------------------------------
def _full_spec(shape):
    return pl.BlockSpec(tuple(shape), lambda i, _nd=len(shape): (0,) * _nd)


_COMPILER_PARAMS = pltpu.CompilerParams(
    dimension_semantics=("arbitrary",),
    vmem_limit_bytes=32 * 1024 * 1024,      # explicit; safe on v5e/v6e/v7x
)


def _fused_call(kernel, out_shapes, scratch_shapes, *args):
    out_shape = [jax.ShapeDtypeStruct(tuple(s), jnp.float32) for s in out_shapes]
    out_specs = [_full_spec(s) for s in out_shapes]
    return pl.pallas_call(
        kernel,
        out_shape=out_shape,
        grid=(1,),
        in_specs=[_full_spec(a.shape) for a in args],
        out_specs=out_specs,
        scratch_shapes=scratch_shapes,
        compiler_params=_COMPILER_PARAMS,
    )(*args)


# ----------------------------------------------------------------------------
# Shared math helpers
# ----------------------------------------------------------------------------
def _layernorm(y, g, b):
    mu = jnp.mean(y, axis=-1, keepdims=True)
    var = jnp.mean(jnp.square(y - mu), axis=-1, keepdims=True)
    return (y - mu) * jax.lax.rsqrt(var + LN_EPS) * g + b


# ----------------------------------------------------------------------------
# Fused forward kernel builder (static geometry baked in, lru_cached)
# ----------------------------------------------------------------------------
@functools.lru_cache(maxsize=None)
def _build_forward_kernel(use_ln, bsz, c_in, hc, wc, h2, w2, h3, w3, h4, w4,
                          n_flat, n_states):
    has_mid_up = (h3, w3) != (h2, w2)
    sp0 = hc * wc
    per_in = h3 * w3
    per_out = h4 * w4

    def conv3x3(xpad, x, ws, bias, masks, h, w):
        """3x3, padding=1 conv + ReLU on a (Cin, bsz*h*w) channels-first matrix.

        x is staged once into the zero-bordered scratch `xpad`; each tap is a
        static shifted-window read, masked (boundary zero-padding + batch
        isolation), then one (Cout, Cin) MXU matmul accumulated in registers.
        """
        cin = ws.shape[1]
        cout = bias.shape[0]
        nhw = bsz * h * w
        xpad[0:cin, PAD_OFF:PAD_OFF + nhw] = x
        acc = None
        t = 0
        for di in (-1, 0, 1):
            for dj in (-1, 0, 1):
                off = di * w + dj
                win = xpad[0:cin, PAD_OFF + off:PAD_OFF + off + nhw]
                term = jnp.dot(ws[t * cout:(t + 1) * cout, :], win,
                               preferred_element_type=jnp.float32)
                if not (di == 0 and dj == 0):
                    term = term * masks[t:t + 1, :]
                acc = term if acc is None else acc + term
                t += 1
        return jnp.maximum(acc + bias[...], 0.0)

    def kernel(*refs):
        it = iter(refs)
        feat = next(it)
        ld1_w, ld1_b = next(it), next(it)
        ln1_g, ln1_b = (next(it), next(it)) if use_ln else (None, None)
        ld2_w, ld2_b = next(it), next(it)
        ln2_g, ln2_b = (next(it), next(it)) if use_ln else (None, None)
        md_w, md_b = next(it), next(it)
        w1m, c1_b, u1 = next(it), next(it), next(it)
        ws2, c2_b, m2 = next(it), next(it), next(it)
        if has_mid_up:
            u2, m34 = next(it), next(it)
        else:
            u2, m34 = None, m2
        ws3, c3_b = next(it), next(it)
        ws4, c4_b = next(it), next(it)
        w5p, c5_bp, u3s = next(it), next(it), next(it)
        sem_out, meas_out = next(it), next(it)
        fre_sc, xpad = next(it), next(it)

        # ---------------- linear decoder ----------------
        x = jnp.dot(feat[...], ld1_w[...],
                    preferred_element_type=jnp.float32) + ld1_b[...]
        if use_ln:
            x = _layernorm(x, ln1_g[...], ln1_b[...])
        x = jnp.maximum(x, 0.0)
        y = jnp.dot(x, ld2_w[...],
                    preferred_element_type=jnp.float32) + ld2_b[...]
        if use_ln:
            y = _layernorm(y, ln2_g[...], ln2_b[...])
        y = jnp.maximum(y, 0.0)

        # ---------------- measurement head ----------------
        meas_out[...] = (jnp.dot(y[:, n_flat:n_flat + n_states], md_w[...],
                                 preferred_element_type=jnp.float32) + md_b[...])

        # ------ in-kernel relayout (B, n_flat) -> (Cin, B*Hc*Wc) ------
        for b in range(bsz):
            for c in range(c_in):
                fre_sc[c:c + 1, b * sp0:(b + 1) * sp0] = \
                    y[b:b + 1, c * sp0:(c + 1) * sp0]
        fre = fre_sc[...]

        # zero the shifted-window scratch once (borders act as conv zero-padding)
        xpad[...] = jnp.zeros(xpad.shape, jnp.float32)

        # ---------------- bev_semantic_decoder ----------------
        z = jnp.dot(w1m[...], fre,
                    preferred_element_type=jnp.float32) + c1_b[...]
        z = jnp.maximum(z, 0.0)                                       # conv1 1x1 + ReLU
        z = jnp.dot(z, u1[...], preferred_element_type=jnp.float32)   # bilinear x2
        z = conv3x3(xpad, z, ws2, c2_b, m2, h2, w2)                   # conv2 3x3 + ReLU
        if has_mid_up:                                                # skipped when identity
            z = jnp.dot(z, u2[...], preferred_element_type=jnp.float32)
        z = conv3x3(xpad, z, ws3, c3_b, m34, h3, w3)                  # conv3 3x3 + ReLU
        z = conv3x3(xpad, z, ws4, c4_b, m34, h3, w3)                  # conv4 3x3 + ReLU
        z = jnp.dot(w5p[...], z,
                    preferred_element_type=jnp.float32) + c5_bp[...]  # conv5 1x1 (padded rows)
        for b in range(bsz):                                          # final bilinear, per image
            sem_out[:, b * per_out:(b + 1) * per_out] = jnp.dot(
                z[:, b * per_in:(b + 1) * per_in], u3s[...],
                preferred_element_type=jnp.float32)

    return kernel


# ----------------------------------------------------------------------------
# Precomputed structural constants (trace-time numpy, cached)
# ----------------------------------------------------------------------------
@functools.lru_cache(maxsize=None)
def _bilinear_matrix(out_size: int, in_size: int) -> np.ndarray:
    """PyTorch nn.Upsample(mode='bilinear', align_corners=False) row weights."""
    scale = in_size / out_size
    i = np.arange(out_size)
    src = (i + 0.5) * scale - 0.5
    src = np.clip(src, 0.0, None)
    x0 = np.minimum(np.floor(src).astype(np.int64), in_size - 1)
    x1 = np.minimum(x0 + 1, in_size - 1)
    w = (src - x0).astype(np.float32)
    m = np.zeros((out_size, in_size), dtype=np.float32)
    m[np.arange(out_size), x0] += 1.0 - w
    m[np.arange(out_size), x1] += w
    return m


@functools.lru_cache(maxsize=None)
def _upsample_matrix(n: int, h_in: int, w_in: int, h_out: int, w_out: int):
    """Right-multiply matrix taking (C, n*h_in*w_in) -> (C, n*h_out*w_out)."""
    mh = _bilinear_matrix(h_out, h_in)
    mw = _bilinear_matrix(w_out, w_in)
    u = np.kron(mh, mw).T.astype(np.float32)            # (h_in*w_in, h_out*w_out)
    if n == 1:
        return jnp.asarray(u)
    return jnp.asarray(np.kron(np.eye(n, dtype=np.float32), u))


@functools.lru_cache(maxsize=None)
def _tap_masks(bsz: int, h: int, w: int):
    """(9, bsz*h*w) 0/1 masks for a 3x3, padding=1 conv on the flat NHW layout."""
    nhw = bsz * h * w
    p = np.arange(nhw)
    ho = (p % (h * w)) // w
    wo = p % w
    masks = np.zeros((9, nhw), dtype=np.float32)
    t = 0
    for di in (-1, 0, 1):
        for dj in (-1, 0, 1):
            valid = ((ho + di >= 0) & (ho + di <= h - 1) &
                     (wo + dj >= 0) & (wo + dj <= w - 1))
            masks[t] = valid.astype(np.float32)
            t += 1
    return jnp.asarray(masks)


# ----------------------------------------------------------------------------
# Parameter initialization (deterministic, PyTorch-default-like)
# ----------------------------------------------------------------------------
def _init_linear(key, fan_in, fan_out):
    kw, kb = jax.random.split(key)
    bound = 1.0 / np.sqrt(fan_in)
    w = jax.random.uniform(kw, (fan_in, fan_out), jnp.float32, -bound, bound)
    b = jax.random.uniform(kb, (fan_out,), jnp.float32, -bound, bound)
    return w, b


def _init_conv(key, cout, cin, kh, kw_):
    k1, k2 = jax.random.split(key)
    fan_in = cin * kh * kw_
    bound = 1.0 / np.sqrt(fan_in)
    w = jax.random.uniform(k1, (cout, cin, kh, kw_), jnp.float32, -bound, bound)
    b = jax.random.uniform(k2, (cout,), jnp.float32, -bound, bound)
    return w, b


def init_params(key, config):
    keys = jax.random.split(key, 8)
    p = {}
    hidden2 = CNN_N_FLATTEN + STATES_NEURONS
    p["ld1_w"], p["ld1_b"] = _init_linear(keys[0], FEATURES_DIM, 512)
    p["ln1_g"], p["ln1_b"] = jnp.ones((512,), jnp.float32), jnp.zeros((512,), jnp.float32)
    p["ld2_w"], p["ld2_b"] = _init_linear(keys[1], 512, hidden2)
    p["ln2_g"], p["ln2_b"] = jnp.ones((hidden2,), jnp.float32), jnp.zeros((hidden2,), jnp.float32)
    c = CNN_OUT_SHAPE[1]
    p["c1_w"], p["c1_b"] = _init_conv(keys[2], 128, c, 1, 1)
    p["c2_w"], p["c2_b"] = _init_conv(keys[3], 64, 128, 3, 3)
    p["c3_w"], p["c3_b"] = _init_conv(keys[4], 32, 64, 3, 3)
    p["c4_w"], p["c4_b"] = _init_conv(keys[5], 16, 32, 3, 3)
    p["c5_w"], p["c5_b"] = _init_conv(keys[6], config.obs_num_channels + 1, 16, 1, 1)
    p["md_w"], p["md_b"] = _init_linear(keys[7], STATES_NEURONS, config.obs_num_measurements)
    return p


# ----------------------------------------------------------------------------
# Forward pass (matches WorldModelDecoder.forward) — call under jax.jit
# ----------------------------------------------------------------------------
def world_model_decoder_forward(features, params, config):
    p = params
    B = features.shape[0]
    _, C, Hc, Wc = CNN_OUT_SHAPE
    n_flat = CNN_N_FLATTEN
    use_ln = bool(config.use_layer_norm)
    n_sem = config.obs_num_channels + 1
    n_meas = config.obs_num_measurements

    h2, w2 = 2 * Hc, 2 * Wc                                    # Upsample(scale_factor=2)
    h3, w3 = config.bev_semantics_height // 4, config.bev_semantics_width // 4
    h4, w4 = config.bev_semantics_height, config.bev_semantics_width
    has_mid_up = (h3, w3) != (h2, w2)

    kernel = _build_forward_kernel(use_ln, B, C, Hc, Wc, h2, w2, h3, w3, h4, w4,
                                   n_flat, STATES_NEURONS)

    # structural constants (host numpy, cached across calls)
    u1 = _upsample_matrix(B, Hc, Wc, h2, w2)                   # (B*Hc*Wc, B*h2*w2)
    u3s = _upsample_matrix(1, h3, w3, h4, w4)                  # per-image (h3*w3, h4*w4)
    m2 = _tap_masks(B, h2, w2)
    if has_mid_up:
        u2 = _upsample_matrix(B, h2, w2, h3, w3)
        m34 = _tap_masks(B, h3, w3)

    # weight re-layouts (tiny; done once inside the jit graph)
    w1m = p["c1_w"][:, :, 0, 0]                                # (128, C)
    ws2 = jnp.transpose(p["c2_w"], (2, 3, 0, 1)).reshape(-1, p["c2_w"].shape[1])
    ws3 = jnp.transpose(p["c3_w"], (2, 3, 0, 1)).reshape(-1, p["c3_w"].shape[1])
    ws4 = jnp.transpose(p["c4_w"], (2, 3, 0, 1)).reshape(-1, p["c4_w"].shape[1])
    w5p = jnp.zeros((N_SEM_PAD, p["c5_w"].shape[1]), jnp.float32).at[:n_sem].set(
        p["c5_w"][:, :, 0, 0])
    b5p = jnp.zeros((N_SEM_PAD, 1), jnp.float32).at[:n_sem, 0].set(p["c5_b"])

    args = [features, p["ld1_w"], p["ld1_b"].reshape(1, -1)]
    if use_ln:
        args += [p["ln1_g"].reshape(1, -1), p["ln1_b"].reshape(1, -1)]
    args += [p["ld2_w"], p["ld2_b"].reshape(1, -1)]
    if use_ln:
        args += [p["ln2_g"].reshape(1, -1), p["ln2_b"].reshape(1, -1)]
    args += [p["md_w"], p["md_b"].reshape(1, -1)]
    args += [w1m, p["c1_b"].reshape(-1, 1), u1,
             ws2, p["c2_b"].reshape(-1, 1), m2]
    if has_mid_up:
        args += [u2, m34]
    args += [ws3, p["c3_b"].reshape(-1, 1),
             ws4, p["c4_b"].reshape(-1, 1),
             w5p, b5p, u3s]

    scratch_w = max(B * h2 * w2, B * h3 * w3) + 2 * PAD_OFF
    scratch_shapes = [
        pltpu.VMEM((C, B * Hc * Wc), jnp.float32),             # relayout scratch
        pltpu.VMEM((w1m.shape[0], scratch_w), jnp.float32),    # zero-bordered shift scratch
    ]

    out_shapes = [(N_SEM_PAD, B * h4 * w4), (B, n_meas)]
    sem_flat, pred_measurement = _fused_call(kernel, out_shapes, scratch_shapes, *args)

    pred_semantic = (sem_flat[:n_sem]
                     .reshape(n_sem, B, h4, w4)
                     .transpose(1, 0, 2, 3))                   # NCHW (once, in the wrapper)
    return pred_semantic, pred_measurement


# ----------------------------------------------------------------------------
# Pure-JAX reference (for correctness cross-check)
# ----------------------------------------------------------------------------
def _reference_forward(features, params, config):
    p = params
    x = features @ p["ld1_w"] + p["ld1_b"]
    if config.use_layer_norm:
        x = _layernorm(x, p["ln1_g"], p["ln1_b"])
    x = jnp.maximum(x, 0.0)
    x = x @ p["ld2_w"] + p["ld2_b"]
    if config.use_layer_norm:
        x = _layernorm(x, p["ln2_g"], p["ln2_b"])
    x = jnp.maximum(x, 0.0)

    feats_cnn = x[:, :CNN_N_FLATTEN].reshape(-1, CNN_OUT_SHAPE[1],
                                             CNN_OUT_SHAPE[2], CNN_OUT_SHAPE[3])
    feats_meas = x[:, CNN_N_FLATTEN:]

    def conv(z, w, b, pad):
        y = jax.lax.conv_general_dilated(z, w, (1, 1), [(pad, pad), (pad, pad)],
                                         dimension_numbers=("NCHW", "OIHW", "NCHW"))
        return y + b.reshape(1, -1, 1, 1)

    def up(z, ho, wo):
        _, _, h, w = z.shape
        mh = jnp.asarray(_bilinear_matrix(ho, h))
        mw = jnp.asarray(_bilinear_matrix(wo, w))
        return jnp.einsum("ph,qw,nchw->ncpq", mh, mw, z)

    y = jnp.maximum(conv(feats_cnn, p["c1_w"], p["c1_b"], 0), 0.0)
    y = up(y, 2 * CNN_OUT_SHAPE[2], 2 * CNN_OUT_SHAPE[3])
    y = jnp.maximum(conv(y, p["c2_w"], p["c2_b"], 1), 0.0)
    y = up(y, config.bev_semantics_height // 4, config.bev_semantics_width // 4)
    y = jnp.maximum(conv(y, p["c3_w"], p["c3_b"], 1), 0.0)
    y = jnp.maximum(conv(y, p["c4_w"], p["c4_b"], 1), 0.0)
    y = conv(y, p["c5_w"], p["c5_b"], 0)
    y = up(y, config.bev_semantics_height, config.bev_semantics_width)
    meas = feats_meas @ p["md_w"] + p["md_b"]
    return y, meas


# ----------------------------------------------------------------------------
if __name__ == "__main__":
    config = Config()
    key = jax.random.PRNGKey(0)
    k_params, k_feat = jax.random.split(key)

    params = init_params(k_params, config)
    batch = CNN_OUT_SHAPE[0]                       # 2
    features = jax.random.normal(k_feat, (batch, FEATURES_DIM), jnp.float32)

    fwd = jax.jit(functools.partial(world_model_decoder_forward, config=config))
    pred_semantic, pred_measurement = fwd(features, params)
    jax.block_until_ready((pred_semantic, pred_measurement))

    # correctness cross-check against a pure-JAX reference of the same module
    ref_sem, ref_meas = _reference_forward(features, params, config)
    np.testing.assert_allclose(np.asarray(pred_semantic), np.asarray(ref_sem),
                               rtol=2e-3, atol=2e-3)
    np.testing.assert_allclose(np.asarray(pred_measurement), np.asarray(ref_meas),
                               rtol=2e-3, atol=2e-3)

    assert pred_semantic.shape == (batch, config.obs_num_channels + 1,
                                   config.bev_semantics_height,
                                   config.bev_semantics_width), pred_semantic.shape
    assert pred_measurement.shape == (batch, config.obs_num_measurements), pred_measurement.shape
    assert bool(jnp.all(jnp.isfinite(pred_semantic)))
    assert bool(jnp.all(jnp.isfinite(pred_measurement)))

    print("KERNEL_OK")
</pallas_src>

<mosaic_0001>
module attributes {stable_mosaic.version = 11 : i64} {
  func.func @kernel(%arg0: i32, %arg1: memref<2x32xf32, #tpu.memory_space<vmem>>, %arg2: memref<32x512xf32, #tpu.memory_space<vmem>>, %arg3: memref<1x512xf32, #tpu.memory_space<vmem>>, %arg4: memref<1x512xf32, #tpu.memory_space<vmem>>, %arg5: memref<1x512xf32, #tpu.memory_space<vmem>>, %arg6: memref<512x136xf32, #tpu.memory_space<vmem>>, %arg7: memref<1x136xf32, #tpu.memory_space<vmem>>, %arg8: memref<1x136xf32, #tpu.memory_space<vmem>>, %arg9: memref<1x136xf32, #tpu.memory_space<vmem>>, %arg10: memref<8x4xf32, #tpu.memory_space<vmem>>, %arg11: memref<1x4xf32, #tpu.memory_space<vmem>>, %arg12: memref<128x8xf32, #tpu.memory_space<vmem>>, %arg13: memref<128x1xf32, #tpu.memory_space<vmem>>, %arg14: memref<32x128xf32, #tpu.memory_space<vmem>>, %arg15: memref<576x128xf32, #tpu.memory_space<vmem>>, %arg16: memref<64x1xf32, #tpu.memory_space<vmem>>, %arg17: memref<9x128xf32, #tpu.memory_space<vmem>>, %arg18: memref<288x64xf32, #tpu.memory_space<vmem>>, %arg19: memref<32x1xf32, #tpu.memory_space<vmem>>, %arg20: memref<144x32xf32, #tpu.memory_space<vmem>>, %arg21: memref<16x1xf32, #tpu.memory_space<vmem>>, %arg22: memref<8x16xf32, #tpu.memory_space<vmem>>, %arg23: memref<8x1xf32, #tpu.memory_space<vmem>>, %arg24: memref<64x1024xf32, #tpu.memory_space<vmem>>, %arg25: memref<8x2048xf32, #tpu.memory_space<vmem>>, %arg26: memref<2x4xf32, #tpu.memory_space<vmem>>, %arg27: memref<8x32xf32, #tpu.memory_space<vmem>>, %arg28: memref<128x384xf32, #tpu.memory_space<vmem>>) attributes {dimension_semantics = [#tpu.dimension_semantics<arbitrary>], iteration_bounds = array<i64: 1>, scalar_prefetch = 0 : i64, scratch_operands = 2 : i64, tpu.core_type = #tpu.core_type<tc>, window_params = [{pipeline_mode = #tpu.pipeline_mode<synchronous>, transform_indices = @transform_0, window_bounds = array<i64: 2, 32>}, {pipeline_mode = #tpu.pipeline_mode<synchronous>, transform_indices = @transform_1, window_bounds = array<i64: 32, 512>}, {pipeline_mode = #tpu.pipeline_mode<synchronous>, transform_indices = @transform_2, window_bounds = array<i64: 1, 512>}, {pipeline_mode = #tpu.pipeline_mode<synchronous>, transform_indices = @transform_3, window_bounds = array<i64: 1, 512>}, {pipeline_mode = #tpu.pipeline_mode<synchronous>, transform_indices = @transform_4, window_bounds = array<i64: 1, 512>}, {pipeline_mode = #tpu.pipeline_mode<synchronous>, transform_indices = @transform_5, window_bounds = array<i64: 512, 136>}, {pipeline_mode = #tpu.pipeline_mode<synchronous>, transform_indices = @transform_6, window_bounds = array<i64: 1, 136>}, {pipeline_mode = #tpu.pipeline_mode<synchronous>, transform_indices = @transform_7, window_bounds = array<i64: 1, 136>}, {pipeline_mode = #tpu.pipeline_mode<synchronous>, transform_indices = @transform_8, window_bounds = array<i64: 1, 136>}, {pipeline_mode = #tpu.pipeline_mode<synchronous>, transform_indices = @transform_9, window_bounds = array<i64: 8, 4>}, {pipeline_mode = #tpu.pipeline_mode<synchronous>, transform_indices = @transform_10, window_bounds = array<i64: 1, 4>}, {pipeline_mode = #tpu.pipeline_mode<synchronous>, transform_indices = @transform_11, window_bounds = array<i64: 128, 8>}, {pipeline_mode = #tpu.pipeline_mode<synchronous>, transform_indices = @transform_12, window_bounds = array<i64: 128, 1>}, {pipeline_mode = #tpu.pipeline_mode<synchronous>, transform_indices = @transform_13, window_bounds = array<i64: 32, 128>}, {pipeline_mode = #tpu.pipeline_mode<synchronous>, transform_indices = @transform_14, window_bounds = array<i64: 576, 128>}, {pipeline_mode = #tpu.pipeline_mode<synchronous>, transform_indices = @transform_15, window_bounds = array<i64: 64, 1>}, {pipeline_mode = #tpu.pipeline_mode<synchronous>, transform_indices = @transform_16, window_bounds = array<i64: 9, 128>}, {pipeline_mode = #tpu.pipeline_mode<synchronous>, transform_indices = @transform_17, window_bounds = array<i64: 288, 64>}, {pipeline_mode = #tpu.pipeline_mode<synchronous>, transform_indices = @transform_18, window_bounds = array<i64: 32, 1>}, {pipeline_mode = #tpu.pipeline_mode<synchronous>, transform_indices = @transform_19, window_bounds = array<i64: 144, 32>}, {pipeline_mode = #tpu.pipeline_mode<synchronous>, transform_indices = @transform_20, window_bounds = array<i64: 16, 1>}, {pipeline_mode = #tpu.pipeline_mode<synchronous>, transform_indices = @transform_21, window_bounds = array<i64: 8, 16>}, {pipeline_mode = #tpu.pipeline_mode<synchronous>, transform_indices = @transform_22, window_bounds = array<i64: 8, 1>}, {pipeline_mode = #tpu.pipeline_mode<synchronous>, transform_indices = @transform_23, window_bounds = array<i64: 64, 1024>}, {pipeline_mode = #tpu.pipeline_mode<synchronous>, transform_indices = @transform_24, window_bounds = array<i64: 8, 2048>}, {pipeline_mode = #tpu.pipeline_mode<synchronous>, transform_indices = @transform_25, window_bounds = array<i64: 2, 4>}]} {
    %c0 = arith.constant 0 : index
    %c0_0 = arith.constant 0 : index
    %0 = vector.load %arg1[%c0, %c0_0] : memref<2x32xf32, #tpu.memory_space<vmem>>, vector<2x32xf32>
    %c0_1 = arith.constant 0 : index
    %c0_2 = arith.constant 0 : index
    %1 = vector.load %arg2[%c0_1, %c0_2] : memref<32x512xf32, #tpu.memory_space<vmem>>, vector<32x512xf32>
    %cst = arith.constant dense<0.000000e+00> : vector<2x512xf32>
    %2 = tpu.matmul %0, %1, %cst {dimension_numbers = #tpu.dot_dimension_numbers<[1], [0], [0], [1], [0, 0, 1, 1], [], []>} : vector<2x32xf32>, vector<32x512xf32>, vector<2x512xf32> -> vector<2x512xf32>
    %c0_3 = arith.constant 0 : index
    %c0_4 = arith.constant 0 : index
    %3 = vector.load %arg3[%c0_3, %c0_4] : memref<1x512xf32, #tpu.memory_space<vmem>>, vector<1x512xf32>
    %4 = vector.broadcast %3 : vector<1x512xf32> to vector<2x512xf32>
    %5 = arith.addf %2, %4 : vector<2x512xf32>
    %c0_5 = arith.constant 0 : index
    %c0_6 = arith.constant 0 : index
    %6 = vector.load %arg4[%c0_5, %c0_6] : memref<1x512xf32, #tpu.memory_space<vmem>>, vector<1x512xf32>
    %c0_7 = arith.constant 0 : index
    %c0_8 = arith.constant 0 : index
    %7 = vector.load %arg5[%c0_7, %c0_8] : memref<1x512xf32, #tpu.memory_space<vmem>>, vector<1x512xf32>
    %cst_9 = arith.constant dense<0.000000e+00> : vector<2xf32>
    %8 = vector.multi_reduction <add>, %5, %cst_9 [1] : vector<2x512xf32> to vector<2xf32>
    %9 = vector.shape_cast %8 : vector<2xf32> to vector<2x1xf32>
    %cst_10 = arith.constant 5.120000e+02 : f32
    %10 = vector.broadcast %cst_10 : f32 to vector<2x1xf32>
    %11 = arith.divf %9, %10 : vector<2x1xf32>
    %12 = vector.broadcast %11 : vector<2x1xf32> to vector<2x512xf32>
    %13 = arith.subf %5, %12 : vector<2x512xf32>
    %14 = arith.mulf %13, %13 : vector<2x512xf32>
    %cst_11 = arith.constant dense<0.000000e+00> : vector<2xf32>
    %15 = vector.multi_reduction <add>, %14, %cst_11 [1] : vector<2x512xf32> to vector<2xf32>
    %16 = vector.shape_cast %15 : vector<2xf32> to vector<2x1xf32>
    %cst_12 = arith.constant 5.120000e+02 : f32
    %17 = vector.broadcast %cst_12 : f32 to vector<2x1xf32>
    %18 = arith.divf %16, %17 : vector<2x1xf32>
    %19 = vector.broadcast %11 : vector<2x1xf32> to vector<2x512xf32>
    %20 = arith.subf %5, %19 : vector<2x512xf32>
    %cst_13 = arith.constant 9.99999974E-6 : f32
    %21 = vector.broadcast %cst_13 : f32 to vector<2x1xf32>
    %22 = arith.addf %18, %21 : vector<2x1xf32>
    %23 = math.rsqrt %22 : vector<2x1xf32>
    %24 = vector.broadcast %23 : vector<2x1xf32> to vector<2x512xf32>
    %25 = arith.mulf %20, %24 : vector<2x512xf32>
    %26 = vector.broadcast %6 : vector<1x512xf32> to vector<2x512xf32>
    %27 = arith.mulf %25, %26 : vector<2x512xf32>
    %28 = vector.broadcast %7 : vector<1x512xf32> to vector<2x512xf32>
    %29 = arith.addf %27, %28 : vector<2x512xf32>
    %cst_14 = arith.constant 0.000000e+00 : f32
    %30 = vector.broadcast %cst_14 : f32 to vector<2x512xf32>
    %31 = arith.maximumf %29, %30 : vector<2x512xf32>
    %c0_15 = arith.constant 0 : index
    %c0_16 = arith.constant 0 : index
    %32 = vector.load %arg6[%c0_15, %c0_16] : memref<512x136xf32, #tpu.memory_space<vmem>>, vector<512x136xf32>
    %cst_17 = arith.constant dense<0.000000e+00> : vector<2x136xf32>
    %33 = tpu.matmul %31, %32, %cst_17 {dimension_numbers = #tpu.dot_dimension_numbers<[1], [0], [0], [1], [0, 0, 1, 1], [], []>} : vector<2x512xf32>, vector<512x136xf32>, vector<2x136xf32> -> vector<2x136xf32>
    %c0_18 = arith.constant 0 : index
    %c0_19 = arith.constant 0 : index
    %34 = vector.load %arg7[%c0_18, %c0_19] : memref<1x136xf32, #tpu.memory_space<vmem>>, vector<1x136xf32>
    %35 = vector.broadcast %34 : vector<1x136xf32> to vector<2x136xf32>
    %36 = arith.addf %33, %35 : vector<2x136xf32>
    %c0_20 = arith.constant 0 : index
    %c0_21 = arith.constant 0 : index
    %37 = vector.load %arg8[%c0_20, %c0_21] : memref<1x136xf32, #tpu.memory_space<vmem>>, vector<1x136xf32>
    %c0_22 = arith.constant 0 : index
    %c0_23 = arith.constant 0 : index
    %38 = vector.load %arg9[%c0_22, %c0_23] : memref<1x136xf32, #tpu.memory_space<vmem>>, vector<1x136xf32>
    %cst_24 = arith.constant dense<0.000000e+00> : vector<2xf32>
    %39 = vector.multi_reduction <add>, %36, %cst_24 [1] : vector<2x136xf32> to vector<2xf32>
    %40 = vector.shape_cast %39 : vector<2xf32> to vector<2x1xf32>
    %cst_25 = arith.constant 1.360000e+02 : f32
    %41 = vector.broadcast %cst_25 : f32 to vector<2x1xf32>
    %42 = arith.divf %40, %41 : vector<2x1xf32>
    %43 = vector.broadcast %42 : vector<2x1xf32> to vector<2x136xf32>
    %44 = arith.subf %36, %43 : vector<2x136xf32>
    %45 = arith.mulf %44, %44 : vector<2x136xf32>
    %cst_26 = arith.constant dense<0.000000e+00> : vector<2xf32>
    %46 = vector.multi_reduction <add>, %45, %cst_26 [1] : vector<2x136xf32> to vector<2xf32>
    %47 = vector.shape_cast %46 : vector<2xf32> to vector<2x1xf32>
    %cst_27 = arith.constant 1.360000e+02 : f32
    %48 = vector.broadcast %cst_27 : f32 to vector<2x1xf32>
    %49 = arith.divf %47, %48 : vector<2x1xf32>
    %50 = vector.broadcast %42 : vector<2x1xf32> to vector<2x136xf32>
    %51 = arith.subf %36, %50 : vector<2x136xf32>
    %cst_28 = arith.constant 9.99999974E-6 : f32
    %52 = vector.broadcast %cst_28 : f32 to vector<2x1xf32>
    %53 = arith.addf %49, %52 : vector<2x1xf32>
    %54 = math.rsqrt %53 : vector<2x1xf32>
    %55 = vector.broadcast %54 : vector<2x1xf32> to vector<2x136xf32>
    %56 = arith.mulf %51, %55 : vector<2x136xf32>
    %57 = vector.broadcast %37 : vector<1x136xf32> to vector<2x136xf32>
    %58 = arith.mulf %56, %57 : vector<2x136xf32>
    %59 = vector.broadcast %38 : vector<1x136xf32> to vector<2x136xf32>
    %60 = arith.addf %58, %59 : vector<2x136xf32>
    %cst_29 = arith.constant 0.000000e+00 : f32
    %61 = vector.broadcast %cst_29 : f32 to vector<2x136xf32>
    %62 = arith.maximumf %60, %61 : vector<2x136xf32>
    %63 = vector.extract_strided_slice %62 {offsets = [0, 128], sizes = [2, 8], strides = [1, 1]} : vector<2x136xf32> to vector<2x8xf32>
    %c0_30 = arith.constant 0 : index
    %c0_31 = arith.constant 0 : index
    %64 = vector.load %arg10[%c0_30, %c0_31] : memref<8x4xf32, #tpu.memory_space<vmem>>, vector<8x4xf32>
    %cst_32 = arith.constant dense<0.000000e+00> : vector<2x4xf32>
    %65 = tpu.matmul %63, %64, %cst_32 {dimension_numbers = #tpu.dot_dimension_numbers<[1], [0], [0], [1], [0, 0, 1, 1], [], []>} : vector<2x8xf32>, vector<8x4xf32>, vector<2x4xf32> -> vector<2x4xf32>
    %c0_33 = arith.constant 0 : index
    %c0_34 = arith.constant 0 : index
    %66 = vector.load %arg11[%c0_33, %c0_34] : memref<1x4xf32, #tpu.memory_space<vmem>>, vector<1x4xf32>
    %67 = vector.broadcast %66 : vector<1x4xf32> to vector<2x4xf32>
    %68 = arith.addf %65, %67 : vector<2x4xf32>
    %c0_35 = arith.constant 0 : index
    %c0_36 = arith.constant 0 : index
    %69 = vector.load %arg26[%c0_35, %c0_36] : memref<2x4xf32, #tpu.memory_space<vmem>>, vector<2x4xf32>
    tpu.vector_store %arg26[%c0_35, %c0_36], %68 {strides = array<i32>} : memref<2x4xf32, #tpu.memory_space<vmem>>, vector<2x4xf32>,
    %70 = vector.extract_strided_slice %62 {offsets = [0, 0], sizes = [1, 16], strides = [1, 1]} : vector<2x136xf32> to vector<1x16xf32>
    %c0_37 = arith.constant 0 : index
    %c0_38 = arith.constant 0 : index
    %71 = vector.load %arg27[%c0_37, %c0_38] : memref<8x32xf32, #tpu.memory_space<vmem>>, vector<1x16xf32>
    tpu.vector_store %arg27[%c0_37, %c0_38], %70 {strides = array<i32>} : memref<8x32xf32, #tpu.memory_space<vmem>>, vector<1x16xf32>,
    %72 = vector.extract_strided_slice %62 {offsets = [0, 16], sizes = [1, 16], strides = [1, 1]} : vector<2x136xf32> to vector<1x16xf32>
    %c1 = arith.constant 1 : index
    %c0_39 = arith.constant 0 : index
    %73 = vector.load %arg27[%c1, %c0_39] : memref<8x32xf32, #tpu.memory_space<vmem>>, vector<1x16xf32>
    tpu.vector_store %arg27[%c1, %c0_39], %72 {strides = array<i32>} : memref<8x32xf32, #tpu.memory_space<vmem>>, vector<1x16xf32>,
    %74 = vector.extract_strided_slice %62 {offsets = [0, 32], sizes = [1, 16], strides = [1, 1]} : vector<2x136xf32> to vector<1x16xf32>
    %c2 = arith.constant 2 : index
    %c0_40 = arith.constant 0 : index
    %75 = vector.load %arg27[%c2, %c0_40] : memref<8x32xf32, #tpu.memory_space<vmem>>, vector<1x16xf32>
    tpu.vector_store %arg27[%c2, %c0_40], %74 {strides = array<i32>} : memref<8x32xf32, #tpu.memory_space<vmem>>, vector<1x16xf32>,
    %76 = vector.extract_strided_slice %62 {offsets = [0, 48], sizes = [1, 16], strides = [1, 1]} : vector<2x136xf32> to vector<1x16xf32>
    %c3 = arith.constant 3 : index
    %c0_41 = arith.constant 0 : index
    %77 = vector.load %arg27[%c3, %c0_41] : memref<8x32xf32, #tpu.memory_space<vmem>>, vector<1x16xf32>
    tpu.vector_store %arg27[%c3, %c0_41], %76 {strides = array<i32>} : memref<8x32xf32, #tpu.memory_space<vmem>>, vector<1x16xf32>,
    %78 = vector.extract_strided_slice %62 {offsets = [0, 64], sizes = [1, 16], strides = [1, 1]} : vector<2x136xf32> to vector<1x16xf32>
    %c4 = arith.constant 4 : index
    %c0_42 = arith.constant 0 : index
    %79 = vector.load %arg27[%c4, %c0_42] : memref<8x32xf32, #tpu.memory_space<vmem>>, vector<1x16xf32>
    tpu.vector_store %arg27[%c4, %c0_42], %78 {strides = array<i32>} : memref<8x32xf32, #tpu.memory_space<vmem>>, vector<1x16xf32>,
    %80 = vector.extract_strided_slice %62 {offsets = [0, 80], sizes = [1, 16], strides = [1, 1]} : vector<2x136xf32> to vector<1x16xf32>
    %c5 = arith.constant 5 : index
    %c0_43 = arith.constant 0 : index
    %81 = vector.load %arg27[%c5, %c0_43] : memref<8x32xf32, #tpu.memory_space<vmem>>, vector<1x16xf32>
    tpu.vector_store %arg27[%c5, %c0_43], %80 {strides = array<i32>} : memref<8x32xf32, #tpu.memory_space<vmem>>, vector<1x16xf32>,
    %82 = vector.extract_strided_slice %62 {offsets = [0, 96], sizes = [1, 16], strides = [1, 1]} : vector<2x136xf32> to vector<1x16xf32>
    %c6 = arith.constant 6 : index
    %c0_44 = arith.constant 0 : index
    %83 = vector.load %arg27[%c6, %c0_44] : memref<8x32xf32, #tpu.memory_space<vmem>>, vector<1x16xf32>
    tpu.vector_store %arg27[%c6, %c0_44], %82 {strides = array<i32>} : memref<8x32xf32, #tpu.memory_space<vmem>>, vector<1x16xf32>,
    %84 = vector.extract_strided_slice %62 {offsets = [0, 112], sizes = [1, 16], strides = [1, 1]} : vector<2x136xf32> to vector<1x16xf32>
    %c7 = arith.constant 7 : index
    %c0_45 = arith.constant 0 : index
    %85 = vector.load %arg27[%c7, %c0_45] : memref<8x32xf32, #tpu.memory_space<vmem>>, vector<1x16xf32>
    tpu.vector_store %arg27[%c7, %c0_45], %84 {strides = array<i32>} : memref<8x32xf32, #tpu.memory_space<vmem>>, vector<1x16xf32>,
    %86 = vector.extract_strided_slice %62 {offsets = [1, 0], sizes = [1, 16], strides = [1, 1]} : vector<2x136xf32> to vector<1x16xf32>
    %c0_46 = arith.constant 0 : index
    %c16 = arith.constant 16 : index
    %87 = vector.load %arg27[%c0_46, %c16] : memref<8x32xf32, #tpu.memory_space<vmem>>, vector<1x16xf32>
    tpu.vector_store %arg27[%c0_46, %c16], %86 {strides = array<i32>} : memref<8x32xf32, #tpu.memory_space<vmem>>, vector<1x16xf32>,
    %88 = vector.extract_strided_slice %62 {offsets = [1, 16], sizes = [1, 16], strides = [1, 1]} : vector<2x136xf32> to vector<1x16xf32>
    %c1_47 = arith.constant 1 : index
    %c16_48 = arith.constant 16 : index
    %89 = vector.load %arg27[%c1_47, %c16_48] : memref<8x32xf32, #tpu.memory_space<vmem>>, vector<1x16xf32>
    tpu.vector_store %arg27[%c1_47, %c16_48], %88 {strides = array<i32>} : memref<8x32xf32, #tpu.memory_space<vmem>>, vector<1x16xf32>,
    %90 = vector.extract_strided_slice %62 {offsets = [1, 32], sizes = [1, 16], strides = [1, 1]} : vector<2x136xf32> to vector<1x16xf32>
    %c2_49 = arith.constant 2 : index
    %c16_50 = arith.constant 16 : index
    %91 = vector.load %arg27[%c2_49, %c16_50] : memref<8x32xf32, #tpu.memory_space<vmem>>, vector<1x16xf32>
    tpu.vector_store %arg27[%c2_49, %c16_50], %90 {strides = array<i32>} : memref<8x32xf32, #tpu.memory_space<vmem>>, vector<1x16xf32>,
    %92 = vector.extract_strided_slice %62 {offsets = [1, 48], sizes = [1, 16], strides = [1, 1]} : vector<2x136xf32> to vector<1x16xf32>
    %c3_51 = arith.constant 3 : index
    %c16_52 = arith.constant 16 : index
    %93 = vector.load %arg27[%c3_51, %c16_52] : memref<8x32xf32, #tpu.memory_space<vmem>>, vector<1x16xf32>
    tpu.vector_store %arg27[%c3_51, %c16_52], %92 {strides = array<i32>} : memref<8x32xf32, #tpu.memory_space<vmem>>, vector<1x16xf32>,
    %94 = vector.extract_strided_slice %62 {offsets = [1, 64], sizes = [1, 16], strides = [1, 1]} : vector<2x136xf32> to vector<1x16xf32>
    %c4_53 = arith.constant 4 : index
    %c16_54 = arith.constant 16 : index
    %95 = vector.load %arg27[%c4_53, %c16_54] : memref<8x32xf32, #tpu.memory_space<vmem>>, vector<1x16xf32>
    tpu.vector_store %arg27[%c4_53, %c16_54], %94 {strides = array<i32>} : memref<8x32xf32, #tpu.memory_space<vmem>>, vector<1x16xf32>,
    %96 = vector.extract_strided_slice %62 {offsets = [1, 80], sizes = [1, 16], strides = [1, 1]} : vector<2x136xf32> to vector<1x16xf32>
    %c5_55 = arith.constant 5 : index
    %c16_56 = arith.constant 16 : index
    %97 = vector.load %arg27[%c5_55, %c16_56] : memref<8x32xf32, #tpu.memory_space<vmem>>, vector<1x16xf32>
    tpu.vector_store %arg27[%c5_55, %c16_56], %96 {strides = array<i32>} : memref<8x32xf32, #tpu.memory_space<vmem>>, vector<1x16xf32>,
    %98 = vector.extract_strided_slice %62 {offsets = [1, 96], sizes = [1, 16], strides = [1, 1]} : vector<2x136xf32> to vector<1x16xf32>
    %c6_57 = arith.constant 6 : index
    %c16_58 = arith.constant 16 : index
    %99 = vector.load %arg27[%c6_57, %c16_58] : memref<8x32xf32, #tpu.memory_space<vmem>>, vector<1x16xf32>
    tpu.vector_store %arg27[%c6_57, %c16_58], %98 {strides = array<i32>} : memref<8x32xf32, #tpu.memory_space<vmem>>, vector<1x16xf32>,
    %100 = vector.extract_strided_slice %62 {offsets = [1, 112], sizes = [1, 16], strides = [1, 1]} : vector<2x136xf32> to vector<1x16xf32>
    %c7_59 = arith.constant 7 : index
    %c16_60 = arith.constant 16 : index
    %101 = vector.load %arg27[%c7_59, %c16_60] : memref<8x32xf32, #tpu.memory_space<vmem>>, vector<1x16xf32>
    tpu.vector_store %arg27[%c7_59, %c16_60], %100 {strides = array<i32>} : memref<8x32xf32, #tpu.memory_space<vmem>>, vector<1x16xf32>,
    %c0_61 = arith.constant 0 : index
    %c0_62 = arith.constant 0 : index
    %102 = vector.load %arg27[%c0_61, %c0_62] : memref<8x32xf32, #tpu.memory_space<vmem>>, vector<8x32xf32>
    %cst_63 = arith.constant 0.000000e+00 : f32
    %103 = vector.broadcast %cst_63 : f32 to vector<128x384xf32>
    %c0_64 = arith.constant 0 : index
    %c0_65 = arith.constant 0 : index
    %104 = vector.load %arg28[%c0_64, %c0_65] : memref<128x384xf32, #tpu.memory_space<vmem>>, vector<128x384xf32>
    tpu.vector_store %arg28[%c0_64, %c0_65], %103 {strides = array<i32>} : memref<128x384xf32, #tpu.memory_space<vmem>>, vector<128x384xf32>,
    %c0_66 = arith.constant 0 : index
    %c0_67 = arith.constant 0 : index
    %105 = vector.load %arg12[%c0_66, %c0_67] : memref<128x8xf32, #tpu.memory_space<vmem>>, vector<128x8xf32>
    %cst_68 = arith.constant dense<0.000000e+00> : vector<128x32xf32>
    %106 = tpu.matmul %105, %102, %cst_68 {dimension_numbers = #tpu.dot_dimension_numbers<[1], [0], [0], [1], [0, 0, 1, 1], [], []>} : vector<128x8xf32>, vector<8x32xf32>, vector<128x32xf32> -> vector<128x32xf32>
    %c0_69 = arith.constant 0 : index
    %c0_70 = arith.constant 0 : index
    %107 = vector.load %arg13[%c0_69, %c0_70] : memref<128x1xf32, #tpu.memory_space<vmem>>, vector<128x1xf32>
    %108 = vector.broadcast %107 : vector<128x1xf32> to vector<128x32xf32>
    %109 = arith.addf %106, %108 : vector<128x32xf32>
    %cst_71 = arith.constant 0.000000e+00 : f32
    %110 = vector.broadcast %cst_71 : f32 to vector<128x32xf32>
    %111 = arith.maximumf %109, %110 : vector<128x32xf32>
    %c0_72 = arith.constant 0 : index
    %c0_73 = arith.constant 0 : index
    %112 = vector.load %arg14[%c0_72, %c0_73] : memref<32x128xf32, #tpu.memory_space<vmem>>, vector<32x128xf32>
    %cst_74 = arith.constant dense<0.000000e+00> : vector<128x128xf32>
    %113 = tpu.matmul %111, %112, %cst_74 {dimension_numbers = #tpu.dot_dimension_numbers<[1], [0], [0], [1], [0, 0, 1, 1], [], []>} : vector<128x32xf32>, vector<32x128xf32>, vector<128x128xf32> -> vector<128x128xf32>
    %c0_75 = arith.constant 0 : index
    %c128 = arith.constant 128 : index
    %114 = vector.load %arg28[%c0_75, %c128] : memref<128x384xf32, #tpu.memory_space<vmem>>, vector<128x128xf32>
    tpu.vector_store %arg28[%c0_75, %c128], %113 {strides = array<i32>} : memref<128x384xf32, #tpu.memory_space<vmem>>, vector<128x128xf32>,
    %c0_76 = arith.constant 0 : index
    %c119 = arith.constant 119 : index
    %115 = vector.load %arg28[%c0_76, %c119] : memref<128x384xf32, #tpu.memory_space<vmem>>, vector<128x128xf32>
    %c0_77 = arith.constant 0 : index
    %c0_78 = arith.constant 0 : index
    %116 = vector.load %arg15[%c0_77, %c0_78] : memref<576x128xf32, #tpu.memory_space<vmem>>, vector<64x128xf32>
    %cst_79 = arith.constant dense<0.000000e+00> : vector<64x128xf32>
    %117 = tpu.matmul %116, %115, %cst_79 {dimension_numbers = #tpu.dot_dimension_numbers<[1], [0], [0], [1], [0, 0, 1, 1], [], []>} : vector<64x128xf32>, vector<128x128xf32>, vector<64x128xf32> -> vector<64x128xf32>
    %c0_80 = arith.constant 0 : index
    %c0_81 = arith.constant 0 : index
    %118 = vector.load %arg17[%c0_80, %c0_81] : memref<9x128xf32, #tpu.memory_space<vmem>>, vector<1x128xf32>
    %119 = vector.broadcast %118 : vector<1x128xf32> to vector<64x128xf32>
    %120 = arith.mulf %117, %119 : vector<64x128xf32>
    %c0_82 = arith.constant 0 : index
    %c120 = arith.constant 120 : index
    %121 = vector.load %arg28[%c0_82, %c120] : memref<128x384xf32, #tpu.memory_space<vmem>>, vector<128x128xf32>
    %c64 = arith.constant 64 : index
    %c0_83 = arith.constant 0 : index
    %122 = vector.load %arg15[%c64, %c0_83] : memref<576x128xf32, #tpu.memory_space<vmem>>, vector<64x128xf32>
    %cst_84 = arith.constant dense<0.000000e+00> : vector<64x128xf32>
    %123 = tpu.matmul %122, %121, %cst_84 {dimension_numbers = #tpu.dot_dimension_numbers<[1], [0], [0], [1], [0, 0, 1, 1], [], []>} : vector<64x128xf32>, vector<128x128xf32>, vector<64x128xf32> -> vector<64x128xf32>
    %c1_85 = arith.constant 1 : index
    %c0_86 = arith.constant 0 : index
    %124 = vector.load %arg17[%c1_85, %c0_86] : memref<9x128xf32, #tpu.memory_space<vmem>>, vector<1x128xf32>
    %125 = vector.broadcast %124 : vector<1x128xf32> to vector<64x128xf32>
    %126 = arith.mulf %123, %125 : vector<64x128xf32>
    %127 = arith.addf %120, %126 : vector<64x128xf32>
    %c0_87 = arith.constant 0 : index
    %c121 = arith.constant 121 : index
    %128 = vector.load %arg28[%c0_87, %c121] : memref<128x384xf32, #tpu.memory_space<vmem>>, vector<128x128xf32>
    %c128_88 = arith.constant 128 : index
    %c0_89 = arith.constant 0 : index
    %129 = vector.load %arg15[%c128_88, %c0_89] : memref<576x128xf32, #tpu.memory_space<vmem>>, vector<64x128xf32>
    %cst_90 = arith.constant dense<0.000000e+00> : vector<64x128xf32>
    %130 = tpu.matmul %129, %128, %cst_90 {dimension_numbers = #tpu.dot_dimension_numbers<[1], [0], [0], [1], [0, 0, 1, 1], [], []>} : vector<64x128xf32>, vector<128x128xf32>, vector<64x128xf32> -> vector<64x128xf32>
    %c2_91 = arith.constant 2 : index
    %c0_92 = arith.constant 0 : index
    %131 = vector.load %arg17[%c2_91, %c0_92] : memref<9x128xf32, #tpu.memory_space<vmem>>, vector<1x128xf32>
    %132 = vector.broadcast %131 : vector<1x128xf32> to vector<64x128xf32>
    %133 = arith.mulf %130, %132 : vector<64x128xf32>
    %134 = arith.addf %127, %133 : vector<64x128xf32>
    %c0_93 = arith.constant 0 : index
    %c127 = arith.constant 127 : index
    %135 = vector.load %arg28[%c0_93, %c127] : memref<128x384xf32, #tpu.memory_space<vmem>>, vector<128x128xf32>
    %c192 = arith.constant 192 : index
    %c0_94 = arith.constant 0 : index
    %136 = vector.load %arg15[%c192, %c0_94] : memref<576x128xf32, #tpu.memory_space<vmem>>, vector<64x128xf32>
    %cst_95 = arith.constant dense<0.000000e+00> : vector<64x128xf32>
    %137 = tpu.matmul %136, %135, %cst_95 {dimension_numbers = #tpu.dot_dimension_numbers<[1], [0], [0], [1], [0, 0, 1, 1], [], []>} : vector<64x128xf32>, vector<128x128xf32>, vector<64x128xf32> -> vector<64x128xf32>
    %c3_96 = arith.constant 3 : index
    %c0_97 = arith.constant 0 : index
    %138 = vector.load %arg17[%c3_96, %c0_97] : memref<9x128xf32, #tpu.memory_space<vmem>>, vector<1x128xf32>
    %139 = vector.broadcast %138 : vector<1x128xf32> to vector<64x128xf32>
    %140 = arith.mulf %137, %139 : vector<64x128xf32>
    %141 = arith.addf %134, %140 : vector<64x128xf32>
    %c0_98 = arith.constant 0 : index
    %c128_99 = arith.constant 128 : index
    %142 = vector.load %arg28[%c0_98, %c128_99] : memref<128x384xf32, #tpu.memory_space<vmem>>, vector<128x128xf32>
    %c256 = arith.constant 256 : index
    %c0_100 = arith.constant 0 : index
    %143 = vector.load %arg15[%c256, %c0_100] : memref<576x128xf32, #tpu.memory_space<vmem>>, vector<64x128xf32>
    %cst_101 = arith.constant dense<0.000000e+00> : vector<64x128xf32>
    %144 = tpu.matmul %143, %142, %cst_101 {dimension_numbers = #tpu.dot_dimension_numbers<[1], [0], [0], [1], [0, 0, 1, 1], [], []>} : vector<64x128xf32>, vector<128x128xf32>, vector<64x128xf32> -> vector<64x128xf32>
    %145 = arith.addf %141, %144 : vector<64x128xf32>
    %c0_102 = arith.constant 0 : index
    %c129 = arith.constant 129 : index
    %146 = vector.load %arg28[%c0_102, %c129] : memref<128x384xf32, #tpu.memory_space<vmem>>, vector<128x128xf32>
    %c320 = arith.constant 320 : index
    %c0_103 = arith.constant 0 : index
    %147 = vector.load %arg15[%c320, %c0_103] : memref<576x128xf32, #tpu.memory_space<vmem>>, vector<64x128xf32>
    %cst_104 = arith.constant dense<0.000000e+00> : vector<64x128xf32>
    %148 = tpu.matmul %147, %146, %cst_104 {dimension_numbers = #tpu.dot_dimension_numbers<[1], [0], [0], [1], [0, 0, 1, 1], [], []>} : vector<64x128xf32>, vector<128x128xf32>, vector<64x128xf32> -> vector<64x128xf32>
    %c5_105 = arith.constant 5 : index
    %c0_106 = arith.constant 0 : index
    %149 = vector.load %arg17[%c5_105, %c0_106] : memref<9x128xf32, #tpu.memory_space<vmem>>, vector<1x128xf32>
    %150 = vector.broadcast %149 : vector<1x128xf32> to vector<64x128xf32>
    %151 = arith.mulf %148, %150 : vector<64x128xf32>
    %152 = arith.addf %145, %151 : vector<64x128xf32>
    %c0_107 = arith.constant 0 : index
    %c135 = arith.constant 135 : index
    %153 = vector.load %arg28[%c0_107, %c135] : memref<128x384xf32, #tpu.memory_space<vmem>>, vector<128x128xf32>
    %c384 = arith.constant 384 : index
    %c0_108 = arith.constant 0 : index
    %154 = vector.load %arg15[%c384, %c0_108] : memref<576x128xf32, #tpu.memory_space<vmem>>, vector<64x128xf32>
    %cst_109 = arith.constant dense<0.000000e+00> : vector<64x128xf32>
    %155 = tpu.matmul %154, %153, %cst_109 {dimension_numbers = #tpu.dot_dimension_numbers<[1], [0], [0], [1], [0, 0, 1, 1], [], []>} : vector<64x128xf32>, vector<128x128xf32>, vector<64x128xf32> -> vector<64x128xf32>
    %c6_110 = arith.constant 6 : index
    %c0_111 = arith.constant 0 : index
    %156 = vector.load %arg17[%c6_110, %c0_111] : memref<9x128xf32, #tpu.memory_space<vmem>>, vector<1x128xf32>
    %157 = vector.broadcast %156 : vector<1x128xf32> to vector<64x128xf32>
    %158 = arith.mulf %155, %157 : vector<64x128xf32>
    %159 = arith.addf %152, %158 : vector<64x128xf32>
    %c0_112 = arith.constant 0 : index
    %c136 = arith.constant 136 : index
    %160 = vector.load %arg28[%c0_112, %c136] : memref<128x384xf32, #tpu.memory_space<vmem>>, vector<128x128xf32>
    %c448 = arith.constant 448 : index
    %c0_113 = arith.constant 0 : index
    %161 = vector.load %arg15[%c448, %c0_113] : memref<576x128xf32, #tpu.memory_space<vmem>>, vector<64x128xf32>
    %cst_114 = arith.constant dense<0.000000e+00> : vector<64x128xf32>
    %162 = tpu.matmul %161, %160, %cst_114 {dimension_numbers = #tpu.dot_dimension_numbers<[1], [0], [0], [1], [0, 0, 1, 1], [], []>} : vector<64x128xf32>, vector<128x128xf32>, vector<64x128xf32> -> vector<64x128xf32>
    %c7_115 = arith.constant 7 : index
    %c0_116 = arith.constant 0 : index
    %163 = vector.load %arg17[%c7_115, %c0_116] : memref<9x128xf32, #tpu.memory_space<vmem>>, vector<1x128xf32>
    %164 = vector.broadcast %163 : vector<1x128xf32> to vector<64x128xf32>
    %165 = arith.mulf %162, %164 : vector<64x128xf32>
    %166 = arith.addf %159, %165 : vector<64x128xf32>
    %c0_117 = arith.constant 0 : index
    %c137 = arith.constant 137 : index
    %167 = vector.load %arg28[%c0_117, %c137] : memref<128x384xf32, #tpu.memory_space<vmem>>, vector<128x128xf32>
    %c512 = arith.constant 512 : index
    %c0_118 = arith.constant 0 : index
    %168 = vector.load %arg15[%c512, %c0_118] : memref<576x128xf32, #tpu.memory_space<vmem>>, vector<64x128xf32>
    %cst_119 = arith.constant dense<0.000000e+00> : vector<64x128xf32>
    %169 = tpu.matmul %168, %167, %cst_119 {dimension_numbers = #tpu.dot_dimension_numbers<[1], [0], [0], [1], [0, 0, 1, 1], [], []>} : vector<64x128xf32>, vector<128x128xf32>, vector<64x128xf32> -> vector<64x128xf32>
    %c8 = arith.constant 8 : index
    %c0_120 = arith.constant 0 : index
    %170 = vector.load %arg17[%c8, %c0_120] : memref<9x128xf32, #tpu.memory_space<vmem>>, vector<1x128xf32>
    %171 = vector.broadcast %170 : vector<1x128xf32> to vector<64x128xf32>
    %172 = arith.mulf %169, %171 : vector<64x128xf32>
    %173 = arith.addf %166, %172 : vector<64x128xf32>
    %c0_121 = arith.constant 0 : index
    %c0_122 = arith.constant 0 : index
    %174 = vector.load %arg16[%c0_121, %c0_122] : memref<64x1xf32, #tpu.memory_space<vmem>>, vector<64x1xf32>
    %175 = vector.broadcast %174 : vector<64x1xf32> to vector<64x128xf32>
    %176 = arith.addf %173, %175 : vector<64x128xf32>
    %cst_123 = arith.constant 0.000000e+00 : f32
    %177 = vector.broadcast %cst_123 : f32 to vector<64x128xf32>
    %178 = arith.maximumf %176, %177 : vector<64x128xf32>
    %c0_124 = arith.constant 0 : index
    %c128_125 = arith.constant 128 : index
    %179 = vector.load %arg28[%c0_124, %c128_125] : memref<128x384xf32, #tpu.memory_space<vmem>>, vector<64x128xf32>
    tpu.vector_store %arg28[%c0_124, %c128_125], %178 {strides = array<i32>} : memref<128x384xf32, #tpu.memory_space<vmem>>, vector<64x128xf32>,
    %c0_126 = arith.constant 0 : index
    %c119_127 = arith.constant 119 : index
    %180 = vector.load %arg28[%c0_126, %c119_127] : memref<128x384xf32, #tpu.memory_space<vmem>>, vector<64x128xf32>
    %c0_128 = arith.constant 0 : index
    %c0_129 = arith.constant 0 : index
    %181 = vector.load %arg18[%c0_128, %c0_129] : memref<288x64xf32, #tpu.memory_space<vmem>>, vector<32x64xf32>
    %cst_130 = arith.constant dense<0.000000e+00> : vector<32x128xf32>
    %182 = tpu.matmul %181, %180, %cst_130 {dimension_numbers = #tpu.dot_dimension_numbers<[1], [0], [0], [1], [0, 0, 1, 1], [], []>} : vector<32x64xf32>, vector<64x128xf32>, vector<32x128xf32> -> vector<32x128xf32>
    %c0_131 = arith.constant 0 : index
    %c0_132 = arith.constant 0 : index
    %183 = vector.load %arg17[%c0_131, %c0_132] : memref<9x128xf32, #tpu.memory_space<vmem>>, vector<1x128xf32>
    %184 = vector.broadcast %183 : vector<1x128xf32> to vector<32x128xf32>
    %185 = arith.mulf %182, %184 : vector<32x128xf32>
    %c0_133 = arith.constant 0 : index
    %c120_134 = arith.constant 120 : index
    %186 = vector.load %arg28[%c0_133, %c120_134] : memref<128x384xf32, #tpu.memory_space<vmem>>, vector<64x128xf32>
    %c32 = arith.constant 32 : index
    %c0_135 = arith.constant 0 : index
    %187 = vector.load %arg18[%c32, %c0_135] : memref<288x64xf32, #tpu.memory_space<vmem>>, vector<32x64xf32>
    %cst_136 = arith.constant dense<0.000000e+00> : vector<32x128xf32>
    %188 = tpu.matmul %187, %186, %cst_136 {dimension_numbers = #tpu.dot_dimension_numbers<[1], [0], [0], [1], [0, 0, 1, 1], [], []>} : vector<32x64xf32>, vector<64x128xf32>, vector<32x128xf32> -> vector<32x128xf32>
    %c1_137 = arith.constant 1 : index
    %c0_138 = arith.constant 0 : index
    %189 = vector.load %arg17[%c1_137, %c0_138] : memref<9x128xf32, #tpu.memory_space<vmem>>, vector<1x128xf32>
    %190 = vector.broadcast %189 : vector<1x128xf32> to vector<32x128xf32>
    %191 = arith.mulf %188, %190 : vector<32x128xf32>
    %192 = arith.addf %185, %191 : vector<32x128xf32>
    %c0_139 = arith.constant 0 : index
    %c121_140 = arith.constant 121 : index
    %193 = vector.load %arg28[%c0_139, %c121_140] : memref<128x384xf32, #tpu.memory_space<vmem>>, vector<64x128xf32>
    %c64_141 = arith.constant 64 : index
    %c0_142 = arith.constant 0 : index
    %194 = vector.load %arg18[%c64_141, %c0_142] : memref<288x64xf32, #tpu.memory_space<vmem>>, vector<32x64xf32>
    %cst_143 = arith.constant dense<0.000000e+00> : vector<32x128xf32>
    %195 = tpu.matmul %194, %193, %cst_143 {dimension_numbers = #tpu.dot_dimension_numbers<[1], [0], [0], [1], [0, 0, 1, 1], [], []>} : vector<32x64xf32>, vector<64x128xf32>, vector<32x128xf32> -> vector<32x128xf32>
    %c2_144 = arith.constant 2 : index
    %c0_145 = arith.constant 0 : index
    %196 = vector.load %arg17[%c2_144, %c0_145] : memref<9x128xf32, #tpu.memory_space<vmem>>, vector<1x128xf32>
    %197 = vector.broadcast %196 : vector<1x128xf32> to vector<32x128xf32>
    %198 = arith.mulf %195, %197 : vector<32x128xf32>
    %199 = arith.addf %192, %198 : vector<32x128xf32>
    %c0_146 = arith.constant 0 : index
    %c127_147 = arith.constant 127 : index
    %200 = vector.load %arg28[%c0_146, %c127_147] : memref<128x384xf32, #tpu.memory_space<vmem>>, vector<64x128xf32>
    %c96 = arith.constant 96 : index
    %c0_148 = arith.constant 0 : index
    %201 = vector.load %arg18[%c96, %c0_148] : memref<288x64xf32, #tpu.memory_space<vmem>>, vector<32x64xf32>
    %cst_149 = arith.constant dense<0.000000e+00> : vector<32x128xf32>
    %202 = tpu.matmul %201, %200, %cst_149 {dimension_numbers = #tpu.dot_dimension_numbers<[1], [0], [0], [1], [0, 0, 1, 1], [], []>} : vector<32x64xf32>, vector<64x128xf32>, vector<32x128xf32> -> vector<32x128xf32>
    %c3_150 = arith.constant 3 : index
    %c0_151 = arith.constant 0 : index
    %203 = vector.load %arg17[%c3_150, %c0_151] : memref<9x128xf32, #tpu.memory_space<vmem>>, vector<1x128xf32>
    %204 = vector.broadcast %203 : vector<1x128xf32> to vector<32x128xf32>
    %205 = arith.mulf %202, %204 : vector<32x128xf32>
    %206 = arith.addf %199, %205 : vector<32x128xf32>
    %c0_152 = arith.constant 0 : index
    %c128_153 = arith.constant 128 : index
    %207 = vector.load %arg28[%c0_152, %c128_153] : memref<128x384xf32, #tpu.memory_space<vmem>>, vector<64x128xf32>
    %c128_154 = arith.constant 128 : index
    %c0_155 = arith.constant 0 : index
    %208 = vector.load %arg18[%c128_154, %c0_155] : memref<288x64xf32, #tpu.memory_space<vmem>>, vector<32x64xf32>
    %cst_156 = arith.constant dense<0.000000e+00> : vector<32x128xf32>
    %209 = tpu.matmul %208, %207, %cst_156 {dimension_numbers = #tpu.dot_dimension_numbers<[1], [0], [0], [1], [0, 0, 1, 1], [], []>} : vector<32x64xf32>, vector<64x128xf32>, vector<32x128xf32> -> vector<32x128xf32>
    %210 = arith.addf %206, %209 : vector<32x128xf32>
    %c0_157 = arith.constant 0 : index
    %c129_158 = arith.constant 129 : index
    %211 = vector.load %arg28[%c0_157, %c129_158] : memref<128x384xf32, #tpu.memory_space<vmem>>, vector<64x128xf32>
    %c160 = arith.constant 160 : index
    %c0_159 = arith.constant 0 : index
    %212 = vector.load %arg18[%c160, %c0_159] : memref<288x64xf32, #tpu.memory_space<vmem>>, vector<32x64xf32>
    %cst_160 = arith.constant dense<0.000000e+00> : vector<32x128xf32>
    %213 = tpu.matmul %212, %211, %cst_160 {dimension_numbers = #tpu.dot_dimension_numbers<[1], [0], [0], [1], [0, 0, 1, 1], [], []>} : vector<32x64xf32>, vector<64x128xf32>, vector<32x128xf32> -> vector<32x128xf32>
    %c5_161 = arith.constant 5 : index
    %c0_162 = arith.constant 0 : index
    %214 = vector.load %arg17[%c5_161, %c0_162] : memref<9x128xf32, #tpu.memory_space<vmem>>, vector<1x128xf32>
    %215 = vector.broadcast %214 : vector<1x128xf32> to vector<32x128xf32>
    %216 = arith.mulf %213, %215 : vector<32x128xf32>
    %217 = arith.addf %210, %216 : vector<32x128xf32>
    %c0_163 = arith.constant 0 : index
    %c135_164 = arith.constant 135 : index
    %218 = vector.load %arg28[%c0_163, %c135_164] : memref<128x384xf32, #tpu.memory_space<vmem>>, vector<64x128xf32>
    %c192_165 = arith.constant 192 : index
    %c0_166 = arith.constant 0 : index
    %219 = vector.load %arg18[%c192_165, %c0_166] : memref<288x64xf32, #tpu.memory_space<vmem>>, vector<32x64xf32>
    %cst_167 = arith.constant dense<0.000000e+00> : vector<32x128xf32>
    %220 = tpu.matmul %219, %218, %cst_167 {dimension_numbers = #tpu.dot_dimension_numbers<[1], [0], [0], [1], [0, 0, 1, 1], [], []>} : vector<32x64xf32>, vector<64x128xf32>, vector<32x128xf32> -> vector<32x128xf32>
    %c6_168 = arith.constant 6 : index
    %c0_169 = arith.constant 0 : index
    %221 = vector.load %arg17[%c6_168, %c0_169] : memref<9x128xf32, #tpu.memory_space<vmem>>, vector<1x128xf32>
    %222 = vector.broadcast %221 : vector<1x128xf32> to vector<32x128xf32>
    %223 = arith.mulf %220, %222 : vector<32x128xf32>
    %224 = arith.addf %217, %223 : vector<32x128xf32>
    %c0_170 = arith.constant 0 : index
    %c136_171 = arith.constant 136 : index
    %225 = vector.load %arg28[%c0_170, %c136_171] : memref<128x384xf32, #tpu.memory_space<vmem>>, vector<64x128xf32>
    %c224 = arith.constant 224 : index
    %c0_172 = arith.constant 0 : index
    %226 = vector.load %arg18[%c224, %c0_172] : memref<288x64xf32, #tpu.memory_space<vmem>>, vector<32x64xf32>
    %cst_173 = arith.constant dense<0.000000e+00> : vector<32x128xf32>
    %227 = tpu.matmul %226, %225, %cst_173 {dimension_numbers = #tpu.dot_dimension_numbers<[1], [0], [0], [1], [0, 0, 1, 1], [], []>} : vector<32x64xf32>, vector<64x128xf32>, vector<32x128xf32> -> vector<32x128xf32>
    %c7_174 = arith.constant 7 : index
    %c0_175 = arith.constant 0 : index
    %228 = vector.load %arg17[%c7_174, %c0_175] : memref<9x128xf32, #tpu.memory_space<vmem>>, vector<1x128xf32>
    %229 = vector.broadcast %228 : vector<1x128xf32> to vector<32x128xf32>
    %230 = arith.mulf %227, %229 : vector<32x128xf32>
    %231 = arith.addf %224, %230 : vector<32x128xf32>
    %c0_176 = arith.constant 0 : index
    %c137_177 = arith.constant 137 : index
    %232 = vector.load %arg28[%c0_176, %c137_177] : memref<128x384xf32, #tpu.memory_space<vmem>>, vector<64x128xf32>
    %c256_178 = arith.constant 256 : index
    %c0_179 = arith.constant 0 : index
    %233 = vector.load %arg18[%c256_178, %c0_179] : memref<288x64xf32, #tpu.memory_space<vmem>>, vector<32x64xf32>
    %cst_180 = arith.constant dense<0.000000e+00> : vector<32x128xf32>
    %234 = tpu.matmul %233, %232, %cst_180 {dimension_numbers = #tpu.dot_dimension_numbers<[1], [0], [0], [1], [0, 0, 1, 1], [], []>} : vector<32x64xf32>, vector<64x128xf32>, vector<32x128xf32> -> vector<32x128xf32>
    %c8_181 = arith.constant 8 : index
    %c0_182 = arith.constant 0 : index
    %235 = vector.load %arg17[%c8_181, %c0_182] : memref<9x128xf32, #tpu.memory_space<vmem>>, vector<1x128xf32>
    %236 = vector.broadcast %235 : vector<1x128xf32> to vector<32x128xf32>
    %237 = arith.mulf %234, %236 : vector<32x128xf32>
    %238 = arith.addf %231, %237 : vector<32x128xf32>
    %c0_183 = arith.constant 0 : index
    %c0_184 = arith.constant 0 : index
    %239 = vector.load %arg19[%c0_183, %c0_184] : memref<32x1xf32, #tpu.memory_space<vmem>>, vector<32x1xf32>
    %240 = vector.broadcast %239 : vector<32x1xf32> to vector<32x128xf32>
    %241 = arith.addf %238, %240 : vector<32x128xf32>
    %cst_185 = arith.constant 0.000000e+00 : f32
    %242 = vector.broadcast %cst_185 : f32 to vector<32x128xf32>
    %243 = arith.maximumf %241, %242 : vector<32x128xf32>
    %c0_186 = arith.constant 0 : index
    %c128_187 = arith.constant 128 : index
    %244 = vector.load %arg28[%c0_186, %c128_187] : memref<128x384xf32, #tpu.memory_space<vmem>>, vector<32x128xf32>
    tpu.vector_store %arg28[%c0_186, %c128_187], %243 {strides = array<i32>} : memref<128x384xf32, #tpu.memory_space<vmem>>, vector<32x128xf32>,
    %c0_188 = arith.constant 0 : index
    %c119_189 = arith.constant 119 : index
    %245 = vector.load %arg28[%c0_188, %c119_189] : memref<128x384xf32, #tpu.memory_space<vmem>>, vector<32x128xf32>
    %c0_190 = arith.constant 0 : index
    %c0_191 = arith.constant 0 : index
    %246 = vector.load %arg20[%c0_190, %c0_191] : memref<144x32xf32, #tpu.memory_space<vmem>>, vector<16x32xf32>
    %cst_192 = arith.constant dense<0.000000e+00> : vector<16x128xf32>
    %247 = tpu.matmul %246, %245, %cst_192 {dimension_numbers = #tpu.dot_dimension_numbers<[1], [0], [0], [1], [0, 0, 1, 1], [], []>} : vector<16x32xf32>, vector<32x128xf32>, vector<16x128xf32> -> vector<16x128xf32>
    %c0_193 = arith.constant 0 : index
    %c0_194 = arith.constant 0 : index
    %248 = vector.load %arg17[%c0_193, %c0_194] : memref<9x128xf32, #tpu.memory_space<vmem>>, vector<1x128xf32>
    %249 = vector.broadcast %248 : vector<1x128xf32> to vector<16x128xf32>
    %250 = arith.mulf %247, %249 : vector<16x128xf32>
    %c0_195 = arith.constant 0 : index
    %c120_196 = arith.constant 120 : index
    %251 = vector.load %arg28[%c0_195, %c120_196] : memref<128x384xf32, #tpu.memory_space<vmem>>, vector<32x128xf32>
    %c16_197 = arith.constant 16 : index
    %c0_198 = arith.constant 0 : index
    %252 = vector.load %arg20[%c16_197, %c0_198] : memref<144x32xf32, #tpu.memory_space<vmem>>, vector<16x32xf32>
    %cst_199 = arith.constant dense<0.000000e+00> : vector<16x128xf32>
    %253 = tpu.matmul %252, %251, %cst_199 {dimension_numbers = #tpu.dot_dimension_numbers<[1], [0], [0], [1], [0, 0, 1, 1], [], []>} : vector<16x32xf32>, vector<32x128xf32>, vector<16x128xf32> -> vector<16x128xf32>
    %c1_200 = arith.constant 1 : index
    %c0_201 = arith.constant 0 : index
    %254 = vector.load %arg17[%c1_200, %c0_201] : memref<9x128xf32, #tpu.memory_space<vmem>>, vector<1x128xf32>
    %255 = vector.broadcast %254 : vector<1x128xf32> to vector<16x128xf32>
    %256 = arith.mulf %253, %255 : vector<16x128xf32>
    %257 = arith.addf %250, %256 : vector<16x128xf32>
    %c0_202 = arith.constant 0 : index
    %c121_203 = arith.constant 121 : index
    %258 = vector.load %arg28[%c0_202, %c121_203] : memref<128x384xf32, #tpu.memory_space<vmem>>, vector<32x128xf32>
    %c32_204 = arith.constant 32 : index
    %c0_205 = arith.constant 0 : index
    %259 = vector.load %arg20[%c32_204, %c0_205] : memref<144x32xf32, #tpu.memory_space<vmem>>, vector<16x32xf32>
    %cst_206 = arith.constant dense<0.000000e+00> : vector<16x128xf32>
    %260 = tpu.matmul %259, %258, %cst_206 {dimension_numbers = #tpu.dot_dimension_numbers<[1], [0], [0], [1], [0, 0, 1, 1], [], []>} : vector<16x32xf32>, vector<32x128xf32>, vector<16x128xf32> -> vector<16x128xf32>
    %c2_207 = arith.constant 2 : index
    %c0_208 = arith.constant 0 : index
    %261 = vector.load %arg17[%c2_207, %c0_208] : memref<9x128xf32, #tpu.memory_space<vmem>>, vector<1x128xf32>
    %262 = vector.broadcast %261 : vector<1x128xf32> to vector<16x128xf32>
    %263 = arith.mulf %260, %262 : vector<16x128xf32>
    %264 = arith.addf %257, %263 : vector<16x128xf32>
    %c0_209 = arith.constant 0 : index
    %c127_210 = arith.constant 127 : index
    %265 = vector.load %arg28[%c0_209, %c127_210] : memref<128x384xf32, #tpu.memory_space<vmem>>, vector<32x128xf32>
    %c48 = arith.constant 48 : index
    %c0_211 = arith.constant 0 : index
    %266 = vector.load %arg20[%c48, %c0_211] : memref<144x32xf32, #tpu.memory_space<vmem>>, vector<16x32xf32>
    %cst_212 = arith.constant dense<0.000000e+00> : vector<16x128xf32>
    %267 = tpu.matmul %266, %265, %cst_212 {dimension_numbers = #tpu.dot_dimension_numbers<[1], [0], [0], [1], [0, 0, 1, 1], [], []>} : vector<16x32xf32>, vector<32x128xf32>, vector<16x128xf32> -> vector<16x128xf32>
    %c3_213 = arith.constant 3 : index
    %c0_214 = arith.constant 0 : index
    %268 = vector.load %arg17[%c3_213, %c0_214] : memref<9x128xf32, #tpu.memory_space<vmem>>, vector<1x128xf32>
    %269 = vector.broadcast %268 : vector<1x128xf32> to vector<16x128xf32>
    %270 = arith.mulf %267, %269 : vector<16x128xf32>
    %271 = arith.addf %264, %270 : vector<16x128xf32>
    %c0_215 = arith.constant 0 : index
    %c128_216 = arith.constant 128 : index
    %272 = vector.load %arg28[%c0_215, %c128_216] : memref<128x384xf32, #tpu.memory_space<vmem>>, vector<32x128xf32>
    %c64_217 = arith.constant 64 : index
    %c0_218 = arith.constant 0 : index
    %273 = vector.load %arg20[%c64_217, %c0_218] : memref<144x32xf32, #tpu.memory_space<vmem>>, vector<16x32xf32>
    %cst_219 = arith.constant dense<0.000000e+00> : vector<16x128xf32>
    %274 = tpu.matmul %273, %272, %cst_219 {dimension_numbers = #tpu.dot_dimension_numbers<[1], [0], [0], [1], [0, 0, 1, 1], [], []>} : vector<16x32xf32>, vector<32x128xf32>, vector<16x128xf32> -> vector<16x128xf32>
    %275 = arith.addf %271, %274 : vector<16x128xf32>
    %c0_220 = arith.constant 0 : index
    %c129_221 = arith.constant 129 : index
    %276 = vector.load %arg28[%c0_220, %c129_221] : memref<128x384xf32, #tpu.memory_space<vmem>>, vector<32x128xf32>
    %c80 = arith.constant 80 : index
    %c0_222 = arith.constant 0 : index
    %277 = vector.load %arg20[%c80, %c0_222] : memref<144x32xf32, #tpu.memory_space<vmem>>, vector<16x32xf32>
    %cst_223 = arith.constant dense<0.000000e+00> : vector<16x128xf32>
    %278 = tpu.matmul %277, %276, %cst_223 {dimension_numbers = #tpu.dot_dimension_numbers<[1], [0], [0], [1], [0, 0, 1, 1], [], []>} : vector<16x32xf32>, vector<32x128xf32>, vector<16x128xf32> -> vector<16x128xf32>
    %c5_224 = arith.constant 5 : index
    %c0_225 = arith.constant 0 : index
    %279 = vector.load %arg17[%c5_224, %c0_225] : memref<9x128xf32, #tpu.memory_space<vmem>>, vector<1x128xf32>
    %280 = vector.broadcast %279 : vector<1x128xf32> to vector<16x128xf32>
    %281 = arith.mulf %278, %280 : vector<16x128xf32>
    %282 = arith.addf %275, %281 : vector<16x128xf32>
    %c0_226 = arith.constant 0 : index
    %c135_227 = arith.constant 135 : index
    %283 = vector.load %arg28[%c0_226, %c135_227] : memref<128x384xf32, #tpu.memory_space<vmem>>, vector<32x128xf32>
    %c96_228 = arith.constant 96 : index
    %c0_229 = arith.constant 0 : index
    %284 = vector.load %arg20[%c96_228, %c0_229] : memref<144x32xf32, #tpu.memory_space<vmem>>, vector<16x32xf32>
    %cst_230 = arith.constant dense<0.000000e+00> : vector<16x128xf32>
    %285 = tpu.matmul %284, %283, %cst_230 {dimension_numbers = #tpu.dot_dimension_numbers<[1], [0], [0], [1], [0, 0, 1, 1], [], []>} : vector<16x32xf32>, vector<32x128xf32>, vector<16x128xf32> -> vector<16x128xf32>
    %c6_231 = arith.constant 6 : index
    %c0_232 = arith.constant 0 : index
    %286 = vector.load %arg17[%c6_231, %c0_232] : memref<9x128xf32, #tpu.memory_space<vmem>>, vector<1x128xf32>
    %287 = vector.broadcast %286 : vector<1x128xf32> to vector<16x128xf32>
    %288 = arith.mulf %285, %287 : vector<16x128xf32>
    %289 = arith.addf %282, %288 : vector<16x128xf32>
    %c0_233 = arith.constant 0 : index
    %c136_234 = arith.constant 136 : index
    %290 = vector.load %arg28[%c0_233, %c136_234] : memref<128x384xf32, #tpu.memory_space<vmem>>, vector<32x128xf32>
    %c112 = arith.constant 112 : index
    %c0_235 = arith.constant 0 : index
    %291 = vector.load %arg20[%c112, %c0_235] : memref<144x32xf32, #tpu.memory_space<vmem>>, vector<16x32xf32>
    %cst_236 = arith.constant dense<0.000000e+00> : vector<16x128xf32>
    %292 = tpu.matmul %291, %290, %cst_236 {dimension_numbers = #tpu.dot_dimension_numbers<[1], [0], [0], [1], [0, 0, 1, 1], [], []>} : vector<16x32xf32>, vector<32x128xf32>, vector<16x128xf32> -> vector<16x128xf32>
    %c7_237 = arith.constant 7 : index
    %c0_238 = arith.constant 0 : index
    %293 = vector.load %arg17[%c7_237, %c0_238] : memref<9x128xf32, #tpu.memory_space<vmem>>, vector<1x128xf32>
    %294 = vector.broadcast %293 : vector<1x128xf32> to vector<16x128xf32>
    %295 = arith.mulf %292, %294 : vector<16x128xf32>
    %296 = arith.addf %289, %295 : vector<16x128xf32>
    %c0_239 = arith.constant 0 : index
    %c137_240 = arith.constant 137 : index
    %297 = vector.load %arg28[%c0_239, %c137_240] : memref<128x384xf32, #tpu.memory_space<vmem>>, vector<32x128xf32>
    %c128_241 = arith.constant 128 : index
    %c0_242 = arith.constant 0 : index
    %298 = vector.load %arg20[%c128_241, %c0_242] : memref<144x32xf32, #tpu.memory_space<vmem>>, vector<16x32xf32>
    %cst_243 = arith.constant dense<0.000000e+00> : vector<16x128xf32>
    %299 = tpu.matmul %298, %297, %cst_243 {dimension_numbers = #tpu.dot_dimension_numbers<[1], [0], [0], [1], [0, 0, 1, 1], [], []>} : vector<16x32xf32>, vector<32x128xf32>, vector<16x128xf32> -> vector<16x128xf32>
    %c8_244 = arith.constant 8 : index
    %c0_245 = arith.constant 0 : index
    %300 = vector.load %arg17[%c8_244, %c0_245] : memref<9x128xf32, #tpu.memory_space<vmem>>, vector<1x128xf32>
    %301 = vector.broadcast %300 : vector<1x128xf32> to vector<16x128xf32>
    %302 = arith.mulf %299, %301 : vector<16x128xf32>
    %303 = arith.addf %296, %302 : vector<16x128xf32>
    %c0_246 = arith.constant 0 : index
    %c0_247 = arith.constant 0 : index
    %304 = vector.load %arg21[%c0_246, %c0_247] : memref<16x1xf32, #tpu.memory_space<vmem>>, vector<16x1xf32>
    %305 = vector.broadcast %304 : vector<16x1xf32> to vector<16x128xf32>
    %306 = arith.addf %303, %305 : vector<16x128xf32>
    %cst_248 = arith.constant 0.000000e+00 : f32
    %307 = vector.broadcast %cst_248 : f32 to vector<16x128xf32>
    %308 = arith.maximumf %306, %307 : vector<16x128xf32>
    %c0_249 = arith.constant 0 : index
    %c0_250 = arith.constant 0 : index
    %309 = vector.load %arg22[%c0_249, %c0_250] : memref<8x16xf32, #tpu.memory_space<vmem>>, vector<8x16xf32>
    %cst_251 = arith.constant dense<0.000000e+00> : vector<8x128xf32>
    %310 = tpu.matmul %309, %308, %cst_251 {dimension_numbers = #tpu.dot_dimension_numbers<[1], [0], [0], [1], [0, 0, 1, 1], [], []>} : vector<8x16xf32>, vector<16x128xf32>, vector<8x128xf32> -> vector<8x128xf32>
    %c0_252 = arith.constant 0 : index
    %c0_253 = arith.constant 0 : index
    %311 = vector.load %arg23[%c0_252, %c0_253] : memref<8x1xf32, #tpu.memory_space<vmem>>, vector<8x1xf32>
    %312 = vector.broadcast %311 : vector<8x1xf32> to vector<8x128xf32>
    %313 = arith.addf %310, %312 : vector<8x128xf32>
    %314 = vector.extract_strided_slice %313 {offsets = [0, 0], sizes = [8, 64], strides = [1, 1]} : vector<8x128xf32> to vector<8x64xf32>
    %c0_254 = arith.constant 0 : index
    %c0_255 = arith.constant 0 : index
    %315 = vector.load %arg24[%c0_254, %c0_255] : memref<64x1024xf32, #tpu.memory_space<vmem>>, vector<64x1024xf32>
    %cst_256 = arith.constant dense<0.000000e+00> : vector<8x1024xf32>
    %316 = tpu.matmul %314, %315, %cst_256 {dimension_numbers = #tpu.dot_dimension_numbers<[1], [0], [0], [1], [0, 0, 1, 1], [], []>} : vector<8x64xf32>, vector<64x1024xf32>, vector<8x1024xf32> -> vector<8x1024xf32>
    %c0_257 = arith.constant 0 : index
    %c0_258 = arith.constant 0 : index
    %317 = vector.load %arg25[%c0_257, %c0_258] : memref<8x2048xf32, #tpu.memory_space<vmem>>, vector<8x1024xf32>
    tpu.vector_store %arg25[%c0_257, %c0_258], %316 {strides = array<i32>} : memref<8x2048xf32, #tpu.memory_space<vmem>>, vector<8x1024xf32>,
    %318 = vector.extract_strided_slice %313 {offsets = [0, 64], sizes = [8, 64], strides = [1, 1]} : vector<8x128xf32> to vector<8x64xf32>
    %c0_259 = arith.constant 0 : index
    %c0_260 = arith.constant 0 : index
    %319 = vector.load %arg24[%c0_259, %c0_260] : memref<64x1024xf32, #tpu.memory_space<vmem>>, vector<64x1024xf32>
    %cst_261 = arith.constant dense<0.000000e+00> : vector<8x1024xf32>
    %320 = tpu.matmul %318, %319, %cst_261 {dimension_numbers = #tpu.dot_dimension_numbers<[1], [0], [0], [1], [0, 0, 1, 1], [], []>} : vector<8x64xf32>, vector<64x1024xf32>, vector<8x1024xf32> -> vector<8x1024xf32>
    %c0_262 = arith.constant 0 : index
    %c1024 = arith.constant 1024 : index
    %321 = vector.load %arg25[%c0_262, %c1024] : memref<8x2048xf32, #tpu.memory_space<vmem>>, vector<8x1024xf32>
    tpu.vector_store %arg25[%c0_262, %c1024], %320 {strides = array<i32>} : memref<8x2048xf32, #tpu.memory_space<vmem>>, vector<8x1024xf32>,
    return
  }
  func.func @transform_0(%arg0: i32) -> (i32, i32) {
    %c0_i32 = arith.constant 0 : i32
    %c0_i32_0 = arith.constant 0 : i32
    %c0_i32_1 = arith.constant 0 : i32
    return %c0_i32, %c0_i32_0 : i32, i32
  }
  func.func @transform_1(%arg0: i32) -> (i32, i32) {
    %c0_i32 = arith.constant 0 : i32
    %c0_i32_0 = arith.constant 0 : i32
    %c0_i32_1 = arith.constant 0 : i32
    return %c0_i32, %c0_i32_0 : i32, i32
  }
  func.func @transform_2(%arg0: i32) -> (i32, i32) {
    %c0_i32 = arith.constant 0 : i32
    %c0_i32_0 = arith.constant 0 : i32
    %c0_i32_1 = arith.constant 0 : i32
    return %c0_i32, %c0_i32_0 : i32, i32
  }
  func.func @transform_3(%arg0: i32) -> (i32, i32) {
    %c0_i32 = arith.constant 0 : i32
    %c0_i32_0 = arith.constant 0 : i32
    %c0_i32_1 = arith.constant 0 : i32
    return %c0_i32, %c0_i32_0 : i32, i32
  }
  func.func @transform_4(%arg0: i32) -> (i32, i32) {
    %c0_i32 = arith.constant 0 : i32
    %c0_i32_0 = arith.constant 0 : i32
    %c0_i32_1 = arith.constant 0 : i32
    return %c0_i32, %c0_i32_0 : i32, i32
  }
  func.func @transform_5(%arg0: i32) -> (i32, i32) {
    %c0_i32 = arith.constant 0 : i32
    %c0_i32_0 = arith.constant 0 : i32
    %c0_i32_1 = arith.constant 0 : i32
    return %c0_i32, %c0_i32_0 : i32, i32
  }
  func.func @transform_6(%arg0: i32) -> (i32, i32) {
    %c0_i32 = arith.constant 0 : i32
    %c0_i32_0 = arith.constant 0 : i32
    %c0_i32_1 = arith.constant 0 : i32
    return %c0_i32, %c0_i32_0 : i32, i32
  }
  func.func @transform_7(%arg0: i32) -> (i32, i32) {
    %c0_i32 = arith.constant 0 : i32
    %c0_i32_0 = arith.constant 0 : i32
    %c0_i32_1 = arith.constant 0 : i32
    return %c0_i32, %c0_i32_0 : i32, i32
  }
  func.func @transform_8(%arg0: i32) -> (i32, i32) {
    %c0_i32 = arith.constant 0 : i32
    %c0_i32_0 = arith.constant 0 : i32
    %c0_i32_1 = arith.constant 0 : i32
    return %c0_i32, %c0_i32_0 : i32, i32
  }
  func.func @transform_9(%arg0: i32) -> (i32, i32) {
    %c0_i32 = arith.constant 0 : i32
    %c0_i32_0 = arith.constant 0 : i32
    %c0_i32_1 = arith.constant 0 : i32
    return %c0_i32, %c0_i32_0 : i32, i32
  }
  func.func @transform_10(%arg0: i32) -> (i32, i32) {
    %c0_i32 = arith.constant 0 : i32
    %c0_i32_0 = arith.constant 0 : i32
    %c0_i32_1 = arith.constant 0 : i32
    return %c0_i32, %c0_i32_0 : i32, i32
  }
  func.func @transform_11(%arg0: i32) -> (i32, i32) {
    %c0_i32 = arith.constant 0 : i32
    %c0_i32_0 = arith.constant 0 : i32
    %c0_i32_1 = arith.constant 0 : i32
    return %c0_i32, %c0_i32_0 : i32, i32
  }
  func.func @transform_12(%arg0: i32) -> (i32, i32) {
    %c0_i32 = arith.constant 0 : i32
    %c0_i32_0 = arith.constant 0 : i32
    %c0_i32_1 = arith.constant 0 : i32
    return %c0_i32, %c0_i32_0 : i32, i32
  }
  func.func @transform_13(%arg0: i32) -> (i32, i32) {
    %c0_i32 = arith.constant 0 : i32
    %c0_i32_0 = arith.constant 0 : i32
    %c0_i32_1 = arith.constant 0 : i32
    return %c0_i32, %c0_i32_0 : i32, i32
  }
  func.func @transform_14(%arg0: i32) -> (i32, i32) {
    %c0_i32 = arith.constant 0 : i32
    %c0_i32_0 = arith.constant 0 : i32
    %c0_i32_1 = arith.constant 0 : i32
    return %c0_i32, %c0_i32_0 : i32, i32
  }
  func.func @transform_15(%arg0: i32) -> (i32, i32) {
    %c0_i32 = arith.constant 0 : i32
    %c0_i32_0 = arith.constant 0 : i32
    %c0_i32_1 = arith.constant 0 : i32
    return %c0_i32, %c0_i32_0 : i32, i32
  }
  func.func @transform_16(%arg0: i32) -> (i32, i32) {
    %c0_i32 = arith.constant 0 : i32
    %c0_i32_0 = arith.constant 0 : i32
    %c0_i32_1 = arith.constant 0 : i32
    return %c0_i32, %c0_i32_0 : i32, i32
  }
  func.func @transform_17(%arg0: i32) -> (i32, i32) {
    %c0_i32 = arith.constant 0 : i32
    %c0_i32_0 = arith.constant 0 : i32
    %c0_i32_1 = arith.constant 0 : i32
    return %c0_i32, %c0_i32_0 : i32, i32
  }
  func.func @transform_18(%arg0: i32) -> (i32, i32) {
    %c0_i32 = arith.constant 0 : i32
    %c0_i32_0 = arith.constant 0 : i32
    %c0_i32_1 = arith.constant 0 : i32
    return %c0_i32, %c0_i32_0 : i32, i32
  }
  func.func @transform_19(%arg0: i32) -> (i32, i32) {
    %c0_i32 = arith.constant 0 : i32
    %c0_i32_0 = arith.constant 0 : i32
    %c0_i32_1 = arith.constant 0 : i32
    return %c0_i32, %c0_i32_0 : i32, i32
  }
  func.func @transform_20(%arg0: i32) -> (i32, i32) {
    %c0_i32 = arith.constant 0 : i32
    %c0_i32_0 = arith.constant 0 : i32
    %c0_i32_1 = arith.constant 0 : i32
    return %c0_i32, %c0_i32_0 : i32, i32
  }
  func.func @transform_21(%arg0: i32) -> (i32, i32) {
    %c0_i32 = arith.constant 0 : i32
    %c0_i32_0 = arith.constant 0 : i32
    %c0_i32_1 = arith.constant 0 : i32
    return %c0_i32, %c0_i32_0 : i32, i32
  }
  func.func @transform_22(%arg0: i32) -> (i32, i32) {
    %c0_i32 = arith.constant 0 : i32
    %c0_i32_0 = arith.constant 0 : i32
    %c0_i32_1 = arith.constant 0 : i32
    return %c0_i32, %c0_i32_0 : i32, i32
  }
  func.func @transform_23(%arg0: i32) -> (i32, i32) {
    %c0_i32 = arith.constant 0 : i32
    %c0_i32_0 = arith.constant 0 : i32
    %c0_i32_1 = arith.constant 0 : i32
    return %c0_i32, %c0_i32_0 : i32, i32
  }
  func.func @transform_24(%arg0: i32) -> (i32, i32) {
    %c0_i32 = arith.constant 0 : i32
    %c0_i32_0 = arith.constant 0 : i32
    %c0_i32_1 = arith.constant 0 : i32
    return %c0_i32, %c0_i32_0 : i32, i32
  }
  func.func @transform_25(%arg0: i32) -> (i32, i32) {
    %c0_i32 = arith.constant 0 : i32
    %c0_i32_0 = arith.constant 0 : i32
    %c0_i32_1 = arith.constant 0 : i32
    return %c0_i32, %c0_i32_0 : i32, i32
  }
}

</mosaic_0001>

<bundles_post_ra>
// kernel: world_model_decoder_forward.1
= control target key start
LH: loop header
LB: loop body
LE: loop exit
PB: predicated region body
PF: predicated region fallthrough
CT: control target
= control target key end

     0   :  { %s13231_s0 = inlined_call_operand.vmem [shape: f32[2,32], index: 0, kind: input, shape index: {}]   ;;  %s13232_s1 = inlined_call_operand.vmem [shape: f32[32,512], index: 1, kind: input, shape index: {}]   ;;  %s13233_s2 = inlined_call_operand.vmem [shape: f32[1,512], index: 2, kind: input, shape index: {}]   ;;  %s13234_s3 = inlined_call_operand.vmem [shape: f32[1,512], index: 3, kind: input, shape index: {}]   ;;  %s13235_s4 = inlined_call_operand.vmem [shape: f32[1,512], index: 4, kind: input, shape index: {}]   ;;  %s13236_s5 = inlined_call_operand.vmem [shape: f32[512,136], index: 5, kind: input, shape index: {}]   ;;  %s13237_s6 = inlined_call_operand.vmem [shape: f32[1,136], index: 6, kind: input, shape index: {}]   ;;  %s13238_s7 = inlined_call_operand.vmem [shape: f32[1,136], index: 7, kind: input, shape index: {}]   ;;  %s13239_s8 = inlined_call_operand.vmem [shape: f32[1,136], index: 8, kind: input, shape index: {}]   ;;  %s13240_s9 = inlined_call_operand.vmem [shape: f32[8,4], index: 9, kind: input, shape index: {}]   ;;  %s13241_s10 = inlined_call_operand.vmem [shape: f32[1,4], index: 10, kind: input, shape index: {}]   ;;  %s13242_s11 = inlined_call_operand.vmem [shape: f32[128,8], index: 11, kind: input, shape index: {}]   ;;  %s13243_s12 = inlined_call_operand.vmem [shape: f32[128,1], index: 12, kind: input, shape index: {}]   ;;  %s13244_s13 = inlined_call_operand.vmem [shape: f32[32,128], index: 13, kind: input, shape index: {}]   ;;  %s13245_s14 = inlined_call_operand.vmem [shape: f32[576,128], index: 14, kind: input, shape index: {}]   ;;  %s13246_s15 = inlined_call_operand.vmem [shape: f32[64,1], index: 15, kind: input, shape index: {}]   ;;  %s13247_s16 = inlined_call_operand.vmem [shape: f32[9,128], index: 16, kind: input, shape index: {}]   ;;  %s13248_s17 = inlined_call_operand.vmem [shape: f32[288,64], index: 17, kind: input, shape index: {}]   ;;  %s13249_s18 = inlined_call_operand.vmem [shape: f32[32,1], index: 18, kind: input, shape index: {}]   ;;  %s13250_s19 = inlined_call_operand.vmem [shape: f32[144,32], index: 19, kind: input, shape index: {}]   ;;  %s13251_s20 = inlined_call_operand.vmem [shape: f32[16,1], index: 20, kind: input, shape index: {}]   ;;  %s13252_s21 = inlined_call_operand.vmem [shape: f32[8,16], index: 21, kind: input, shape index: {}]   ;;  %s13253_s22 = inlined_call_operand.vmem [shape: f32[8,1], index: 22, kind: input, shape index: {}]   ;;  %s13254_s23 = inlined_call_operand.vmem [shape: f32[64,1024], index: 23, kind: input, shape index: {}]   ;;  %s13255_s24 = inlined_call_operand.vmem [shape: f32[8,2048], index: 24, kind: output, shape index: {0}]   ;;  %s13256_s25 = inlined_call_operand.hbm [shape: f32[2,4], index: 25, kind: output, shape index: {1}]  }
   0x1   :  { %13262 = sst [smem:[#allocation8_spill]] %s13231_s0 }
   0x2   :  { %13263 = sst [smem:[#allocation9_spill]] %s13232_s1 }
   0x3   :  { %13264 = sst [smem:[#allocation10_spill]] %s13233_s2 }
   0x4   :  { %13265 = sst [smem:[#allocation11_spill]] %s13234_s3 }
   0x5   :  { %13266 = sst [smem:[#allocation12_spill]] %s13235_s4 }
   0x6   :  { %13267 = sst [smem:[#allocation13_spill]] %s13236_s5 }
   0x7   :  { %13268 = sst [smem:[#allocation14_spill]] %s13237_s6 }
   0x8   :  { %13269 = sst [smem:[#allocation15_spill]] %s13238_s7 }
   0x9   :  { %13270 = sst [smem:[#allocation16_spill]] %s13239_s8 }
   0xa   :  { %13271 = sst [smem:[#allocation17_spill]] %s13240_s9 }
   0xb   :  { %s13272_s6 = sld [smem:[#allocation9_spill]]  ;;  %v13259_v7 = vmov 0.0  }
   0xc   :  { %187 = vmatprep.mubr.f32.mxu0 %v13259_v7  ;;  %258 = vmatprep.mubr.f32.mxu1 %v13259_v7 }
  0x11   :  { %v82_v0 = vld [vmem:[%s13272_s6 + $0x8] sm:$0xff]  ;;  %v81_v2 = vld [vmem:[%s13272_s6] sm:$0xff]  ;;  %v84_v5 = vld [vmem:[%s13272_s6 + $0x18] sm:$0xff] }
  0x12   :  { %v86_v1 = vld [vmem:[%s13272_s6 + $0x28] sm:$0xff]  ;;  %v85_v4 = vld [vmem:[%s13272_s6 + $0x20] sm:$0xff]  ;;  %v88_v6 = vld [vmem:[%s13272_s6 + $0x38] sm:$0xff] }
  0x13   :  { %v8239_v3 = vpack.c.bf16 %v86_v1, %v82_v0  ;;  %v8241_v8 = vpack.c.bf16 %v85_v4, %v81_v2  ;;  %v8247_v9 = vpack.c.bf16 %v88_v6, %v84_v5  ;;  %v83_v10 = vld [vmem:[%s13272_s6 + $0x10] sm:$0xff]  ;;  %v90_v12 = vld [vmem:[%s13272_s6 + $0x48] sm:$0xff]  ;;  %v89_v15 = vld [vmem:[%s13272_s6 + $0x40] sm:$0xff] }
  0x14   :  { %v87_v11 = vld [vmem:[%s13272_s6 + $0x30] sm:$0xff]  ;;  %v94_v14 = vld [vmem:[%s13272_s6 + $0x68] sm:$0xff]  ;;  %v93_v16 = vld [vmem:[%s13272_s6 + $0x60] sm:$0xff] }
  0x15   :  { %8240 = vmatprep.subr.bf16.mxu0 %v8239_v3  ;;  %v8249_v13 = vpack.c.bf16 %v87_v11, %v83_v10  ;;  %8248 = vmatprep.subr.bf16.mxu1 %v8247_v9  ;;  %v8243_v17 = vpack.c.bf16 %v94_v14, %v90_v12  ;;  %v8245_v18 = vpack.c.bf16 %v93_v16, %v89_v15  ;;  %v92_v19 = vld [vmem:[%s13272_s6 + $0x58] sm:$0xff]  ;;  %v91_v21 = vld [vmem:[%s13272_s6 + $0x50] sm:$0xff] }
  0x16   :  { %8242 = vmatpush1.bf16.msra.mxu0 %v8241_v8  ;;  %v96_v20 = vld [vmem:[%s13272_s6 + $0x78] sm:$0xff]  ;;  %v95_v23 = vld [vmem:[%s13272_s6 + $0x70] sm:$0xff] }
  0x17   :  { %8250 = vmatpush1.bf16.msra.mxu1 %v8249_v13  ;;  %v8251_v22 = vpack.c.bf16 %v96_v20, %v92_v19  ;;  %8244 = vmatprep.subr.bf16.mxu0 %v8243_v17  ;;  %v8253_v24 = vpack.c.bf16 %v95_v23, %v91_v21 }
  0x18   :  { %31 = vsyncpa [#allocation5], 0  ;;  %s13273_s1 = sld [smem:[#allocation8_spill]]  ;;  %vm119_vm0 = vcmask 261120   ;;  %v99_v26 = vlaneseq  ;;  %s13274_s27 = sld [smem:[#allocation10_spill]]  ;;  %vm267_vm1 = vcmask 1041408  }
  0x19   :  { %8252 = vmatprep.subr.bf16.mxu1 %v8251_v22  ;;  %s13275_s9 = sld [smem:[#allocation13_spill]]  ;;  %s13276_s3 = sld [smem:[#allocation11_spill]]  ;;  %vm642_vm2 = vcmask 58368   ;;  %vm10201_vm3 = vmmov 0   ;;  %vm699_vm4 = vcmask 64512   ;;  %vm775_vm5 = vcmask 122880  }
  0x1a   :  { %8246 = vmatpush1.bf16.msra.mxu0 %v8245_v18  ;;  %v100_v27 = vshrl.u32 %v99_v26, 7  ;;  %s13277_s6 = sld [smem:[#allocation12_spill]]  ;;  %s13278_s8 = sld [smem:[#allocation14_spill]]  ;;  %vm806_vm6 = vcmask 255105   ;;  %vm773_vm7 = vcmask 25600   ;;  %vm1534_vm8 = vcmask 72704  }
  0x1b   :  { %8254 = vmatpush1.bf16.msra.mxu1 %v8253_v24  ;;  %s13279_s4 = sld [smem:[#allocation17_spill]]  ;;  %s13280_s0 = sld [smem:[#allocation15_spill]]  ;;  %vm2218_vm9 = vcmask 7168   ;;  %vm1987_vm10 = vcmask 56320   ;;  %vm2634_vm11 = vcmask 1039360   ;;  %vm2865_vm12 = vcmask 990208  }
  0x1c   :  { %7476 = vmatprep.subr.mxu1 %v13259_v7  ;;  %v10406_v28 = vsub.s32 0, %v100_v27  ;;  %v10411_v30 = vsub.s32 1, %v100_v27  ;;  %v10413_v31 = vsub.s32 2, %v100_v27  ;;  %v10415_v32 = vsub.s32 3, %v100_v27  ;;  %s13281_s30 = sld [smem:[#allocation16_spill]]  ;;  %s10202_s7 = smov 96  }
  0x1d   :  { %s10204_s26 = smov 80   ;;  %s10214_s5 = smov 127   ;;  %vm3096_vm13 = vcmask 982016   ;;  %vm3327_vm14 = vcmask 973824   ;;  %vm3642_vm15 = vcmask 523264  }
  0x1e   :  { %v80_v25 = vld [vmem:[%s13273_s1] sm:$0x3]  ;;  %s10205_s1 = smov 48   ;;  %s10217_s2 = smov 119  }
  0x1f   :  { %6933 = vmatmul.mubr.msk.f32.vlgmr.msra.gmra.mrb[0].mxu0 %vm119_vm0, %v80_v25  ;;  %6934 = vmatmul.mubr.msk.f32.vlgmr.msra.gmra.mrb[0].mxu1 %vm119_vm0, %v80_v25  ;;  %v97_v29 = vld [vmem:[%s13274_s27] sm:$0xf]  ;;  %v358_v52 = vld [vmem:[%s13275_s9 + $0x8] sm:$0xff]  ;;  %v360_v53 = vld [vmem:[%s13275_s9 + $0x18] sm:$0xff]  ;;  %s10213_s27 = smov 1  }
  0x20   :  { %v102_v33 = vrot.slane %v97_v29, %v10406_v28  ;;  %v106_v34 = vrot.slane %v97_v29, %v10411_v30  ;;  %v110_v35 = vrot.slane %v97_v29, %v10413_v31  ;;  %v114_v37 = vrot.slane %v97_v29, %v10415_v32  ;;  %v357_v54 = vld [vmem:[%s13275_s9] sm:$0xff]  ;;  %v359_v56 = vld [vmem:[%s13275_s9 + $0x10] sm:$0xff]  ;;  %v362_v57 = vld [vmem:[%s13275_s9 + $0x28] sm:$0xff]  ;;  %7478 = vmatprep.mubr.msk.f32.mxu1 %vm10201_vm3, %v13259_v7 }
  0x21   :  { %v8255_v55 = vpack.c.bf16 %v360_v53, %v358_v52  ;;  %v364_v58 = vld [vmem:[%s13275_s9 + $0x38] sm:$0xff]  ;;  %v8257_v59 = vpack.c.bf16 %v359_v56, %v357_v54  ;;  %v361_v61 = vld [vmem:[%s13275_s9 + $0x20] sm:$0xff]  ;;  %v363_v62 = vld [vmem:[%s13275_s9 + $0x30] sm:$0xff] }
  0x22   :  { %v8259_v60 = vpack.c.bf16 %v364_v58, %v362_v57  ;;  %v366_v63 = vld [vmem:[%s13275_s9 + $0x48] sm:$0xff]  ;;  %v368_v0 = vld [vmem:[%s13275_s9 + $0x58] sm:$0xff]  ;;  %v8261_v1 = vpack.c.bf16 %v363_v62, %v361_v61  ;;  %v365_v3 = vld [vmem:[%s13275_s9 + $0x40] sm:$0xff] }
  0x23   :  { %8256 = vmatprep.subr.bf16.mxu0 %v8255_v55  ;;  %v8263_v2 = vpack.c.bf16 %v368_v0, %v366_v63  ;;  %v367_v4 = vld [vmem:[%s13275_s9 + $0x50] sm:$0xff]  ;;  %v370_v5 = vld [vmem:[%s13275_s9 + $0x68] sm:$0xff]  ;;  %v372_v6 = vld [vmem:[%s13275_s9 + $0x78] sm:$0xff] }
  0x24   :  { %8258 = vmatpush1.bf16.msra.mxu0 %v8257_v59  ;;  %v8265_v8 = vpack.c.bf16 %v367_v4, %v365_v3  ;;  %v8267_v9 = vpack.c.bf16 %v372_v6, %v370_v5  ;;  %v369_v10 = vld [vmem:[%s13275_s9 + $0x60] sm:$0xff]  ;;  %v371_v11 = vld [vmem:[%s13275_s9 + $0x70] sm:$0xff]  ;;  %v374_v12 = vld [vmem:[%s13275_s9 + $0x88] sm:$0xff] }
  0x25   :  { %8260 = vmatprep.subr.bf16.mxu0 %v8259_v60  ;;  %v376_v13 = vld [vmem:[%s13275_s9 + $0x98] sm:$0xff]  ;;  %v8269_v14 = vpack.c.bf16 %v371_v11, %v369_v10  ;;  %v373_v16 = vld [vmem:[%s13275_s9 + $0x80] sm:$0xff]  ;;  %v375_v17 = vld [vmem:[%s13275_s9 + $0x90] sm:$0xff] }
  0x26   :  { %v8271_v15 = vpack.c.bf16 %v376_v13, %v374_v12  ;;  %v378_v18 = vld [vmem:[%s13275_s9 + $0xa8] sm:$0xff]  ;;  %v380_v19 = vld [vmem:[%s13275_s9 + $0xb8] sm:$0xff]  ;;  %v8273_v20 = vpack.c.bf16 %v375_v17, %v373_v16  ;;  %v377_v22 = vld [vmem:[%s13275_s9 + $0xa0] sm:$0xff] }
  0x27   :  { %v8275_v21 = vpack.c.bf16 %v380_v19, %v378_v18  ;;  %v379_v23 = vld [vmem:[%s13275_s9 + $0xb0] sm:$0xff]  ;;  %v382_v24 = vld [vmem:[%s13275_s9 + $0xc8] sm:$0xff]  ;;  %v384_v25 = vld [vmem:[%s13275_s9 + $0xd8] sm:$0xff] }
  0x28   :  { %8262 = vmatpush1.bf16.msra.mxu0 %v8261_v1  ;;  %v8277_v26 = vpack.c.bf16 %v379_v23, %v377_v22  ;;  %v8279_v27 = vpack.c.bf16 %v384_v25, %v382_v24  ;;  %v381_v29 = vld [vmem:[%s13275_s9 + $0xc0] sm:$0xff]  ;;  %v395_v55 = vld [vmem:[%s13275_s9 + $0x130] sm:$0xff]  ;;  %v398_v56 = vld [vmem:[%s13275_s9 + $0x148] sm:$0xff] }
  0x29   :  { %8264 = vmatprep.subr.bf16.mxu0 %v8263_v2  ;;  %v393_v54 = vld [vmem:[%s13275_s9 + $0x120] sm:$0xff]  ;;  %v400_v57 = vld [vmem:[%s13275_s9 + $0x158] sm:$0xff]  ;;  %v399_v11 = vld [vmem:[%s13275_s9 + $0x150] sm:$0xff] }
  0x2a   :  { %v8293_v58 = vpack.c.bf16 %v395_v55, %v393_v54  ;;  %v8295_v59 = vpack.c.bf16 %v400_v57, %v398_v56  ;;  %v397_v10 = vld [vmem:[%s13275_s9 + $0x140] sm:$0xff]  ;;  %v402_v13 = vld [vmem:[%s13275_s9 + $0x168] sm:$0xff]  ;;  %v403_v17 = vld [vmem:[%s13275_s9 + $0x170] sm:$0xff] }
  0x2b   :  { %v8297_v12 = vpack.c.bf16 %v399_v11, %v397_v10  ;;  %v401_v16 = vld [vmem:[%s13275_s9 + $0x160] sm:$0xff]  ;;  %v406_v19 = vld [vmem:[%s13275_s9 + $0x188] sm:$0xff]  ;;  %v407_v23 = vld [vmem:[%s13275_s9 + $0x190] sm:$0xff] }
  0x2c   :  { %8266 = vmatpush1.bf16.msra.mxu0 %v8265_v8  ;;  %v8301_v18 = vpack.c.bf16 %v403_v17, %v401_v16  ;;  %v410_v24 = vld [vmem:[%s13275_s9 + $0x1a8] sm:$0xff]  ;;  %v412_v25 = vld [vmem:[%s13275_s9 + $0x1b8] sm:$0xff]  ;;  %v265_v57 = vld [vmem:[%s13276_s3] sm:$0xf]  ;;  %s10203_s3 = smov 112  }
  0x2d   :  { %8268 = vmatprep.subr.bf16.mxu0 %v8267_v9 }
  0x30   :  { %8270 = vmatpush1.bf16.msra.mxu0 %v8269_v14  ;;  %v404_v14 = vld [vmem:[%s13275_s9 + $0x178] sm:$0xff] }
  0x31   :  { %8272 = vmatprep.subr.bf16.mxu0 %v8271_v15  ;;  %v8299_v15 = vpack.c.bf16 %v404_v14, %v402_v13  ;;  %v421_v13 = vld [vmem:[%s13275_s9 + $0x200] sm:$0xff] }
  0x34   :  { %8274 = vmatpush1.bf16.msra.mxu0 %v8273_v20  ;;  %v408_v20 = vld [vmem:[%s13275_s9 + $0x198] sm:$0xff] }
  0x35   :  { %8276 = vmatprep.subr.bf16.mxu0 %v8275_v21  ;;  %v405_v21 = vld [vmem:[%s13275_s9 + $0x180] sm:$0xff]  ;;  %v8303_v22 = vpack.c.bf16 %v408_v20, %v406_v19  ;;  %v427_v20 = vld [vmem:[%s13275_s9 + $0x230] sm:$0xff] }
  0x36   :  { %v425_v19 = vld [vmem:[%s13275_s9 + $0x220] sm:$0xff] }
  0x38   :  { %8278 = vmatpush1.bf16.msra.mxu0 %v8277_v26  ;;  %v8305_v26 = vpack.c.bf16 %v407_v23, %v405_v21  ;;  %v432_v23 = vld [vmem:[%s13275_s9 + $0x258] sm:$0xff] }
  0x39   :  { %8280 = vmatprep.subr.bf16.mxu0 %v8279_v27  ;;  %v8307_v27 = vpack.c.bf16 %v412_v25, %v410_v24  ;;  %v8325_v24 = vpack.c.bf16 %v427_v20, %v425_v19  ;;  %v465_v20 = vld [vmem:[%s13275_s9 + $0x360] sm:$0xff] }
  0xf2   :  { %v189_v36 = vpop.f32.mrb[0].mxu0  ;;  %v260_v40 = vpop.f32.mrb[0].mxu1 }
  0xf3   :  { %v10421_v38 = vadd.f32 %v189_v36, %v102_v33  ;;  %v191_v39 = vpop.f32.mrb[1].mxu0  ;;  %v10425_v42 = vadd.f32 %v260_v40, %v110_v35  ;;  %v262_v43 = vpop.f32.mrb[1].mxu1  ;;  %v383_v33 = vld [vmem:[%s13275_s9 + $0xd0] sm:$0xff]  ;;  %v388_v35 = vld [vmem:[%s13275_s9 + $0xf8] sm:$0xff] }
  0xf4   :  { %v10423_v41 = vadd.f32 %v191_v39, %v106_v34  ;;  %v10433_v47 = vadd.f32 %v262_v43, %v114_v37  ;;  %v386_v34 = vld [vmem:[%s13275_s9 + $0xe8] sm:$0xff]  ;;  %v8281_v36 = vpack.c.bf16 %v383_v33, %v381_v29  ;;  %v385_v39 = vld [vmem:[%s13275_s9 + $0xe0] sm:$0xff]  ;;  %v387_v40 = vld [vmem:[%s13275_s9 + $0xf0] sm:$0xff] }
  0xf5   :  { %v268_v44 = vsel %vm267_vm1, %v10421_v38, 0.0  ;;  %v271_v46 = vsel %vm267_vm1, %v10425_v42, 0.0  ;;  %v8283_v37 = vpack.c.bf16 %v388_v35, %v386_v34  ;;  %v390_v43 = vld [vmem:[%s13275_s9 + $0x108] sm:$0xff]  ;;  %v409_v29 = vld [vmem:[%s13275_s9 + $0x1a0] sm:$0xff]  ;;  %v411_v33 = vld [vmem:[%s13275_s9 + $0x1b0] sm:$0xff] }
  0xf6   :  { %v269_v45 = vsel %vm267_vm1, %v10423_v41, 0.0  ;;  %v273_v50 = vsel %vm267_vm1, %v10433_v47, 0.0  ;;  %8282 = vmatpush1.bf16.msra.mxu0 %v8281_v36  ;;  %v414_v34 = vld [vmem:[%s13275_s9 + $0x1c8] sm:$0xff]  ;;  %v416_v35 = vld [vmem:[%s13275_s9 + $0x1d8] sm:$0xff]  ;;  %v8309_v36 = vpack.c.bf16 %v411_v33, %v409_v29 }
  0xf7   :  { %v270_v48 = vadd.f32 %v269_v45, %v268_v44  ;;  %v392_v44 = vld [vmem:[%s13275_s9 + $0x118] sm:$0xff]  ;;  %v8285_v45 = vpack.c.bf16 %v387_v40, %v385_v39  ;;  %8284 = vmatprep.subr.bf16.mxu0 %v8283_v37  ;;  %v8311_v37 = vpack.c.bf16 %v416_v35, %v414_v34  ;;  %v413_v39 = vld [vmem:[%s13275_s9 + $0x1c0] sm:$0xff]  ;;  %v415_v40 = vld [vmem:[%s13275_s9 + $0x1d0] sm:$0xff] }
  0xf8   :  { %v434_v29 = vld [vmem:[%s13275_s9 + $0x268] sm:$0xff]  ;;  %v436_v33 = vld [vmem:[%s13275_s9 + $0x278] sm:$0xff] }
  0xf9   :  { %v272_v49 = vadd.f32 %v271_v46, %v270_v48  ;;  %v8287_v46 = vpack.c.bf16 %v392_v44, %v390_v43  ;;  %v389_v48 = vld [vmem:[%s13275_s9 + $0x100] sm:$0xff]  ;;  %v418_v43 = vld [vmem:[%s13275_s9 + $0x1e8] sm:$0xff]  ;;  %v420_v44 = vld [vmem:[%s13275_s9 + $0x1f8] sm:$0xff]  ;;  %v8331_v35 = vpack.c.bf16 %v436_v33, %v434_v29 }
  0xfa   :  { %8286 = vmatpush1.bf16.msra.mxu0 %v8285_v45  ;;  %v8313_v45 = vpack.c.bf16 %v415_v40, %v413_v39  ;;  %v438_v39 = vld [vmem:[%s13275_s9 + $0x288] sm:$0xff]  ;;  %v440_v40 = vld [vmem:[%s13275_s9 + $0x298] sm:$0xff] }
  0xfb   :  { %v274_v51 = vadd.f32 %v273_v50, %v272_v49  ;;  %v391_v49 = vld [vmem:[%s13275_s9 + $0x110] sm:$0xff]  ;;  %v394_v50 = vld [vmem:[%s13275_s9 + $0x128] sm:$0xff]  ;;  %8288 = vmatprep.subr.bf16.mxu0 %v8287_v46  ;;  %v8315_v46 = vpack.c.bf16 %v420_v44, %v418_v43  ;;  %v8335_v44 = vpack.c.bf16 %v440_v40, %v438_v39  ;;  %v476_v33 = vld [vmem:[%s13275_s9 + $0x3b8] sm:$0xff] }
  0xfc   :  { %v8289_v52 = vpack.c.bf16 %v391_v49, %v389_v48  ;;  %v417_v48 = vld [vmem:[%s13275_s9 + $0x1e0] sm:$0xff]  ;;  %v419_v49 = vld [vmem:[%s13275_s9 + $0x1f0] sm:$0xff]  ;;  %v474_v29 = vld [vmem:[%s13275_s9 + $0x3a8] sm:$0xff] }
  0xfd   :  { %275 = vadd.xlane.f32.xlu0 %v274_v51  ;;  %v396_v51 = vld [vmem:[%s13275_s9 + $0x138] sm:$0xff]  ;;  %v478_v39 = vld [vmem:[%s13275_s9 + $0x3c8] sm:$0xff] }
  0xfe   :  { %v8291_v53 = vpack.c.bf16 %v396_v51, %v394_v50  ;;  %8290 = vmatpush1.bf16.msra.mxu0 %v8289_v52  ;;  %v8317_v50 = vpack.c.bf16 %v419_v49, %v417_v48  ;;  %v422_v51 = vld [vmem:[%s13275_s9 + $0x208] sm:$0xff]  ;;  %v424_v52 = vld [vmem:[%s13275_s9 + $0x218] sm:$0xff] }
  0xff   :  { %v442_v48 = vld [vmem:[%s13275_s9 + $0x2a8] sm:$0xff]  ;;  %v444_v49 = vld [vmem:[%s13275_s9 + $0x2b8] sm:$0xff] }
 0x100   :  { %8292 = vmatprep.subr.bf16.mxu0 %v8291_v53  ;;  %v8319_v53 = vpack.c.bf16 %v424_v52, %v422_v51  ;;  %v8339_v51 = vpack.c.bf16 %v444_v49, %v442_v48  ;;  %v441_v52 = vld [vmem:[%s13275_s9 + $0x2a0] sm:$0xff]  ;;  %v480_v40 = vld [vmem:[%s13275_s9 + $0x3d8] sm:$0xff]  ;;  %v482_v48 = vld [vmem:[%s13275_s9 + $0x3e8] sm:$0xff] }
 0x101   :  { %v484_v49 = vld [vmem:[%s13275_s9 + $0x3f8] sm:$0xff] }
 0x102   :  { %8294 = vmatpush1.bf16.msra.mxu0 %v8293_v58  ;;  %v266_v58 = vld [vmem:[%s13277_s6] sm:$0xf]  ;;  %s10206_s6 = smov 64  }
 0x103   :  { %8296 = vmatprep.subr.bf16.mxu0 %v8295_v59  ;;  %v315_v59 = vrot.slane %v265_v57, %v10413_v31 }
 0x106   :  { %8298 = vmatpush1.bf16.msra.mxu0 %v8297_v12 }
 0x107   :  { %8300 = vmatprep.subr.bf16.mxu0 %v8299_v15 }
 0x10a   :  { %8302 = vmatpush1.bf16.msra.mxu0 %v8301_v18 }
 0x10b   :  { %8304 = vmatprep.subr.bf16.mxu0 %v8303_v22  ;;  %v430_v22 = vld [vmem:[%s13275_s9 + $0x248] sm:$0xff] }
 0x10c   :  { %v8327_v25 = vpack.c.bf16 %v432_v23, %v430_v22  ;;  %v470_v22 = vld [vmem:[%s13275_s9 + $0x388] sm:$0xff]  ;;  %v472_v23 = vld [vmem:[%s13275_s9 + $0x398] sm:$0xff] }
 0x10e   :  { %8306 = vmatpush1.bf16.msra.mxu0 %v8305_v26  ;;  %v429_v26 = vld [vmem:[%s13275_s9 + $0x240] sm:$0xff] }
 0x10f   :  { %8308 = vmatprep.subr.bf16.mxu0 %v8307_v27  ;;  %v431_v27 = vld [vmem:[%s13275_s9 + $0x250] sm:$0xff] }
 0x110   :  { %v8329_v34 = vpack.c.bf16 %v431_v27, %v429_v26  ;;  %v469_v26 = vld [vmem:[%s13275_s9 + $0x380] sm:$0xff]  ;;  %v471_v27 = vld [vmem:[%s13275_s9 + $0x390] sm:$0xff] }
 0x112   :  { %8310 = vmatpush1.bf16.msra.mxu0 %v8309_v36  ;;  %v433_v36 = vld [vmem:[%s13275_s9 + $0x260] sm:$0xff] }
 0x113   :  { %8312 = vmatprep.subr.bf16.mxu0 %v8311_v37  ;;  %v435_v37 = vld [vmem:[%s13275_s9 + $0x270] sm:$0xff] }
 0x114   :  { %v8333_v43 = vpack.c.bf16 %v435_v37, %v433_v36  ;;  %v473_v36 = vld [vmem:[%s13275_s9 + $0x3a0] sm:$0xff]  ;;  %v475_v37 = vld [vmem:[%s13275_s9 + $0x3b0] sm:$0xff] }
 0x116   :  { %8314 = vmatpush1.bf16.msra.mxu0 %v8313_v45  ;;  %v437_v45 = vld [vmem:[%s13275_s9 + $0x280] sm:$0xff] }
 0x117   :  { %8316 = vmatprep.subr.bf16.mxu0 %v8315_v46  ;;  %v439_v46 = vld [vmem:[%s13275_s9 + $0x290] sm:$0xff] }
 0x11a   :  { %8318 = vmatpush1.bf16.msra.mxu0 %v8317_v50  ;;  %v8337_v50 = vpack.c.bf16 %v439_v46, %v437_v45  ;;  %v477_v45 = vld [vmem:[%s13275_s9 + $0x3c0] sm:$0xff]  ;;  %v479_v46 = vld [vmem:[%s13275_s9 + $0x3d0] sm:$0xff] }
 0x11b   :  { %8320 = vmatprep.subr.bf16.mxu0 %v8319_v53  ;;  %v443_v53 = vld [vmem:[%s13275_s9 + $0x2b0] sm:$0xff] }
 0x18a   :  { %v276_v60 = vpop.xlane.xlu0 %275 }
 0x18b   :  { %v278_v61 = vmul.f32 0.001953125, %v276_v60  ;;  %v311_v60 = vrot.slane %v265_v57, %v10411_v30 }
 0x18d   :  { %v10564_v62 = vsub.f32 %v10421_v38, %v278_v61  ;;  %v10567_v63 = vsub.f32 %v10423_v41, %v278_v61  ;;  %v10570_v0 = vsub.f32 %v10425_v42, %v278_v61  ;;  %v10573_v1 = vsub.f32 %v10433_v47, %v278_v61 }
 0x18e   :  { %v307_v61 = vrot.slane %v265_v57, %v10406_v28 }
 0x18f   :  { %v283_v2 = vmul.f32 %v10564_v62, %v10564_v62  ;;  %v284_v3 = vmul.f32 %v10567_v63, %v10567_v63  ;;  %v285_v4 = vmul.f32 %v10570_v0, %v10570_v0  ;;  %v286_v38 = vmul.f32 %v10573_v1, %v10573_v1 }
 0x191   :  { %v287_v41 = vsel %vm267_vm1, %v283_v2, 0.0  ;;  %v288_v42 = vsel %vm267_vm1, %v284_v3, 0.0  ;;  %v290_v47 = vsel %vm267_vm1, %v285_v4, 0.0  ;;  %v292_v8 = vsel %vm267_vm1, %v286_v38, 0.0 }
 0x192   :  { %v289_v5 = vadd.f32 %v288_v42, %v287_v41  ;;  %v319_v2 = vrot.slane %v265_v57, %v10415_v32  ;;  %v336_v4 = vrot.slane %v266_v58, %v10411_v30  ;;  %v332_v38 = vrot.slane %v266_v58, %v10406_v28 }
 0x193   :  { %v344_v41 = vrot.slane %v266_v58, %v10415_v32  ;;  %v340_v42 = vrot.slane %v266_v58, %v10413_v31  ;;  %v423_v31 = vld [vmem:[%s13275_s9 + $0x210] sm:$0xff]  ;;  %v445_v58 = vld [vmem:[%s13275_s9 + $0x2c0] sm:$0xff] }
 0x194   :  { %v291_v6 = vadd.f32 %v290_v47, %v289_v5  ;;  %v8321_v17 = vpack.c.bf16 %v423_v31, %v421_v13  ;;  %v457_v13 = vld [vmem:[%s13275_s9 + $0x320] sm:$0xff]  ;;  %v459_v31 = vld [vmem:[%s13275_s9 + $0x330] sm:$0xff] }
 0x196   :  { %v293_v9 = vadd.f32 %v292_v8, %v291_v6 }
 0x198   :  { %294 = vadd.xlane.f32.xlu0 %v293_v9 }
 0x225   :  { %v295_v54 = vpop.xlane.xlu0 %294 }
 0x226   :  { %v296_v55 = vmul.f32 0.001953125, %v295_v54  ;;  %v446_v54 = vld [vmem:[%s13275_s9 + $0x2c8] sm:$0xff] }
 0x228   :  { %v297_v56 = vadd.f32 1e-05, %v296_v55  ;;  %v448_v55 = vld [vmem:[%s13275_s9 + $0x2d8] sm:$0xff] }
 0x229   :  { %v8343_v57 = vpack.c.bf16 %v448_v55, %v446_v54 }
 0x22a   :  { %10172 = vrsqrt.f32 %v297_v56  ;;  %v8341_v56 = vpack.c.bf16 %v443_v53, %v441_v52  ;;  %v481_v52 = vld [vmem:[%s13275_s9 + $0x3e0] sm:$0xff]  ;;  %v483_v53 = vld [vmem:[%s13275_s9 + $0x3f0] sm:$0xff] }
 0x22b   :  { %v8381_v54 = vpack.c.bf16 %v483_v53, %v481_v52 }
 0x234   :  { %v10173_v3 = vpop.eup %10172 }
 0x235   :  { %v300_v5 = vmul.f32 %v10173_v3, %v10567_v63  ;;  %v299_v47 = vmul.f32 %v10173_v3, %v10564_v62  ;;  %v302_v6 = vmul.f32 %v10173_v3, %v10573_v1  ;;  %v301_v8 = vmul.f32 %v10173_v3, %v10570_v0  ;;  %v426_v62 = vld [vmem:[%s13275_s9 + $0x228] sm:$0xff]  ;;  %v428_v0 = vld [vmem:[%s13275_s9 + $0x238] sm:$0xff] }
 0x236   :  { %v8323_v18 = vpack.c.bf16 %v428_v0, %v426_v62  ;;  %v461_v0 = vld [vmem:[%s13275_s9 + $0x340] sm:$0xff] }
 0x237   :  { %v325_v9 = vmul.f32 %v311_v60, %v300_v5  ;;  %v324_v10 = vmul.f32 %v307_v61, %v299_v47  ;;  %v327_v11 = vmul.f32 %v319_v2, %v302_v6  ;;  %v326_v12 = vmul.f32 %v315_v59, %v301_v8  ;;  %v447_v59 = vld [vmem:[%s13275_s9 + $0x2d0] sm:$0xff]  ;;  %v450_v60 = vld [vmem:[%s13275_s9 + $0x2e8] sm:$0xff]  ;;  %v452_v61 = vld [vmem:[%s13275_s9 + $0x2f8] sm:$0xff] }
 0x238   :  { %v8345_v2 = vpack.c.bf16 %v447_v59, %v445_v58  ;;  %v8347_v3 = vpack.c.bf16 %v452_v61, %v450_v60  ;;  %v453_v6 = vld [vmem:[%s13275_s9 + $0x300] sm:$0xff]  ;;  %v455_v8 = vld [vmem:[%s13275_s9 + $0x310] sm:$0xff] }
 0x239   :  { %v350_v32 = vadd.f32 %v336_v4, %v325_v9  ;;  %v349_v63 = vadd.f32 %v332_v38, %v324_v10  ;;  %v352_v14 = vadd.f32 %v344_v41, %v327_v11  ;;  %v10689_v1 = vadd.f32 %v340_v42, %v326_v12  ;;  %v449_v4 = vld [vmem:[%s13275_s9 + $0x2e0] sm:$0xff]  ;;  %v451_v38 = vld [vmem:[%s13275_s9 + $0x2f0] sm:$0xff]  ;;  %v454_v41 = vld [vmem:[%s13275_s9 + $0x308] sm:$0xff] }
 0x23a   :  { %v456_v42 = vld [vmem:[%s13275_s9 + $0x318] sm:$0xff]  ;;  %v8349_v5 = vpack.c.bf16 %v451_v38, %v449_v4  ;;  %v458_v9 = vld [vmem:[%s13275_s9 + $0x328] sm:$0xff]  ;;  %v8353_v11 = vpack.c.bf16 %v455_v8, %v453_v6 }
 0x23b   :  { %v354_v15 = vmax.f32 %v350_v32, 0.0  ;;  %v353_v16 = vmax.f32 %v349_v63, 0.0  ;;  %v356_v21 = vmax.f32 %v352_v14, 0.0  ;;  %v8351_v47 = vpack.c.bf16 %v456_v42, %v454_v41  ;;  %v460_v10 = vld [vmem:[%s13275_s9 + $0x338] sm:$0xff]  ;;  %v462_v32 = vld [vmem:[%s13275_s9 + $0x348] sm:$0xff] }
 0x23c   :  { %v8355_v12 = vpack.c.bf16 %v460_v10, %v458_v9  ;;  %v464_v63 = vld [vmem:[%s13275_s9 + $0x358] sm:$0xff]  ;;  %v8357_v14 = vpack.c.bf16 %v459_v31, %v457_v13  ;;  %v355_v55 = vmax.f32 %v10689_v1, 0.0 }
 0x23d   :  { %561 = vmatprep.mubr.f32.mxu0 %v354_v15  ;;  %v8359_v62 = vpack.c.bf16 %v464_v63, %v462_v32  ;;  %v463_v15 = vld [vmem:[%s13275_s9 + $0x350] sm:$0xff]  ;;  %v639_v32 = vld [vmem:[%s13280_s0] sm:$0x3] }
 0x23e   :  { %562 = vmatmul.mubr.f32.vlgmr.msra.gmra.mrb[2].mxu0 %v353_v16  ;;  %v466_v16 = vld [vmem:[%s13275_s9 + $0x368] sm:$0xff]  ;;  %v640_v63 = vld [vmem:[%s13281_s30] sm:$0x3] }
 0x23f   :  { %8322 = vmatpush1.bf16.msra.mxu0 %v8321_v17  ;;  %632 = vmatprep.mubr.f32.mxu0 %v356_v21  ;;  %v468_v17 = vld [vmem:[%s13275_s9 + $0x378] sm:$0xff]  ;;  %v467_v21 = vld [vmem:[%s13275_s9 + $0x370] sm:$0xff]  ;;  %s10212_s9 = smov 7  }
 0x240   :  { %8324 = vmatprep.subr.bf16.mxu0 %v8323_v18  ;;  %v8361_v18 = vpack.c.bf16 %v463_v15, %v461_v0  ;;  %v8363_v19 = vpack.c.bf16 %v468_v17, %v466_v16  ;;  %v680_v17 = vrot.slane %v640_v63, %v10406_v28 }
 0x243   :  { %8326 = vmatpush1.bf16.msra.mxu0 %v8325_v24  ;;  %v8365_v24 = vpack.c.bf16 %v467_v21, %v465_v20 }
 0x244   :  { %8328 = vmatprep.subr.bf16.mxu0 %v8327_v25  ;;  %v8367_v25 = vpack.c.bf16 %v472_v23, %v470_v22 }
 0x247   :  { %8330 = vmatpush1.bf16.msra.mxu0 %v8329_v34  ;;  %v8369_v34 = vpack.c.bf16 %v471_v27, %v469_v26  ;;  %v881_v26 = vld [vmem:[%s13243_s12 + $0x8] sm:$0xff]  ;;  %v882_v27 = vld [vmem:[%s13243_s12 + $0x10] sm:$0xff] }
 0x248   :  { %8332 = vmatprep.subr.bf16.mxu0 %v8331_v35  ;;  %v8371_v35 = vpack.c.bf16 %v476_v33, %v474_v29  ;;  %v884_v29 = vld [vmem:[%s13243_s12 + $0x20] sm:$0xff]  ;;  %v883_v33 = vld [vmem:[%s13243_s12 + $0x18] sm:$0xff] }
 0x24b   :  { %8334 = vmatpush1.bf16.msra.mxu0 %v8333_v43  ;;  %v8373_v43 = vpack.c.bf16 %v475_v37, %v473_v36  ;;  %v887_v36 = vld [vmem:[%s13243_s12 + $0x38] sm:$0xff]  ;;  %v889_v37 = vld [vmem:[%s13243_s12 + $0x48] sm:$0xff] }
 0x24c   :  { %8336 = vmatprep.subr.bf16.mxu0 %v8335_v44  ;;  %v8375_v44 = vpack.c.bf16 %v480_v40, %v478_v39  ;;  %v888_v39 = vld [vmem:[%s13243_s12 + $0x40] sm:$0xff]  ;;  %v891_v40 = vld [vmem:[%s13243_s12 + $0x58] sm:$0xff] }
 0x24f   :  { %8338 = vmatpush1.bf16.msra.mxu0 %v8337_v50  ;;  %v8377_v50 = vpack.c.bf16 %v479_v46, %v477_v45  ;;  %v892_v45 = vld [vmem:[%s13243_s12 + $0x60] sm:$0xff]  ;;  %v895_v46 = vld [vmem:[%s13243_s12 + $0x78] sm:$0xff] }
 0x250   :  { %8340 = vmatprep.subr.bf16.mxu0 %v8339_v51  ;;  %v8379_v51 = vpack.c.bf16 %v484_v49, %v482_v48  ;;  %v894_v48 = vld [vmem:[%s13243_s12 + $0x70] sm:$0xff] }
 0x253   :  { %8342 = vmatpush1.bf16.msra.mxu0 %v8341_v56  ;;  %v485_v56 = vld [vmem:[%s13278_s8] sm:$0x3]  ;;  %s10207_s8 = smov 16  }
 0x254   :  { %8344 = vmatprep.subr.bf16.mxu0 %v8343_v57  ;;  %v490_v57 = vrot.slane %v485_v56, %v10406_v28  ;;  %v494_v58 = vrot.slane %v485_v56, %v10411_v30  ;;  %v1185_v56 = vld [vmem:[%s13244_s13] sm:$0xff] }
 0x257   :  { %8346 = vmatpush1.bf16.msra.mxu0 %v8345_v2 }
 0x258   :  { %8348 = vmatprep.subr.bf16.mxu0 %v8347_v3 }
 0x25b   :  { %8350 = vmatpush1.bf16.msra.mxu0 %v8349_v5 }
 0x25c   :  { %8352 = vmatprep.subr.bf16.mxu0 %v8351_v47 }
 0x25f   :  { %8354 = vmatpush1.bf16.msra.mxu0 %v8353_v11  ;;  %v691_v11 = vld [vmem:[%s13279_s4] sm:$0xff]  ;;  %s10208_s4 = smov 32  }
 0x260   :  { %8356 = vmatprep.subr.bf16.mxu0 %v8355_v12  ;;  %7477 = vmatpush3.msra.mxu1 %v691_v11  ;;  %v877_v11 = vld [vmem:[%s13242_s11 + $0x68] sm:$0xff] }
 0x263   :  { %8358 = vmatpush1.bf16.msra.mxu0 %v8357_v14  ;;  %v667_v14 = vrot.slane %v639_v32, %v10406_v28  ;;  %v864_v28 = vld [vmem:[%s13242_s11] sm:$0xff] }
 0x264   :  { %8360 = vmatprep.subr.bf16.mxu0 %v8359_v62  ;;  %v671_v62 = vrot.slane %v639_v32, %v10411_v30 }
 0x267   :  { %8362 = vmatpush1.bf16.msra.mxu0 %v8361_v18  ;;  %v684_v18 = vrot.slane %v640_v63, %v10411_v30  ;;  %v880_v30 = vld [vmem:[%s13243_s12] sm:$0xff] }
 0x268   :  { %8364 = vmatprep.subr.bf16.mxu0 %v8363_v19 }
 0x26b   :  { %8366 = vmatpush1.bf16.msra.mxu0 %v8365_v24 }
 0x26c   :  { %8368 = vmatprep.subr.bf16.mxu0 %v8367_v25  ;;  %v10209_v25 = vmov 0  }
 0x26d   :  { %9050 = vset.pattern.permute.xlu1 %v10209_v25  ;;  %9051 = vset.pattern.permute.xlu0 %v10209_v25 }
 0x26f   :  { %8370 = vmatpush1.bf16.msra.mxu0 %v8369_v34  ;;  %v886_v34 = vld [vmem:[%s13243_s12 + $0x30] sm:$0xff] }
 0x270   :  { %8372 = vmatprep.subr.bf16.mxu0 %v8371_v35  ;;  %v885_v35 = vld [vmem:[%s13243_s12 + $0x28] sm:$0xff] }
 0x273   :  { %8374 = vmatpush1.bf16.msra.mxu0 %v8373_v43  ;;  %v890_v43 = vld [vmem:[%s13243_s12 + $0x50] sm:$0xff] }
 0x274   :  { %8376 = vmatprep.subr.bf16.mxu0 %v8375_v44  ;;  %v893_v44 = vld [vmem:[%s13243_s12 + $0x68] sm:$0xff]  ;;  %s10216_s12 = smov 120  }
 0x277   :  { %8378 = vmatpush1.bf16.msra.mxu0 %v8377_v50 }
 0x278   :  { %8380 = vmatprep.subr.bf16.mxu0 %v8379_v51 }
 0x27b   :  { %8382 = vmatpush1.bf16.msra.mxu0 %v8381_v54 }
 0x27e   :  { %633 = vmatmul.mubr.f32.vlgmr.msra.gmra.mrb[2].mxu0 %v355_v55 }
 0x351   :  { %v634_v59 = vpop.f32.mrb[2].mxu0 }
 0x352   :  { %v9026_v60 = vadd.f32 %v634_v59, %v490_v57  ;;  %v636_v61 = vpop.f32.mrb[3].mxu0  ;;  %v1186_v57 = vld [vmem:[%s13244_s13 + $0x8] sm:$0xff]  ;;  %v1188_v59 = vld [vmem:[%s13244_s13 + $0x18] sm:$0xff] }
 0x353   :  { %v9027_v2 = vadd.f32 %v636_v61, %v494_v58  ;;  %v1187_v58 = vld [vmem:[%s13244_s13 + $0x10] sm:$0xff]  ;;  %s10215_s13 = smov 121  }
 0x354   :  { %v641_v3 = vsel %vm267_vm1, %v9026_v60, 0.0 }
 0x355   :  { %v643_v4 = vsel %vm642_vm2, %v9027_v2, 0.0 }
 0x356   :  { %v644_v38 = vadd.f32 %v643_v4, %v641_v3  ;;  %v866_v3 = vld [vmem:[%s13242_s11 + $0x10] sm:$0xff]  ;;  %v8387_v4 = vpack.c.bf16 %v1188_v59, %v1187_v58 }
 0x358   :  { %645 = vadd.xlane.f32.xlu1 %v644_v38  ;;  %v867_v38 = vld [vmem:[%s13242_s11 + $0x18] sm:$0xff] }
 0x3e5   :  { %v646_v1 = vpop.xlane.xlu1 %645 }
 0x3e6   :  { %v648_v41 = vmul.f32 0.007352941, %v646_v1  ;;  %v868_v1 = vld [vmem:[%s13242_s11 + $0x20] sm:$0xff] }
 0x3e8   :  { %v649_v42 = vsub.f32 %v9026_v60, %v648_v41  ;;  %v650_v5 = vsub.f32 %v9027_v2, %v648_v41  ;;  %v8383_v60 = vpack.c.bf16 %v1186_v57, %v1185_v56  ;;  %v865_v2 = vld [vmem:[%s13242_s11 + $0x8] sm:$0xff] }
 0x3e9   :  { %v869_v41 = vld [vmem:[%s13242_s11 + $0x28] sm:$0xff] }
 0x3ea   :  { %v651_v47 = vmul.f32 %v649_v42, %v649_v42  ;;  %v652_v6 = vmul.f32 %v650_v5, %v650_v5 }
 0x3ec   :  { %v653_v8 = vsel %vm267_vm1, %v651_v47, 0.0  ;;  %v654_v9 = vsel %vm642_vm2, %v652_v6, 0.0  ;;  %v872_v47 = vld [vmem:[%s13242_s11 + $0x40] sm:$0xff]  ;;  %v873_v6 = vld [vmem:[%s13242_s11 + $0x48] sm:$0xff] }
 0x3ed   :  { %v655_v10 = vadd.f32 %v654_v9, %v653_v8  ;;  %v874_v8 = vld [vmem:[%s13242_s11 + $0x50] sm:$0xff]  ;;  %v875_v9 = vld [vmem:[%s13242_s11 + $0x58] sm:$0xff] }
 0x3ef   :  { %656 = vadd.xlane.f32.xlu1 %v655_v10  ;;  %v876_v10 = vld [vmem:[%s13242_s11 + $0x60] sm:$0xff] }
 0x47c   :  { %v657_v12 = vpop.xlane.xlu1 %656 }
 0x47d   :  { %v658_v13 = vmul.f32 0.007352941, %v657_v12  ;;  %v878_v12 = vld [vmem:[%s13242_s11 + $0x70] sm:$0xff] }
 0x47f   :  { %v659_v31 = vadd.f32 1e-05, %v658_v13  ;;  %v879_v13 = vld [vmem:[%s13242_s11 + $0x78] sm:$0xff] }
 0x481   :  { %10174 = vrsqrt.f32 %v659_v31  ;;  %v6935_v31 = vld [vmem:[%s13241_s10] ss:$0 sm:$0xff]  ;;  %s10210_s10 = smov 9  }
 0x48b   :  { %v10175_v0 = vpop.eup %10174 }
 0x48c   :  { %v661_v15 = vmul.f32 %v10175_v0, %v649_v42  ;;  %v662_v16 = vmul.f32 %v10175_v0, %v650_v5  ;;  %v870_v42 = vld [vmem:[%s13242_s11 + $0x30] sm:$0xff]  ;;  %v871_v5 = vld [vmem:[%s13242_s11 + $0x38] sm:$0xff]  ;;  %s10211_s11 = smov 8  }
 0x48e   :  { %v674_v19 = vmul.f32 %v667_v14, %v661_v15  ;;  %v675_v20 = vmul.f32 %v671_v62, %v662_v16 }
 0x490   :  { %v687_v21 = vadd.f32 %v680_v17, %v674_v19  ;;  %v688_v22 = vadd.f32 %v684_v18, %v675_v20 }
 0x492   :  { %v689_v23 = vmax.f32 %v687_v21, 0.0  ;;  %v690_v24 = vmax.f32 %v688_v22, 0.0 }
 0x494   :  { %7479 = vmatmul.mubr.msk.f32.vlgmr.msra.gmra.mrb[2].mxu1 %vm699_vm4, %v690_v24  ;;  %782 = vrot.lane.b32.xlu1 %v689_v23, %s10202_s7  ;;  %776 = vst.msk [vmem:[#allocation2] sm:$0x1] %vm775_vm5, %v689_v23 }
 0x495   :  { %778 = vrot.lane.b32.xlu0 %v689_v23, %s10203_s3  ;;  %7483 = vmatprep.mubr.msk.f32.mxu1 %vm699_vm4, %v864_v28 }
 0x498   :  { %786 = vrot.lane.b32.xlu1 %v689_v23, %s10204_s26 }
 0x499   :  { %794 = vrot.lane.b32.xlu0 %v689_v23, %s10205_s1 }
 0x49c   :  { %790 = vrot.lane.b32.xlu1 %v689_v23, %s10206_s6 }
 0x49d   :  { %802 = vrot.lane.b32.xlu0 %v689_v23, %s10207_s8 }
 0x4a0   :  { %798 = vrot.lane.b32.xlu1 %v689_v23, %s10208_s4 }
 0x4a1   :  { %903 = vperm.xlu0 %9051, %v881_v26  }
 0x4a4   :  { %898 = vperm.xlu1 %9050, %v880_v30  }
 0x4a5   :  { %918 = vperm.xlu0 %9051, %v884_v29  }
 0x4a8   :  { %908 = vperm.xlu1 %9050, %v882_v27  }
 0x4a9   :  { %928 = vperm.xlu0 %9051, %v886_v34  }
 0x4ac   :  { %913 = vperm.xlu1 %9050, %v883_v33  }
 0x4ad   :  { %938 = vperm.xlu0 %9051, %v888_v39  }
 0x4b0   :  { %923 = vperm.xlu1 %9050, %v885_v35  }
 0x4b1   :  { %948 = vperm.xlu0 %9051, %v890_v43  }
 0x4b4   :  { %933 = vperm.xlu1 %9050, %v887_v36  }
 0x4b5   :  { %958 = vperm.xlu0 %9051, %v892_v45  }
 0x4b8   :  { %943 = vperm.xlu1 %9050, %v889_v37  }
 0x4b9   :  { %968 = vperm.xlu0 %9051, %v894_v48  }
 0x4bc   :  { %953 = vperm.xlu1 %9050, %v891_v40  }
 0x4c0   :  { %963 = vperm.xlu1 %9050, %v893_v44  }
 0x4c4   :  { %973 = vperm.xlu1 %9050, %v895_v46  }
 0x506   :  { %v783_v49 = vpop.permute.xlu1 %782 }
 0x507   :  { %785 = vst.msk [vmem:[#allocation2 + $0x2] sm:$0x1] %vm775_vm5, %v783_v49  ;;  %v779_v50 = vpop.permute.xlu0 %778 }
 0x508   :  { %781 = vst.msk [vmem:[#allocation2 + $0x1] sm:$0x1] %vm775_vm5, %v779_v50 }
 0x509   :  { %809 = vst.msk [vmem:[#allocation2 + $0x1] sm:$0x2] %vm806_vm6, %v779_v50  ;;  %808 = vst.msk [vmem:[#allocation2] sm:$0x2] %vm806_vm6, %v689_v23 }
 0x50a   :  { %v787_v51 = vpop.permute.xlu1 %786 }
 0x50b   :  { %789 = vst.msk [vmem:[#allocation2 + $0x3] sm:$0x1] %vm775_vm5, %v787_v51  ;;  %v795_v52 = vpop.permute.xlu0 %794 }
 0x50c   :  { %810 = vst.msk [vmem:[#allocation2 + $0x2] sm:$0x2] %vm806_vm6, %v783_v49 }
 0x50d   :  { %797 = vst.msk [vmem:[#allocation2 + $0x5] sm:$0x1] %vm775_vm5, %v795_v52 }
 0x50e   :  { %v791_v53 = vpop.permute.xlu1 %790 }
 0x50f   :  { %793 = vst.msk [vmem:[#allocation2 + $0x4] sm:$0x1] %vm775_vm5, %v791_v53  ;;  %v803_v54 = vpop.permute.xlu0 %802 }
 0x510   :  { %812 = vst.msk [vmem:[#allocation2 + $0x4] sm:$0x2] %vm806_vm6, %v791_v53  ;;  %811 = vst.msk [vmem:[#allocation2 + $0x3] sm:$0x2] %vm806_vm6, %v787_v51 }
 0x511   :  { %805 = vst.msk [vmem:[#allocation2 + $0x7] sm:$0x1] %vm775_vm5, %v803_v54 }
 0x512   :  { %807 = vst.msk [vmem:[#allocation2 - $0x1] sm:$0x2] %vm806_vm6, %v803_v54  ;;  %v799_v55 = vpop.permute.xlu1 %798 }
 0x513   :  { %801 = vst.msk [vmem:[#allocation2 + $0x6] sm:$0x1] %vm775_vm5, %v799_v55 }
 0x514   :  { %814 = vst.msk [vmem:[#allocation2 + $0x6] sm:$0x2] %vm806_vm6, %v799_v55  ;;  %813 = vst.msk [vmem:[#allocation2 + $0x5] sm:$0x2] %vm806_vm6, %v795_v52 }
 0x51b   :  { %v815_v61 = vld [vmem:[#allocation2] sm:$0xff] }
 0x51c   :  { %7481 = vmatprep.subr.mxu1 %v815_v61 }
 0x51d   :  { %7482 = vmatpush3.msra.mxu1 %v815_v61 }
 0x51e   :  { %7484 = vmatmul.mubr.msk.f32.vlgmr.msra.gmra.mrb[4].mxu1 %vm699_vm4, %v865_v2  ;;  %8384 = vmatprep.subr.bf16.mxu1 %v8383_v60 }
 0x51f   :  { %7486 = vmatprep.mubr.msk.f32.mxu1 %vm699_vm4, %v866_v3  ;;  %8386 = vmatpush3.bf16.msra.mxu1 %v8383_v60 }
 0x520   :  { %8388 = vmatprep.subr.bf16.mxu1 %v8387_v4  ;;  %v904_v16 = vpop.permute.xlu0 %903 }
 0x522   :  { %7487 = vmatmul.mubr.msk.f32.gmra.mrb[6].mxu1 %vm699_vm4, %v867_v38 }
 0x523   :  { %7489 = vmatprep.mubr.msk.f32.mxu1 %vm699_vm4, %v868_v1  ;;  %8390 = vmatpush3.bf16.msra.mxu1 %v8387_v4  ;;  %v899_v62 = vpop.permute.xlu1 %898 }
 0x524   :  { %v919_v18 = vpop.permute.xlu0 %918 }
 0x526   :  { %7490 = vmatmul.mubr.msk.f32.gmra.mrb[8].mxu1 %vm699_vm4, %v869_v41 }
 0x527   :  { %7492 = vmatprep.mubr.msk.f32.mxu1 %vm699_vm4, %v870_v42  ;;  %v909_v0 = vpop.permute.xlu1 %908 }
 0x528   :  { %v929_v30 = vpop.permute.xlu0 %928 }
 0x52a   :  { %7493 = vmatmul.mubr.msk.f32.gmra.mrb[10].mxu1 %vm699_vm4, %v871_v5 }
 0x52b   :  { %7495 = vmatprep.mubr.msk.f32.mxu1 %vm699_vm4, %v872_v47  ;;  %v914_v15 = vpop.permute.xlu1 %913 }
 0x52c   :  { %v939_v43 = vpop.permute.xlu0 %938 }
 0x52e   :  { %7496 = vmatmul.mubr.msk.f32.gmra.mrb[12].mxu1 %vm699_vm4, %v873_v6 }
 0x52f   :  { %7498 = vmatprep.mubr.msk.f32.mxu1 %vm699_vm4, %v874_v8  ;;  %v924_v17 = vpop.permute.xlu1 %923 }
 0x530   :  { %v949_v54 = vpop.permute.xlu0 %948 }
 0x532   :  { %7499 = vmatmul.mubr.msk.f32.gmra.mrb[14].mxu1 %vm699_vm4, %v875_v9 }
 0x533   :  { %7501 = vmatprep.mubr.msk.f32.mxu1 %vm699_vm4, %v876_v10  ;;  %v934_v23 = vpop.permute.xlu1 %933 }
 0x534   :  { %v959_v1 = vpop.permute.xlu0 %958 }
 0x536   :  { %7502 = vmatmul.mubr.msk.f32.gmra.mrb[16].mxu1 %vm699_vm4, %v877_v11 }
 0x537   :  { %7504 = vmatprep.mubr.msk.f32.mxu1 %vm699_vm4, %v878_v12  ;;  %v944_v39 = vpop.permute.xlu1 %943 }
 0x538   :  { %v969_v12 = vpop.permute.xlu0 %968 }
 0x53a   :  { %7505 = vmatmul.mubr.msk.f32.gmra.mrb[18].mxu1 %vm699_vm4, %v879_v13 }
 0x53b   :  { %v954_v51 = vpop.permute.xlu1 %953 }
 0x53f   :  { %v964_v4 = vpop.permute.xlu1 %963 }
 0x543   :  { %v974_v9 = vpop.permute.xlu1 %973 }
 0x567   :  { %v769_v32 = vpop.f32.mrb[2].mxu1 }
 0x568   :  { %v770_v63 = vadd.f32 %v6935_v31, %v769_v32  ;;  %v7480_v14 = vpop.f32.mrb[3].mxu1 }
 0x56a   :  { %774 = vst.msk [vmem:[#allocation4] sm:$0x3] %vm773_vm7, %v770_v63 }
 0x5f1   :  { %v7485_v19 = vpop.f32.mrb[4].mxu1 }
 0x5f2   :  { %v1096_v20 = vadd.f32 %v7485_v19, %v904_v16  ;;  %v1090_v21 = vpop.f32.mrb[5].mxu1 }
 0x5f3   :  { %v1091_v22 = vadd.f32 %v1090_v21, %v899_v62 }
 0x5f4   :  { %v1170_v25 = vmax.f32 %v1096_v20, 0.0 }
 0x5f5   :  { %v1169_v24 = vmax.f32 %v1091_v22, 0.0  ;;  %v7488_v28 = vpop.f32.mrb[6].mxu1 }
 0x5f6   :  { %v1106_v26 = vadd.f32 %v7488_v28, %v914_v15  ;;  %v1100_v27 = vpop.f32.mrb[7].mxu1 }
 0x5f7   :  { %v1101_v29 = vadd.f32 %v1100_v27, %v909_v0  ;;  %7515 = vmatprep.mubr.msk.f32.mxu1 %vm119_vm0, %v1169_v24 }
 0x5f8   :  { %7516 = vmatmul.mubr.msk.f32.vlgmr.msra.gmra.mrb[20].mxu1 %vm119_vm0, %v1170_v25  ;;  %v1172_v35 = vmax.f32 %v1106_v26, 0.0 }
 0x5f9   :  { %v1171_v33 = vmax.f32 %v1101_v29, 0.0  ;;  %v7491_v34 = vpop.f32.mrb[8].mxu1 }
 0x5fa   :  { %v1116_v36 = vadd.f32 %v7491_v34, %v924_v17  ;;  %v1110_v37 = vpop.f32.mrb[9].mxu1 }
 0x5fb   :  { %v1111_v40 = vadd.f32 %v1110_v37, %v919_v18  ;;  %7518 = vmatprep.mubr.msk.f32.mxu1 %vm119_vm0, %v1171_v33 }
 0x5fc   :  { %7519 = vmatmul.mubr.msk.f32.gmra.mrb[22].mxu1 %vm119_vm0, %v1172_v35  ;;  %v1174_v46 = vmax.f32 %v1116_v36, 0.0 }
 0x5fd   :  { %v1173_v44 = vmax.f32 %v1111_v40, 0.0  ;;  %v7494_v45 = vpop.f32.mrb[10].mxu1 }
 0x5fe   :  { %v1126_v48 = vadd.f32 %v7494_v45, %v934_v23  ;;  %v1120_v49 = vpop.f32.mrb[11].mxu1 }
 0x5ff   :  { %v1121_v50 = vadd.f32 %v1120_v49, %v929_v30  ;;  %7521 = vmatprep.mubr.msk.f32.mxu1 %vm119_vm0, %v1173_v44 }
 0x600   :  { %7522 = vmatmul.mubr.msk.f32.gmra.mrb[24].mxu1 %vm119_vm0, %v1174_v46  ;;  %v1176_v55 = vmax.f32 %v1126_v48, 0.0 }
 0x601   :  { %v1175_v52 = vmax.f32 %v1121_v50, 0.0  ;;  %v7497_v53 = vpop.f32.mrb[12].mxu1 }
 0x602   :  { %v1136_v56 = vadd.f32 %v7497_v53, %v944_v39  ;;  %v1130_v57 = vpop.f32.mrb[13].mxu1 }
 0x603   :  { %v1131_v58 = vadd.f32 %v1130_v57, %v939_v43  ;;  %7524 = vmatprep.mubr.msk.f32.mxu1 %vm119_vm0, %v1175_v52 }
 0x604   :  { %7525 = vmatmul.mubr.msk.f32.gmra.mrb[26].mxu1 %vm119_vm0, %v1176_v55  ;;  %v1178_v61 = vmax.f32 %v1136_v56, 0.0 }
 0x605   :  { %v1177_v59 = vmax.f32 %v1131_v58, 0.0  ;;  %v7500_v60 = vpop.f32.mrb[14].mxu1  ;;  %v1430_v58 = vld [vmem:[%s13245_s14] sm:$0xff] }
 0x606   :  { %v1146_v2 = vadd.f32 %v7500_v60, %v954_v51  ;;  %v1140_v3 = vpop.f32.mrb[15].mxu1 }
 0x607   :  { %v1141_v38 = vadd.f32 %v1140_v3, %v949_v54  ;;  %7527 = vmatprep.mubr.msk.f32.mxu1 %vm119_vm0, %v1177_v59 }
 0x608   :  { %7528 = vmatmul.mubr.msk.f32.gmra.mrb[28].mxu1 %vm119_vm0, %v1178_v61  ;;  %v1180_v5 = vmax.f32 %v1146_v2, 0.0 }
 0x609   :  { %v1179_v41 = vmax.f32 %v1141_v38, 0.0  ;;  %v7503_v42 = vpop.f32.mrb[16].mxu1 }
 0x60a   :  { %v1156_v47 = vadd.f32 %v7503_v42, %v964_v4  ;;  %v1150_v6 = vpop.f32.mrb[17].mxu1 }
 0x60b   :  { %v1151_v8 = vadd.f32 %v1150_v6, %v959_v1  ;;  %7530 = vmatprep.mubr.msk.f32.mxu1 %vm119_vm0, %v1179_v41 }
 0x60c   :  { %7531 = vmatmul.mubr.msk.f32.gmra.mrb[30].mxu1 %vm119_vm0, %v1180_v5  ;;  %v1182_v13 = vmax.f32 %v1156_v47, 0.0 }
 0x60d   :  { %v1181_v10 = vmax.f32 %v1151_v8, 0.0  ;;  %v7506_v11 = vpop.f32.mrb[18].mxu1 }
 0x60e   :  { %v1166_v31 = vadd.f32 %v7506_v11, %v974_v9  ;;  %v1160_v32 = vpop.f32.mrb[19].mxu1 }
 0x60f   :  { %v1161_v63 = vadd.f32 %v1160_v32, %v969_v12  ;;  %7533 = vmatprep.mubr.msk.f32.mxu1 %vm119_vm0, %v1181_v10 }
 0x610   :  { %7534 = vmatmul.mubr.msk.f32.gmra.mrb[32].mxu1 %vm119_vm0, %v1182_v13  ;;  %v1184_v62 = vmax.f32 %v1166_v31, 0.0 }
 0x611   :  { %v1183_v14 = vmax.f32 %v1161_v63, 0.0 }
 0x613   :  { %7536 = vmatprep.mubr.msk.f32.mxu1 %vm119_vm0, %v1183_v14 }
 0x614   :  { %7537 = vmatmul.mubr.msk.f32.gmra.mrb[34].mxu1 %vm119_vm0, %v1184_v62 }
 0x615   :  { %7571 = vmatprep.mubr.f32.mxu1 %v1430_v58 }
 0x6cb   :  { %v11049_v0 = vpop.f32.mrb[20].mxu1 }
 0x6cc   :  { %v11051_v15 = vpop.f32.mrb[21].mxu1  ;;  %v9052_v16 = vpack.i.bf16 %v11049_v0, %v13259_v7  ;;  %v11234_v12 = vpack.i.bf16 %v13259_v7, %v11049_v0 }
 0x6cd   :  { %v9072_v17 = vpack.i.bf16 %v11051_v15, %v13259_v7  ;;  %v11111_v39 = vpack.c.bf16 %v11049_v0, %v11051_v15  ;;  %v11211_v38 = vpack.i.bf16 %v13259_v7, %v11051_v15 }
 0x6ce   :  { %9053 = vrot.lane.b32.xlu1 %v9052_v16, %s10210_s10 }
 0x6cf   :  { %9073 = vrot.lane.b32.xlu0 %v9072_v17, %s10210_s10  ;;  %v11059_v18 = vpop.f32.mrb[22].mxu1 }
 0x6d0   :  { %v11061_v19 = vpop.f32.mrb[23].mxu1  ;;  %v9092_v30 = vpack.i.bf16 %v11059_v18, %v13259_v7 }
 0x6d1   :  { %v9112_v25 = vpack.i.bf16 %v11061_v19, %v13259_v7  ;;  %v11115_v40 = vpack.c.bf16 %v11059_v18, %v11061_v19  ;;  %v11238_v63 = vpack.i.bf16 %v13259_v7, %v11061_v19 }
 0x6d2   :  { %9058 = vrot.lane.b32.xlu1 %v9052_v16, %s10211_s11 }
 0x6d3   :  { %9078 = vrot.lane.b32.xlu0 %v9072_v17, %s10211_s11  ;;  %v11065_v20 = vpop.f32.mrb[24].mxu1 }
 0x6d4   :  { %v11067_v21 = vpop.f32.mrb[25].mxu1  ;;  %v9132_v36 = vpack.i.bf16 %v11065_v20, %v13259_v7  ;;  %v11278_v58 = vpack.i.bf16 %v13259_v7, %v11065_v20 }
 0x6d5   :  { %v9147_v37 = vpack.i.bf16 %v11067_v21, %v13259_v7  ;;  %v11119_v43 = vpack.c.bf16 %v11065_v20, %v11067_v21 }
 0x6d6   :  { %9063 = vrot.lane.b32.xlu1 %v9052_v16, %s10212_s9 }
 0x6d7   :  { %9083 = vrot.lane.b32.xlu0 %v9072_v17, %s10212_s9  ;;  %v11071_v22 = vpop.f32.mrb[26].mxu1 }
 0x6d8   :  { %v11073_v23 = vpop.f32.mrb[27].mxu1  ;;  %v9162_v50 = vpack.i.bf16 %v11071_v22, %v13259_v7 }
 0x6d9   :  { %v11123_v44 = vpack.c.bf16 %v11071_v22, %v11073_v23  ;;  %v9177_v51 = vpack.i.bf16 %v11073_v23, %v13259_v7 }
 0x6da   :  { %9068 = vrot.lane.b32.xlu1 %v9052_v16, %s10213_s27 }
 0x6db   :  { %9088 = vrot.lane.b32.xlu0 %v9072_v17, %s10213_s27  ;;  %v11077_v24 = vpop.f32.mrb[28].mxu1 }
 0x6dc   :  { %v11079_v28 = vpop.f32.mrb[29].mxu1  ;;  %v9192_v52 = vpack.i.bf16 %v11077_v24, %v13259_v7 }
 0x6dd   :  { %v11127_v45 = vpack.c.bf16 %v11077_v24, %v11079_v28  ;;  %v9207_v53 = vpack.i.bf16 %v11079_v28, %v13259_v7 }
 0x6de   :  { %9093 = vrot.lane.b32.xlu1 %v9092_v30, %s10210_s10 }
 0x6df   :  { %9113 = vrot.lane.b32.xlu0 %v9112_v25, %s10210_s10  ;;  %v11087_v26 = vpop.f32.mrb[30].mxu1 }
 0x6e0   :  { %v11089_v27 = vpop.f32.mrb[31].mxu1  ;;  %v9222_v54 = vpack.i.bf16 %v11087_v26, %v13259_v7 }
 0x6e1   :  { %v11131_v46 = vpack.c.bf16 %v11087_v26, %v11089_v27  ;;  %v9237_v55 = vpack.i.bf16 %v11089_v27, %v13259_v7 }
 0x6e2   :  { %9098 = vrot.lane.b32.xlu1 %v9092_v30, %s10211_s11 }
 0x6e3   :  { %9118 = vrot.lane.b32.xlu0 %v9112_v25, %s10211_s11  ;;  %v11093_v29 = vpop.f32.mrb[32].mxu1 }
 0x6e4   :  { %v11095_v33 = vpop.f32.mrb[33].mxu1  ;;  %v9252_v56 = vpack.i.bf16 %v11093_v29, %v13259_v7 }
 0x6e5   :  { %v11136_v48 = vpack.c.bf16 %v11093_v29, %v11095_v33  ;;  %v9267_v57 = vpack.i.bf16 %v11095_v33, %v13259_v7 }
 0x6e6   :  { %9103 = vrot.lane.b32.xlu1 %v9092_v30, %s10212_s9 }
 0x6e7   :  { %9123 = vrot.lane.b32.xlu0 %v9112_v25, %s10212_s9  ;;  %v11099_v34 = vpop.f32.mrb[34].mxu1 }
 0x6e8   :  { %v11101_v35 = vpop.f32.mrb[35].mxu1  ;;  %v9282_v59 = vpack.i.bf16 %v11099_v34, %v13259_v7 }
 0x6e9   :  { %v11140_v49 = vpack.c.bf16 %v11099_v34, %v11101_v35  ;;  %v11194_v60 = vpack.i.bf16 %v11101_v35, %v13259_v7 }
 0x6ea   :  { %9108 = vrot.lane.b32.xlu1 %v9092_v30, %s10213_s27 }
 0x6eb   :  { %9128 = vrot.lane.b32.xlu0 %v9112_v25, %s10213_s27  ;;  %13282 = vst [vmem:[#allocation7_spill] sm:$0xff] %v11140_v49 }
 0x6ee   :  { %9133 = vrot.lane.b32.xlu1 %v9132_v36, %s10210_s10 }
 0x6ef   :  { %9148 = vrot.lane.b32.xlu0 %v9147_v37, %s10210_s10 }
 0x6f2   :  { %9138 = vrot.lane.b32.xlu1 %v9132_v36, %s10211_s11 }
 0x6f3   :  { %9153 = vrot.lane.b32.xlu0 %v9147_v37, %s10211_s11 }
 0x6f6   :  { %9143 = vrot.lane.b32.xlu1 %v9132_v36, %s10212_s9 }
 0x6f7   :  { %9158 = vrot.lane.b32.xlu0 %v9147_v37, %s10212_s9 }
 0x6fa   :  { %9163 = vrot.lane.b32.xlu1 %v9162_v50, %s10210_s10 }
 0x6fb   :  { %9178 = vrot.lane.b32.xlu0 %v9177_v51, %s10210_s10 }
 0x6fe   :  { %9168 = vrot.lane.b32.xlu1 %v9162_v50, %s10211_s11 }
 0x6ff   :  { %9183 = vrot.lane.b32.xlu0 %v9177_v51, %s10211_s11 }
 0x702   :  { %9173 = vrot.lane.b32.xlu1 %v9162_v50, %s10212_s9 }
 0x703   :  { %9188 = vrot.lane.b32.xlu0 %v9177_v51, %s10212_s9 }
 0x706   :  { %9193 = vrot.lane.b32.xlu1 %v9192_v52, %s10210_s10 }
 0x707   :  { %9208 = vrot.lane.b32.xlu0 %v9207_v53, %s10210_s10 }
 0x70a   :  { %9198 = vrot.lane.b32.xlu1 %v9192_v52, %s10211_s11 }
 0x70b   :  { %9213 = vrot.lane.b32.xlu0 %v9207_v53, %s10211_s11 }
 0x70e   :  { %9203 = vrot.lane.b32.xlu1 %v9192_v52, %s10212_s9 }
 0x70f   :  { %9218 = vrot.lane.b32.xlu0 %v9207_v53, %s10212_s9 }
 0x712   :  { %9223 = vrot.lane.b32.xlu1 %v9222_v54, %s10210_s10 }
 0x713   :  { %9238 = vrot.lane.b32.xlu0 %v9237_v55, %s10210_s10 }
 0x716   :  { %9228 = vrot.lane.b32.xlu1 %v9222_v54, %s10211_s11 }
 0x717   :  { %9243 = vrot.lane.b32.xlu0 %v9237_v55, %s10211_s11 }
 0x71a   :  { %9233 = vrot.lane.b32.xlu1 %v9222_v54, %s10212_s9 }
 0x71b   :  { %9248 = vrot.lane.b32.xlu0 %v9237_v55, %s10212_s9 }
 0x71e   :  { %9253 = vrot.lane.b32.xlu1 %v9252_v56, %s10210_s10 }
 0x71f   :  { %9268 = vrot.lane.b32.xlu0 %v9267_v57, %s10210_s10 }
 0x722   :  { %9258 = vrot.lane.b32.xlu1 %v9252_v56, %s10211_s11 }
 0x723   :  { %9273 = vrot.lane.b32.xlu0 %v9267_v57, %s10211_s11 }
 0x726   :  { %9263 = vrot.lane.b32.xlu1 %v9252_v56, %s10212_s9 }
 0x727   :  { %9278 = vrot.lane.b32.xlu0 %v9267_v57, %s10212_s9 }
 0x72a   :  { %9283 = vrot.lane.b32.xlu1 %v9282_v59, %s10210_s10 }
 0x72b   :  { %9298 = vrot.lane.b32.xlu0 %v11194_v60, %s10210_s10 }
 0x72e   :  { %9288 = vrot.lane.b32.xlu1 %v9282_v59, %s10211_s11 }
 0x72f   :  { %9303 = vrot.lane.b32.xlu0 %v9147_v37, %s10213_s27 }
 0x732   :  { %9293 = vrot.lane.b32.xlu1 %v9282_v59, %s10212_s9 }
 0x733   :  { %9313 = vrot.lane.b32.xlu0 %v9177_v51, %s10213_s27 }
 0x736   :  { %9308 = vrot.lane.b32.xlu1 %v9132_v36, %s10213_s27 }
 0x737   :  { %9323 = vrot.lane.b32.xlu0 %v9207_v53, %s10213_s27 }
 0x73a   :  { %9318 = vrot.lane.b32.xlu1 %v9162_v50, %s10213_s27 }
 0x73b   :  { %9333 = vrot.lane.b32.xlu0 %v9237_v55, %s10213_s27 }
 0x73e   :  { %9328 = vrot.lane.b32.xlu1 %v9192_v52, %s10213_s27  ;;  %v11255_v52 = vpack.i.bf16 %v13259_v7, %v11059_v18 }
 0x73f   :  { %9343 = vrot.lane.b32.xlu0 %v9267_v57, %s10213_s27 }
 0x740   :  { %v9054_v61 = vpop.permute.xlu1 %9053 }
 0x741   :  { %v9056_v2 = vunpack.i.h.bf16 %v9054_v61  ;;  %v9055_v3 = vunpack.i.l.bf16 %v9054_v61  ;;  %v9074_v4 = vpop.permute.xlu0 %9073 }
 0x742   :  { %v9076_v1 = vunpack.i.h.bf16 %v9074_v4  ;;  %v9075_v41 = vunpack.i.l.bf16 %v9074_v4  ;;  %9338 = vrot.lane.b32.xlu1 %v9222_v54, %s10213_s27 }
 0x743   :  { %9358 = vrot.lane.b32.xlu0 %v11211_v38, %s10214_s5  ;;  %v1536_v42 = vsel %vm1534_vm8, %v9055_v3, %v9056_v2  ;;  %v11282_v3 = vpack.i.bf16 %v13259_v7, %v11073_v23 }
 0x744   :  { %v11217_v5 = vpop.permute.xlu1 %9058  ;;  %v1535_v47 = vsel %vm1534_vm8, %v9075_v41, %v9076_v1 }
 0x745   :  { %v11220_v6 = vpop.permute.xlu0 %9078  ;;  %v8391_v8 = vpack.c.bf16 %v1536_v42, %v1535_v47 }
 0x746   :  { %9348 = vrot.lane.b32.xlu1 %v9252_v56, %s10213_s27  ;;  %v11262_v56 = vpack.i.bf16 %v13259_v7, %v11067_v21 }
 0x747   :  { %8392 = vmatprep.subr.bf16.mxu1 %v8391_v8  ;;  %9368 = vrot.lane.b32.xlu0 %v11211_v38, %s10215_s13 }
 0x748   :  { %v11225_v9 = vpop.permute.xlu1 %9063  ;;  %8394 = vmatpush3.bf16.msra.mxu1 %v8391_v8 }
 0x749   :  { %v11227_v10 = vpop.permute.xlu0 %9083 }
 0x74a   :  { %9353 = vrot.lane.b32.xlu1 %v9282_v59, %s10213_s27 }
 0x74b   :  { %9378 = vrot.lane.b32.xlu0 %v11194_v60, %s10211_s11 }
 0x74c   :  { %v9069_v11 = vpop.permute.xlu1 %9068 }
 0x74d   :  { %v9071_v13 = vunpack.i.h.bf16 %v9069_v11  ;;  %v9070_v31 = vunpack.i.l.bf16 %v9069_v11  ;;  %v9089_v32 = vpop.permute.xlu0 %9088 }
 0x74e   :  { %v9091_v14 = vunpack.i.h.bf16 %v9089_v32  ;;  %v9090_v62 = vunpack.i.l.bf16 %v9089_v32  ;;  %9363 = vrot.lane.b32.xlu1 %v11234_v12, %s10214_s5 }
 0x74f   :  { %9383 = vrot.lane.b32.xlu0 %v11238_v63, %s10214_s5  ;;  %v2220_v15 = vsel %vm2218_vm9, %v9070_v31, %v9071_v13 }
 0x750   :  { %v9094_v0 = vpop.permute.xlu1 %9093  ;;  %v2219_v16 = vsel %vm2218_vm9, %v9090_v62, %v9091_v14  ;;  %v11299_v62 = vpack.i.bf16 %v13259_v7, %v11071_v22 }
 0x751   :  { %v9096_v17 = vunpack.i.h.bf16 %v9094_v0  ;;  %v9095_v30 = vunpack.i.l.bf16 %v9094_v0  ;;  %v9114_v25 = vpop.permute.xlu0 %9113  ;;  %v8487_v36 = vpack.c.bf16 %v2220_v15, %v2219_v16 }
 0x752   :  { %v9116_v37 = vunpack.i.h.bf16 %v9114_v25  ;;  %v9115_v19 = vunpack.i.l.bf16 %v9114_v25  ;;  %9373 = vrot.lane.b32.xlu1 %v11234_v12, %s10215_s13  ;;  %v11322_v25 = vpack.i.bf16 %v13259_v7, %v11077_v24 }
 0x753   :  { %8488 = vmatprep.subr.bf16.mxu0 %v8487_v36  ;;  %9393 = vrot.lane.b32.xlu0 %v11238_v63, %s10215_s13  ;;  %v1538_v50 = vsel %vm1534_vm8, %v9095_v30, %v9096_v17  ;;  %v11306_v17 = vpack.i.bf16 %v13259_v7, %v11079_v28 }
 0x754   :  { %8490 = vmatpush3.bf16.msra.mxu0 %v8487_v36  ;;  %v11251_v51 = vpop.permute.xlu1 %9098  ;;  %v1537_v53 = vsel %vm1534_vm8, %v9115_v19, %v9116_v37 }
 0x755   :  { %v11258_v54 = vpop.permute.xlu0 %9118  ;;  %v8395_v55 = vpack.c.bf16 %v1538_v50, %v1537_v53 }
 0x756   :  { %9388 = vrot.lane.b32.xlu1 %v11255_v52, %s10214_s5 }
 0x757   :  { %8396 = vmatprep.subr.bf16.mxu1 %v8395_v55  ;;  %9403 = vrot.lane.b32.xlu0 %v11262_v56, %s10214_s5 }
 0x758   :  { %v11268_v57 = vpop.permute.xlu1 %9103  ;;  %8398 = vmatpush3.bf16.msra.mxu1 %v8395_v55 }
 0x759   :  { %v11270_v18 = vpop.permute.xlu0 %9123 }
 0x75a   :  { %9398 = vrot.lane.b32.xlu1 %v11255_v52, %s10215_s13 }
 0x75b   :  { %9413 = vrot.lane.b32.xlu0 %v11262_v56, %s10215_s13 }
 0x75c   :  { %v9109_v21 = vpop.permute.xlu1 %9108 }
 0x75d   :  { %v9111_v59 = vunpack.i.h.bf16 %v9109_v21  ;;  %v9110_v61 = vunpack.i.l.bf16 %v9109_v21  ;;  %v9129_v2 = vpop.permute.xlu0 %9128 }
 0x75e   :  { %v9131_v4 = vunpack.i.h.bf16 %v9129_v2  ;;  %v9130_v1 = vunpack.i.l.bf16 %v9129_v2  ;;  %9408 = vrot.lane.b32.xlu1 %v11278_v58, %s10214_s5  ;;  %v11336_v2 = vpack.i.bf16 %v13259_v7, %v11089_v27 }
 0x75f   :  { %9423 = vrot.lane.b32.xlu0 %v11282_v3, %s10214_s5  ;;  %v2222_v41 = vsel %vm2218_vm9, %v9110_v61, %v9111_v59 }
 0x760   :  { %v9134_v42 = vpop.permute.xlu1 %9133  ;;  %v2221_v20 = vsel %vm2218_vm9, %v9130_v1, %v9131_v4  ;;  %v11346_v1 = vpack.i.bf16 %v13259_v7, %v11087_v26 }
 0x761   :  { %v9136_v47 = vunpack.i.h.bf16 %v9134_v42  ;;  %v9135_v8 = vunpack.i.l.bf16 %v9134_v42  ;;  %v9149_v11 = vpop.permute.xlu0 %9148  ;;  %v8491_v13 = vpack.c.bf16 %v2222_v41, %v2221_v20 }
 0x762   :  { %v9151_v31 = vunpack.i.h.bf16 %v9149_v11  ;;  %v9150_v23 = vunpack.i.l.bf16 %v9149_v11  ;;  %9418 = vrot.lane.b32.xlu1 %v11278_v58, %s10215_s13 }
 0x763   :  { %8492 = vmatprep.subr.bf16.mxu0 %v8491_v13  ;;  %9433 = vrot.lane.b32.xlu0 %v11282_v3, %s10215_s13  ;;  %v1540_v32 = vsel %vm1534_vm8, %v9135_v8, %v9136_v47  ;;  %v11356_v8 = vpack.i.bf16 %v13259_v7, %v11095_v33 }
 0x764   :  { %8494 = vmatpush3.bf16.msra.mxu0 %v8491_v13  ;;  %v11295_v14 = vpop.permute.xlu1 %9138  ;;  %v1539_v15 = vsel %vm1534_vm8, %v9150_v23, %v9151_v31  ;;  %v11367_v23 = vpack.i.bf16 %v13259_v7, %v11093_v29  ;;  %v2146_v29 = vld [vmem:[%s13245_s14 + $0xc0] sm:$0xff] }
 0x765   :  { %v11302_v0 = vpop.permute.xlu0 %9153  ;;  %v8399_v16 = vpack.c.bf16 %v1540_v32, %v1539_v15  ;;  %7703 = vmatprep.mubr.f32.mxu0 %v2146_v29 }
 0x766   :  { %9428 = vrot.lane.b32.xlu1 %v11299_v62, %s10214_s5 }
 0x767   :  { %8400 = vmatprep.subr.bf16.mxu1 %v8399_v16  ;;  %9443 = vrot.lane.b32.xlu0 %v11306_v17, %s10214_s5 }
 0x768   :  { %v11312_v30 = vpop.permute.xlu1 %9143  ;;  %8402 = vmatpush3.bf16.msra.mxu1 %v8399_v16 }
 0x769   :  { %v11314_v22 = vpop.permute.xlu0 %9158 }
 0x76a   :  { %9438 = vrot.lane.b32.xlu1 %v11299_v62, %s10215_s13 }
 0x76b   :  { %9453 = vrot.lane.b32.xlu0 %v11194_v60, %s10212_s9 }
 0x76c   :  { %v9164_v28 = vpop.permute.xlu1 %9163 }
 0x76d   :  { %v9166_v36 = vunpack.i.h.bf16 %v9164_v28  ;;  %v9165_v37 = vunpack.i.l.bf16 %v9164_v28  ;;  %v9179_v19 = vpop.permute.xlu0 %9178 }
 0x76e   :  { %v9181_v50 = vunpack.i.h.bf16 %v9179_v19  ;;  %v9180_v53 = vunpack.i.l.bf16 %v9179_v19  ;;  %9448 = vrot.lane.b32.xlu1 %v11322_v25, %s10214_s5 }
 0x76f   :  { %9458 = vrot.lane.b32.xlu0 %v11306_v17, %s10215_s13  ;;  %v1542_v55 = vsel %vm1534_vm8, %v9165_v37, %v9166_v36  ;;  %v11389_v37 = vpack.i.bf16 %v13259_v7, %v11099_v34 }
 0x770   :  { %v11329_v21 = vpop.permute.xlu1 %9168  ;;  %v1541_v59 = vsel %vm1534_vm8, %v9180_v53, %v9181_v50 }
 0x771   :  { %v11332_v61 = vpop.permute.xlu0 %9183  ;;  %v8403_v24 = vpack.c.bf16 %v1542_v55, %v1541_v59 }
 0x772   :  { %9463 = vrot.lane.b32.xlu1 %v11322_v25, %s10215_s13 }
 0x773   :  { %8404 = vmatprep.subr.bf16.mxu1 %v8403_v24  ;;  %9468 = vrot.lane.b32.xlu0 %v11336_v2, %s10214_s5 }
 0x774   :  { %v11342_v4 = vpop.permute.xlu1 %9173  ;;  %8406 = vmatpush3.bf16.msra.mxu1 %v8403_v24 }
 0x775   :  { %v11348_v41 = vpop.permute.xlu0 %9188 }
 0x776   :  { %9473 = vrot.lane.b32.xlu1 %v11346_v1, %s10214_s5 }
 0x777   :  { %9478 = vrot.lane.b32.xlu0 %v11336_v2, %s10215_s13 }
 0x778   :  { %v9194_v27 = vpop.permute.xlu1 %9193 }
 0x779   :  { %v9196_v42 = vunpack.i.h.bf16 %v9194_v27  ;;  %v9195_v20 = vunpack.i.l.bf16 %v9194_v27  ;;  %v9209_v47 = vpop.permute.xlu0 %9208 }
 0x77a   :  { %v9211_v11 = vunpack.i.h.bf16 %v9209_v47  ;;  %v9210_v13 = vunpack.i.l.bf16 %v9209_v47  ;;  %9483 = vrot.lane.b32.xlu1 %v11346_v1, %s10215_s13 }
 0x77b   :  { %9488 = vrot.lane.b32.xlu0 %v11356_v8, %s10214_s5  ;;  %v1544_v26 = vsel %vm1534_vm8, %v9195_v20, %v9196_v42 }
 0x77c   :  { %v11363_v31 = vpop.permute.xlu1 %9198  ;;  %v1543_v32 = vsel %vm1534_vm8, %v9210_v13, %v9211_v11 }
 0x77d   :  { %v11370_v33 = vpop.permute.xlu0 %9213  ;;  %v8407_v15 = vpack.c.bf16 %v1544_v26, %v1543_v32 }
 0x77e   :  { %9493 = vrot.lane.b32.xlu1 %v11367_v23, %s10214_s5 }
 0x77f   :  { %8408 = vmatprep.subr.bf16.mxu1 %v8407_v15  ;;  %9498 = vrot.lane.b32.xlu0 %v11356_v8, %s10215_s13 }
 0x780   :  { %v11376_v16 = vpop.permute.xlu1 %9203  ;;  %8410 = vmatpush3.bf16.msra.mxu1 %v8407_v15 }
 0x781   :  { %v11378_v28 = vpop.permute.xlu0 %9218 }
 0x782   :  { %9503 = vrot.lane.b32.xlu1 %v11367_v23, %s10215_s13 }
 0x783   :  { %9518 = vrot.lane.b32.xlu0 %v11211_v38, %s10216_s12 }
 0x784   :  { %v9224_v36 = vpop.permute.xlu1 %9223 }
 0x785   :  { %v9226_v19 = vunpack.i.h.bf16 %v9224_v36  ;;  %v9225_v50 = vunpack.i.l.bf16 %v9224_v36  ;;  %v9239_v53 = vpop.permute.xlu0 %9238 }
 0x786   :  { %v9241_v55 = vunpack.i.h.bf16 %v9239_v53  ;;  %v9240_v59 = vunpack.i.l.bf16 %v9239_v53  ;;  %9508 = vrot.lane.b32.xlu1 %v11389_v37, %s10214_s5 }
 0x787   :  { %9528 = vrot.lane.b32.xlu0 %v11194_v60, %s10213_s27  ;;  %v1546_v24 = vsel %vm1534_vm8, %v9225_v50, %v9226_v19 }
 0x788   :  { %v11396_v27 = vpop.permute.xlu1 %9228  ;;  %v1545_v42 = vsel %vm1534_vm8, %v9240_v59, %v9241_v55  ;;  %v9061_v55 = vunpack.i.h.bf16 %v11217_v5  ;;  %v9060_v59 = vunpack.i.l.bf16 %v11217_v5 }
 0x789   :  { %v11399_v20 = vpop.permute.xlu0 %9243  ;;  %v8411_v34 = vpack.c.bf16 %v1546_v24, %v1545_v42  ;;  %v9081_v24 = vunpack.i.h.bf16 %v11220_v6  ;;  %v9080_v42 = vunpack.i.l.bf16 %v11220_v6 }
 0x78a   :  { %9513 = vrot.lane.b32.xlu1 %v11389_v37, %s10215_s13 }
 0x78b   :  { %8412 = vmatprep.subr.bf16.mxu1 %v8411_v34  ;;  %9533 = vrot.lane.b32.xlu0 %v11211_v38, %s10217_s2 }
 0x78c   :  { %v11405_v47 = vpop.permute.xlu1 %9233  ;;  %8414 = vmatpush3.bf16.msra.mxu1 %v8411_v34 }
 0x78d   :  { %v11407_v60 = vpop.permute.xlu0 %9248 }
 0x78e   :  { %9523 = vrot.lane.b32.xlu1 %v11234_v12, %s10216_s12 }
 0x78f   :  { %9543 = vrot.lane.b32.xlu0 %v11238_v63, %s10216_s12 }
 0x790   :  { %v9254_v11 = vpop.permute.xlu1 %9253 }
 0x791   :  { %v9256_v13 = vunpack.i.h.bf16 %v9254_v11  ;;  %v9255_v26 = vunpack.i.l.bf16 %v9254_v11  ;;  %v9269_v32 = vpop.permute.xlu0 %9268  ;;  %v9101_v11 = vunpack.i.h.bf16 %v11251_v51 }
 0x792   :  { %v9271_v15 = vunpack.i.h.bf16 %v9269_v32  ;;  %v9270_v29 = vunpack.i.l.bf16 %v9269_v32  ;;  %9538 = vrot.lane.b32.xlu1 %v11234_v12, %s10217_s2 }
 0x793   :  { %9553 = vrot.lane.b32.xlu0 %v11238_v63, %s10217_s2  ;;  %v1548_v38 = vsel %vm1534_vm8, %v9255_v26, %v9256_v13  ;;  %v9100_v13 = vunpack.i.l.bf16 %v11251_v51  ;;  %v1758_v51 = vsel %vm699_vm4, %v9060_v59, %v9061_v55  ;;  %v9156_v55 = vunpack.i.h.bf16 %v11302_v0 }
 0x794   :  { %v11418_v36 = vpop.permute.xlu1 %9258  ;;  %v1547_v19 = vsel %vm1534_vm8, %v9270_v29, %v9271_v15  ;;  %v9120_v29 = vunpack.i.l.bf16 %v11258_v54  ;;  %v9155_v59 = vunpack.i.l.bf16 %v11302_v0 }
 0x795   :  { %v11421_v50 = vpop.permute.xlu0 %9273  ;;  %v8415_v53 = vpack.c.bf16 %v1548_v38, %v1547_v19  ;;  %v1760_v49 = vsel %vm699_vm4, %v9100_v13, %v9101_v11  ;;  %v9185_v11 = vunpack.i.l.bf16 %v11332_v61 }
 0x796   :  { %9548 = vrot.lane.b32.xlu1 %v11255_v52, %s10216_s12 }
 0x797   :  { %8416 = vmatprep.subr.bf16.mxu1 %v8415_v53  ;;  %9563 = vrot.lane.b32.xlu0 %v11262_v56, %s10216_s12 }
 0x798   :  { %v11427_v12 = vpop.permute.xlu1 %9263  ;;  %8418 = vmatpush3.bf16.msra.mxu1 %v8415_v53 }
 0x799   :  { %v11429_v63 = vpop.permute.xlu0 %9278 }
 0x79a   :  { %9558 = vrot.lane.b32.xlu1 %v11255_v52, %s10217_s2  ;;  %v9121_v52 = vunpack.i.h.bf16 %v11258_v54 }
 0x79b   :  { %9573 = vrot.lane.b32.xlu0 %v11262_v56, %s10217_s2  ;;  %v1757_v56 = vsel %vm699_vm4, %v9080_v42, %v9081_v24  ;;  %v9140_v24 = vunpack.i.l.bf16 %v11295_v14  ;;  %v9171_v42 = vunpack.i.h.bf16 %v11329_v21 }
 0x79c   :  { %v9284_v34 = vpop.permute.xlu1 %9283  ;;  %v1759_v7 = vsel %vm699_vm4, %v9120_v29, %v9121_v52 }
 0x79d   :  { %v9286_v26 = vunpack.i.h.bf16 %v9284_v34  ;;  %v9285_v32 = vunpack.i.l.bf16 %v9284_v34  ;;  %v9299_v15 = vpop.permute.xlu0 %9298 }
 0x79e   :  { %v9301_v5 = vunpack.i.h.bf16 %v9299_v15  ;;  %v9300_v38 = vunpack.i.l.bf16 %v9299_v15  ;;  %9568 = vrot.lane.b32.xlu1 %v11278_v58, %s10216_s12  ;;  %v8423_v15 = vpack.c.bf16 %v1758_v51, %v1757_v56  ;;  %v9200_v56 = vunpack.i.l.bf16 %v11363_v31 }
 0x79f   :  { %9583 = vrot.lane.b32.xlu0 %v11282_v3, %s10216_s12  ;;  %v1550_v6 = vsel %vm1534_vm8, %v9285_v32, %v9286_v26  ;;  %v9141_v26 = vunpack.i.h.bf16 %v11295_v14  ;;  %v9186_v32 = vunpack.i.h.bf16 %v11332_v61  ;;  %v1431_v14 = vld [vmem:[%s13245_s14 + $0x8] sm:$0xff]  ;;  %v8427_v61 = vpack.c.bf16 %v1760_v49, %v1759_v7  ;;  %v1433_v49 = vld [vmem:[%s13245_s14 + $0x18] sm:$0xff] }
 0x7a0   :  { %v11450_v19 = vpop.permute.xlu1 %9288  ;;  %v1549_v53 = vsel %vm1534_vm8, %v9300_v38, %v9301_v5  ;;  %v1761_v38 = vsel %vm699_vm4, %v9155_v59, %v9156_v55 }
 0x7a1   :  { %v9304_v34 = vpop.permute.xlu0 %9303  ;;  %v8419_v54 = vpack.c.bf16 %v1550_v6, %v1549_v53  ;;  %v1762_v6 = vsel %vm699_vm4, %v9140_v24, %v9141_v26  ;;  %v1763_v53 = vsel %vm699_vm4, %v9185_v11, %v9186_v32 }
 0x7a2   :  { %9578 = vrot.lane.b32.xlu1 %v11278_v58, %s10217_s2  ;;  %v9170_v58 = vunpack.i.l.bf16 %v11329_v21  ;;  %v1432_v21 = vld [vmem:[%s13245_s14 + $0x10] sm:$0xff]  ;;  %v9306_v29 = vunpack.i.h.bf16 %v9304_v34  ;;  %v9305_v5 = vunpack.i.l.bf16 %v9304_v34  ;;  %v9216_v34 = vunpack.i.h.bf16 %v11370_v33 }
 0x7a3   :  { %9593 = vrot.lane.b32.xlu0 %v11282_v3, %s10217_s2  ;;  %8420 = vmatprep.subr.bf16.mxu1 %v8419_v54  ;;  %v13283_v3 = vmov 0.0  }
 0x7a4   :  { %v11467_v13 = vpop.permute.xlu1 %9293  ;;  %8422 = vmatpush3.bf16.msra.mxu1 %v8419_v54  ;;  %v11474_v52 = vpack.i.bf16 %v13283_v3, %v11101_v35  ;;  %v9201_v35 = vunpack.i.h.bf16 %v11363_v31  ;;  %v1764_v7 = vsel %vm699_vm4, %v9170_v58, %v9171_v42  ;;  %v9215_v54 = vunpack.i.l.bf16 %v11370_v33  ;;  %v1434_v31 = vld [vmem:[%s13245_s14 + $0x20] sm:$0xff] }
 0x7a5   :  { %v9314_v0 = vpop.permute.xlu0 %9313  ;;  %8424 = vmatprep.subr.bf16.mxu1 %v8423_v15  ;;  %v2223_v58 = vsel %vm2218_vm9, %v9305_v5, %v9306_v29  ;;  %v9230_v29 = vunpack.i.l.bf16 %v11396_v27  ;;  %v9246_v5 = vunpack.i.h.bf16 %v11399_v20 }
 0x7a6   :  { %9588 = vrot.lane.b32.xlu1 %v11299_v62, %s10216_s12  ;;  %v9316_v59 = vunpack.i.h.bf16 %v9314_v0  ;;  %v9315_v42 = vunpack.i.l.bf16 %v9314_v0  ;;  %v1766_v0 = vsel %vm699_vm4, %v9200_v56, %v9201_v35 }
 0x7a7   :  { %9603 = vrot.lane.b32.xlu0 %v11474_v52, %s10214_s5  ;;  %7572 = vmatmul.mubr.f32.vlgmr.msra.gmra.mrb[36].mxu1 %v1431_v14  ;;  %v8435_v14 = vpack.c.bf16 %v1764_v7, %v1763_v53 }
 0x7a8   :  { %v9309_v51 = vpop.permute.xlu1 %9308  ;;  %8426 = vmatpush3.bf16.msra.mxu1 %v8423_v15  ;;  %7574 = vmatprep.mubr.f32.mxu1 %v1432_v21  ;;  %v8431_v15 = vpack.c.bf16 %v1762_v6, %v1761_v38  ;;  %v9231_v38 = vunpack.i.h.bf16 %v11396_v27  ;;  %v9245_v6 = vunpack.i.l.bf16 %v11399_v20  ;;  %v2225_v27 = vsel %vm2218_vm9, %v9315_v42, %v9316_v59  ;;  %v1437_v59 = vld [vmem:[%s13245_s14 + $0x38] sm:$0xff] }
 0x7a9   :  { %v9311_v26 = vunpack.i.h.bf16 %v9309_v51  ;;  %v9310_v24 = vunpack.i.l.bf16 %v9309_v51  ;;  %v9324_v55 = vpop.permute.xlu0 %9323  ;;  %8428 = vmatprep.subr.bf16.mxu1 %v8427_v61 }
 0x7aa   :  { %9598 = vrot.lane.b32.xlu1 %v11299_v62, %s10217_s2  ;;  %v1765_v62 = vsel %vm699_vm4, %v9215_v54, %v9216_v34  ;;  %v9326_v53 = vunpack.i.h.bf16 %v9324_v55  ;;  %v9325_v7 = vunpack.i.l.bf16 %v9324_v55 }
 0x7ab   :  { %9608 = vrot.lane.b32.xlu0 %v11474_v52, %s10215_s13  ;;  %v2224_v33 = vsel %vm2218_vm9, %v9310_v24, %v9311_v26  ;;  %7575 = vmatmul.mubr.f32.gmra.mrb[38].mxu1 %v1433_v49  ;;  %v1436_v26 = vld [vmem:[%s13245_s14 + $0x30] sm:$0xff]  ;;  %v9261_v24 = vunpack.i.h.bf16 %v11418_v36  ;;  %v8439_v55 = vpack.c.bf16 %v1766_v0, %v1765_v62 }
 0x7ac   :  { %v9319_v32 = vpop.permute.xlu1 %9318  ;;  %8430 = vmatpush3.bf16.msra.mxu1 %v8427_v61  ;;  %v8495_v11 = vpack.c.bf16 %v2224_v33, %v2223_v58  ;;  %7577 = vmatprep.mubr.f32.mxu1 %v1434_v31  ;;  %v1435_v61 = vld [vmem:[%s13245_s14 + $0x28] sm:$0xff]  ;;  %v1767_v31 = vsel %vm699_vm4, %v9245_v6, %v9246_v5  ;;  %v2227_v33 = vsel %vm2218_vm9, %v9325_v7, %v9326_v53 }
 0x7ad   :  { %v9321_v21 = vunpack.i.h.bf16 %v9319_v32  ;;  %v9320_v51 = vunpack.i.l.bf16 %v9319_v32  ;;  %v9334_v3 = vpop.permute.xlu0 %9333  ;;  %8432 = vmatprep.subr.bf16.mxu1 %v8431_v15  ;;  %v9260_v32 = vunpack.i.l.bf16 %v11418_v36 }
 0x7ae   :  { %9618 = vrot.lane.b32.xlu1 %v11322_v25, %s10216_s12  ;;  %8496 = vmatprep.subr.bf16.mxu0 %v8495_v11  ;;  %v9336_v42 = vunpack.i.h.bf16 %v9334_v3  ;;  %v9335_v58 = vunpack.i.l.bf16 %v9334_v3 }
 0x7af   :  { %9613 = vrot.lane.b32.xlu0 %v11306_v17, %s10216_s12  ;;  %8498 = vmatpush3.bf16.msra.mxu0 %v8495_v11  ;;  %v2226_v35 = vsel %vm2218_vm9, %v9320_v51, %v9321_v21  ;;  %v9276_v11 = vunpack.i.h.bf16 %v11421_v50  ;;  %v9275_v21 = vunpack.i.l.bf16 %v11421_v50  ;;  %v1770_v7 = vsel %vm699_vm4, %v9260_v32, %v9261_v24 }
 0x7b0   :  { %v9329_v56 = vpop.permute.xlu1 %9328  ;;  %8434 = vmatpush3.bf16.msra.mxu1 %v8431_v15  ;;  %v8499_v20 = vpack.c.bf16 %v2226_v35, %v2225_v27  ;;  %v1768_v15 = vsel %vm699_vm4, %v9230_v29, %v9231_v38 }
 0x7b1   :  { %v9331_v49 = vunpack.i.h.bf16 %v9329_v56  ;;  %v9330_v34 = vunpack.i.l.bf16 %v9329_v56  ;;  %v9344_v54 = vpop.permute.xlu0 %9343  ;;  %8436 = vmatprep.subr.bf16.mxu1 %v8435_v14  ;;  %7578 = vmatmul.mubr.f32.gmra.mrb[40].mxu1 %v1435_v61  ;;  %v8443_v36 = vpack.c.bf16 %v1768_v15, %v1767_v31  ;;  %v1769_v53 = vsel %vm699_vm4, %v9275_v21, %v9276_v11 }
 0x7b2   :  { %9628 = vrot.lane.b32.xlu1 %v11322_v25, %s10217_s2  ;;  %8500 = vmatprep.subr.bf16.mxu0 %v8499_v20  ;;  %v9346_v50 = vunpack.i.h.bf16 %v9344_v54  ;;  %v9345_v29 = vunpack.i.l.bf16 %v9344_v54  ;;  %v8447_v54 = vpack.c.bf16 %v1770_v7, %v1769_v53  ;;  %v9291_v31 = vunpack.i.h.bf16 %v11450_v19 }
 0x7b3   :  { %9623 = vrot.lane.b32.xlu0 %v11306_v17, %s10217_s2  ;;  %8502 = vmatpush3.bf16.msra.mxu0 %v8499_v20  ;;  %v2228_v25 = vsel %vm2218_vm9, %v9330_v34, %v9331_v49  ;;  %v1685_v17 = vld [vmem:[%s13245_s14 + $0x40] sm:$0xff]  ;;  %v9066_v20 = vunpack.i.h.bf16 %v11225_v9  ;;  %v9065_v49 = vunpack.i.l.bf16 %v11225_v9  ;;  %v9086_v34 = vunpack.i.h.bf16 %v11227_v10 }
 0x7b4   :  { %v9339_v51 = vpop.permute.xlu1 %9338  ;;  %8438 = vmatpush3.bf16.msra.mxu1 %v8435_v14  ;;  %v8503_v62 = vpack.c.bf16 %v2228_v25, %v2227_v33  ;;  %7580 = vmatprep.mubr.f32.mxu1 %v1436_v26  ;;  %v2229_v14 = vsel %vm2218_vm9, %v9335_v58, %v9336_v42  ;;  %v2231_v26 = vsel %vm2218_vm9, %v9345_v29, %v9346_v50  ;;  %v9290_v9 = vunpack.i.l.bf16 %v11450_v19 }
 0x7b5   :  { %v9341_v0 = vunpack.i.h.bf16 %v9339_v51  ;;  %v9340_v3 = vunpack.i.l.bf16 %v9339_v51  ;;  %v11536_v38 = vpop.permute.xlu0 %9358  ;;  %8440 = vmatprep.subr.bf16.mxu1 %v8439_v55  ;;  %7581 = vmatmul.mubr.f32.gmra.mrb[42].mxu1 %v1437_v59  ;;  %v9106_v58 = vunpack.i.h.bf16 %v11268_v57  ;;  %v9126_v33 = vunpack.i.h.bf16 %v11270_v18 }
 0x7b6   :  { %9638 = vrot.lane.b32.xlu1 %v11346_v1, %s10216_s12  ;;  %8504 = vmatprep.subr.bf16.mxu0 %v8503_v62  ;;  %v9125_v19 = vunpack.i.l.bf16 %v11270_v18  ;;  %v1772_v11 = vsel %vm699_vm4, %v9290_v9, %v9291_v31  ;;  %v1989_v51 = vsel %vm1987_vm10, %v9065_v49, %v9066_v20  ;;  %v9161_v50 = vunpack.i.h.bf16 %v11314_v22 }
 0x7b7   :  { %9633 = vrot.lane.b32.xlu0 %v11336_v2, %s10216_s12  ;;  %8506 = vmatpush3.bf16.msra.mxu0 %v8503_v62  ;;  %v2230_v5 = vsel %vm2218_vm9, %v9340_v3, %v9341_v0  ;;  %v9160_v29 = vunpack.i.l.bf16 %v11314_v22  ;;  %v9176_v22 = vunpack.i.h.bf16 %v11342_v4  ;;  %v9190_v53 = vunpack.i.l.bf16 %v11348_v41 }
 0x7b8   :  { %v9349_v6 = vpop.permute.xlu1 %9348  ;;  %8442 = vmatpush3.bf16.msra.mxu1 %v8439_v55  ;;  %v8507_v61 = vpack.c.bf16 %v2230_v5, %v2229_v14  ;;  %7615 = vmatprep.mubr.f32.mxu1 %v1685_v17  ;;  %v9085_v55 = vunpack.i.l.bf16 %v11227_v10  ;;  %v9105_v10 = vunpack.i.l.bf16 %v11268_v57  ;;  %v1990_v0 = vsel %vm1987_vm10, %v9125_v19, %v9126_v33  ;;  %v1687_v5 = vld [vmem:[%s13245_s14 + $0x50] sm:$0xff]  ;;  %v3489_v33 = vld [vmem:[%s13246_s15 + $0x18] sm:$0xff] }
 0x7b9   :  { %v9351_v27 = vunpack.i.h.bf16 %v9349_v6  ;;  %v9350_v35 = vunpack.i.l.bf16 %v9349_v6  ;;  %v11549_v56 = vpop.permute.xlu0 %9368  ;;  %8444 = vmatprep.subr.bf16.mxu1 %v8443_v36  ;;  %v9146_v17 = vunpack.i.h.bf16 %v11312_v30  ;;  %v9175_v6 = vunpack.i.l.bf16 %v11342_v4 }
 0x7ba   :  { %9648 = vrot.lane.b32.xlu1 %v11346_v1, %s10217_s2  ;;  %8508 = vmatprep.subr.bf16.mxu0 %v8507_v61  ;;  %v1988_v21 = vsel %vm1987_vm10, %v9085_v55, %v9086_v34  ;;  %v1991_v3 = vsel %vm1987_vm10, %v9105_v10, %v9106_v58  ;;  %v3487_v34 = vld [vmem:[%s13246_s15 + $0x8] sm:$0xff]  ;;  %v9205_v55 = vunpack.i.l.bf16 %v11376_v16  ;;  %v9221_v31 = vunpack.i.h.bf16 %v11378_v28 }
 0x7bb   :  { %9643 = vrot.lane.b32.xlu0 %v11336_v2, %s10217_s2  ;;  %8510 = vmatpush3.bf16.msra.mxu0 %v8507_v61  ;;  %v2232_v24 = vsel %vm2218_vm9, %v9350_v35, %v9351_v27  ;;  %v8455_v18 = vpack.c.bf16 %v1989_v51, %v1988_v21  ;;  %v9191_v61 = vunpack.i.h.bf16 %v11348_v41  ;;  %v1688_v27 = vld [vmem:[%s13245_s14 + $0x58] sm:$0xff]  ;;  %v1992_v35 = vsel %vm1987_vm10, %v9160_v29, %v9161_v50  ;;  %v1689_v41 = vld [vmem:[%s13245_s14 + $0x60] sm:$0xff] }
 0x7bc   :  { %v11563_v15 = vpop.permute.xlu1 %9353  ;;  %8446 = vmatpush3.bf16.msra.mxu1 %v8443_v36  ;;  %v8511_v1 = vpack.c.bf16 %v2232_v24, %v2231_v26  ;;  %v9145_v36 = vunpack.i.l.bf16 %v11312_v30  ;;  %v8459_v30 = vpack.c.bf16 %v1991_v3, %v1990_v0  ;;  %v1995_v26 = vsel %vm1987_vm10, %v9175_v6, %v9176_v22  ;;  %v1915_v51 = vld [vmem:[%s13245_s14 + $0x80] sm:$0xff] }
 0x7bd   :  { %v9379_v59 = vpop.permute.xlu0 %9378  ;;  %8448 = vmatprep.subr.bf16.mxu1 %v8447_v54  ;;  %v9206_v24 = vunpack.i.h.bf16 %v11376_v16  ;;  %v1691_v16 = vld [vmem:[%s13245_s14 + $0x70] sm:$0xff]  ;;  %v9251_v58 = vunpack.i.h.bf16 %v11407_v60  ;;  %v9250_v10 = vunpack.i.l.bf16 %v11407_v60  ;;  %v9281_v50 = vunpack.i.h.bf16 %v11429_v63 }
 0x7be   :  { %v9381_v2 = vunpack.i.h.bf16 %v9379_v59  ;;  %v9380_v42 = vunpack.i.l.bf16 %v9379_v59  ;;  %9658 = vrot.lane.b32.xlu1 %v11367_v23, %s10216_s12  ;;  %8512 = vmatprep.subr.bf16.mxu0 %v8511_v1  ;;  %v1993_v4 = vsel %vm1987_vm10, %v9145_v36, %v9146_v17  ;;  %v9266_v17 = vunpack.i.h.bf16 %v11427_v12 }
 0x7bf   :  { %9653 = vrot.lane.b32.xlu0 %v11356_v8, %s10216_s12  ;;  %8514 = vmatpush3.bf16.msra.mxu0 %v8511_v1  ;;  %v8463_v49 = vpack.c.bf16 %v1993_v4, %v1992_v35  ;;  %v1690_v1 = vld [vmem:[%s13245_s14 + $0x68] sm:$0xff]  ;;  %v1998_v0 = vsel %vm1987_vm10, %v9250_v10, %v9251_v58  ;;  %v9265_v36 = vunpack.i.l.bf16 %v11427_v12  ;;  %v9280_v29 = vunpack.i.l.bf16 %v11429_v63  ;;  %v3493_v12 = vld [vmem:[%s13246_s15 + $0x38] sm:$0xff]  ;;  %v3492_v63 = vld [vmem:[%s13246_s15 + $0x30] sm:$0xff] }
 0x7c0   :  { %v11573_v25 = vpop.permute.xlu1 %9363  ;;  %8450 = vmatpush3.bf16.msra.mxu1 %v8447_v54  ;;  %v1771_v32 = vsel %vm699_vm4, %v9380_v42, %v9381_v2  ;;  %v1994_v54 = vsel %vm1987_vm10, %v9190_v53, %v9191_v61  ;;  %v9236_v2 = vunpack.i.h.bf16 %v11405_v47  ;;  %v9235_v42 = vunpack.i.l.bf16 %v11405_v47  ;;  %v1692_v47 = vld [vmem:[%s13245_s14 + $0x78] sm:$0xff]  ;;  %v1919_v10 = vld [vmem:[%s13245_s14 + $0xa0] sm:$0xff] }
 0x7c1   :  { %v11579_v57 = vpop.permute.xlu0 %9383  ;;  %v8451_v62 = vpack.c.bf16 %v1772_v11, %v1771_v32  ;;  %v3488_v32 = vld [vmem:[%s13246_s15 + $0x10] sm:$0xff]  ;;  %v1997_v11 = vsel %vm1987_vm10, %v9205_v55, %v9206_v24  ;;  %v2000_v61 = vsel %vm1987_vm10, %v9280_v29, %v9281_v50  ;;  %v2001_v53 = vsel %vm1987_vm10, %v9265_v36, %v9266_v17 }
 0x7c2   :  { %9668 = vrot.lane.b32.xlu1 %v11367_v23, %s10217_s2  ;;  %v1999_v3 = vsel %vm1987_vm10, %v9235_v42, %v9236_v2  ;;  %v8479_v35 = vpack.c.bf16 %v2001_v53, %v2000_v61  ;;  %v9296_v4 = vunpack.i.h.bf16 %v11467_v13  ;;  %v1918_v42 = vld [vmem:[%s13245_s14 + $0x98] sm:$0xff]  ;;  %v9360_v17 = vunpack.i.l.bf16 %v11536_v38 }
 0x7c3   :  { %9663 = vrot.lane.b32.xlu0 %v11356_v8, %s10217_s2  ;;  %8452 = vmatprep.subr.bf16.mxu1 %v8451_v62  ;;  %v1686_v8 = vld [vmem:[%s13245_s14 + $0x48] sm:$0xff]  ;;  %v8475_v22 = vpack.c.bf16 %v1999_v3, %v1998_v0  ;;  %v9361_v3 = vunpack.i.h.bf16 %v11536_v38  ;;  %v9356_v36 = vunpack.i.h.bf16 %v11563_v15  ;;  %v9355_v50 = vunpack.i.l.bf16 %v11563_v15 }
 0x7c4   :  { %v11591_v14 = vpop.permute.xlu1 %9373  ;;  %8454 = vmatpush3.bf16.msra.mxu1 %v8451_v62  ;;  %v9370_v15 = vunpack.i.l.bf16 %v11549_v56  ;;  %v9386_v53 = vunpack.i.h.bf16 %v11579_v57 }
 0x7c5   :  { %v11596_v23 = vpop.permute.xlu0 %9393  ;;  %8456 = vmatprep.subr.bf16.mxu1 %v8455_v18  ;;  %v2234_v61 = vsel %vm2218_vm9, %v9355_v50, %v9356_v36 }
 0x7c6   :  { %9673 = vrot.lane.b32.xlu1 %v11389_v37, %s10216_s12 }
 0x7c7   :  { %9678 = vrot.lane.b32.xlu0 %v11474_v52, %s10216_s12  ;;  %7616 = vmatmul.mubr.f32.vlgmr.msra.gmra.mrb[44].mxu1 %v1686_v8 }
 0x7c8   :  { %v11609_v7 = vpop.permute.xlu1 %9388  ;;  %8458 = vmatpush3.bf16.msra.mxu1 %v8455_v18  ;;  %7618 = vmatprep.mubr.f32.mxu1 %v1687_v5  ;;  %v3491_v18 = vld [vmem:[%s13246_s15 + $0x28] sm:$0xff]  ;;  %v3490_v5 = vld [vmem:[%s13246_s15 + $0x20] sm:$0xff] }
 0x7c9   :  { %v11616_v20 = vpop.permute.xlu0 %9403  ;;  %8460 = vmatprep.subr.bf16.mxu1 %v8459_v30 }
 0x7ca   :  { %9688 = vrot.lane.b32.xlu1 %v11389_v37, %s10217_s2  ;;  %v9220_v37 = vunpack.i.l.bf16 %v11378_v28  ;;  %v8467_v28 = vpack.c.bf16 %v1995_v26, %v1994_v54 }
 0x7cb   :  { %9683 = vrot.lane.b32.xlu0 %v11474_v52, %s10217_s2  ;;  %7619 = vmatmul.mubr.f32.gmra.mrb[46].mxu1 %v1688_v27  ;;  %v3486_v52 = vld [vmem:[%s13246_s15] sm:$0xff]  ;;  %s10219_s15 = smov [#allocation4]  }
 0x7cc   :  { %v11634_v9 = vpop.permute.xlu1 %9398  ;;  %8462 = vmatpush3.bf16.msra.mxu1 %v8459_v30  ;;  %7621 = vmatprep.mubr.f32.mxu1 %v1689_v41  ;;  %v1996_v60 = vsel %vm1987_vm10, %v9220_v37, %v9221_v31  ;;  %v9295_v41 = vunpack.i.l.bf16 %v11467_v13  ;;  %v1916_v13 = vld [vmem:[%s13245_s14 + $0x88] sm:$0xff]  ;;  %s6923_s0 = sshll.u32 %s10219_s15, 4  ;;  %s6924_s0 = int_to_ptr.vmem [resolvable:$true] %s6923_s0 }
 0x7cd   :  { %v11642_v59 = vpop.permute.xlu0 %9413  ;;  %8464 = vmatprep.subr.bf16.mxu1 %v8463_v49  ;;  %v8471_v62 = vpack.c.bf16 %v1997_v11, %v1996_v60  ;;  %p10181_p1 = scmp.lt.s32.totalorder %s6924_s0, %s6924_s0 }
 0x7ce   :  { %3501 = vperm.xlu1 %9050, %v3487_v34   ;;  %v2003_v31 = vsel %vm1987_vm10, %v9295_v41, %v9296_v4  ;;  %v9390_v4 = vunpack.i.l.bf16 %v11609_v7 }
 0x7cf   :  { %3496 = vperm.xlu0 %9051, %v3486_v52   ;;  %7622 = vmatmul.mubr.f32.gmra.mrb[48].mxu1 %v1690_v1 }
 0x7d0   :  { %v11654_v19 = vpop.permute.xlu1 %9408  ;;  %8466 = vmatpush3.bf16.msra.mxu1 %v8463_v49  ;;  %7624 = vmatprep.mubr.f32.mxu1 %v1691_v16 }
 0x7d1   :  { %v11664_v21 = vpop.permute.xlu0 %9423  ;;  %8468 = vmatprep.subr.bf16.mxu1 %v8467_v28 }
 0x7d2   :  { %3511 = vperm.xlu1 %9050, %v3489_v33  }
 0x7d3   :  { %3506 = vperm.xlu0 %9051, %v3488_v32   ;;  %7625 = vmatmul.mubr.f32.gmra.mrb[50].mxu1 %v1692_v47  ;;  %v1921_v47 = vld [vmem:[%s13245_s14 + $0xb0] sm:$0xff] }
 0x7d4   :  { %v11678_v8 = vpop.permute.xlu1 %9418  ;;  %8470 = vmatpush3.bf16.msra.mxu1 %v8467_v28  ;;  %7659 = vmatprep.mubr.f32.mxu1 %v1915_v51  ;;  %v1917_v28 = vld [vmem:[%s13245_s14 + $0x90] sm:$0xff]  ;;  %v2377_v51 = vld [vmem:[%s13245_s14 + $0x100] sm:$0xff] }
 0x7d5   :  { %v11683_v30 = vpop.permute.xlu0 %9433  ;;  %8472 = vmatprep.subr.bf16.mxu1 %v8471_v62  ;;  %v9421_v36 = vunpack.i.h.bf16 %v11678_v8  ;;  %v9420_v50 = vunpack.i.l.bf16 %v11678_v8  ;;  %v9415_v8 = vunpack.i.l.bf16 %v11642_v59 }
 0x7d6   :  { %3521 = vperm.xlu1 %9050, %v3491_v18   ;;  %v9365_v18 = vunpack.i.l.bf16 %v11573_v25 }
 0x7d7   :  { %3516 = vperm.xlu0 %9051, %v3490_v5   ;;  %v9376_v5 = vunpack.i.h.bf16 %v11591_v14 }
 0x7d8   :  { %v11688_v6 = vpop.permute.xlu1 %9428  ;;  %8474 = vmatpush3.bf16.msra.mxu1 %v8471_v62 }
 0x7d9   :  { %v11695_v27 = vpop.permute.xlu0 %9443  ;;  %8476 = vmatprep.subr.bf16.mxu1 %v8475_v22 }
 0x7da   :  { %3531 = vperm.xlu1 %9050, %v3493_v12  }
 0x7db   :  { %3526 = vperm.xlu0 %9051, %v3492_v63   ;;  %v9371_v63 = vunpack.i.h.bf16 %v11549_v56  ;;  %v9396_v56 = vunpack.i.h.bf16 %v11596_v23 }
 0x7dc   :  { %v11699_v49 = vpop.permute.xlu1 %9438  ;;  %8478 = vmatpush3.bf16.msra.mxu1 %v8475_v22  ;;  %v9375_v22 = vunpack.i.l.bf16 %v11591_v14 }
 0x7dd   :  { %v9454_v34 = vpop.permute.xlu0 %9453  ;;  %8480 = vmatprep.subr.bf16.mxu1 %v8479_v35 }
 0x7de   :  { %v9456_v54 = vunpack.i.h.bf16 %v9454_v34  ;;  %v9455_v26 = vunpack.i.l.bf16 %v9454_v34  ;;  %v9385_v34 = vunpack.i.l.bf16 %v11579_v57  ;;  %v9400_v57 = vunpack.i.l.bf16 %v11634_v9 }
 0x7e0   :  { %v11701_v24 = vpop.permute.xlu1 %9448  ;;  %8482 = vmatpush3.bf16.msra.mxu1 %v8479_v35  ;;  %v2002_v55 = vsel %vm1987_vm10, %v9455_v26, %v9456_v54  ;;  %v9391_v35 = vunpack.i.h.bf16 %v11609_v7  ;;  %v9406_v7 = vunpack.i.h.bf16 %v11616_v20 }
 0x7e1   :  { %v11705_v37 = vpop.permute.xlu0 %9458  ;;  %v8483_v52 = vpack.c.bf16 %v2003_v31, %v2002_v55  ;;  %v9395_v31 = vunpack.i.l.bf16 %v11596_v23  ;;  %v2147_v23 = vld [vmem:[%s13245_s14 + $0xc8] sm:$0xff] }
 0x7e3   :  { %8484 = vmatprep.subr.bf16.mxu1 %v8483_v52 }
 0x7e4   :  { %v11707_v1 = vpop.permute.xlu1 %9463  ;;  %8486 = vmatpush3.bf16.msra.mxu1 %v8483_v52  ;;  %v9405_v52 = vunpack.i.l.bf16 %v11616_v20  ;;  %v2638_v20 = vsel %vm2634_vm11, %v9390_v4, %v9391_v35  ;;  %v9450_v35 = vunpack.i.l.bf16 %v11701_v24  ;;  %v9436_v4 = vunpack.i.h.bf16 %v11683_v30 }
 0x7e5   :  { %v11712_v16 = vpop.permute.xlu0 %9468  ;;  %8520 = vmatprep.subr.bf16.mxu1 %v11111_v39 }
 0x7e7   :  { %7660 = vmatmul.mubr.f32.vlgmr.msra.gmra.mrb[52].mxu1 %v1916_v13  ;;  %v9401_v13 = vunpack.i.h.bf16 %v11634_v9  ;;  %v2866_v9 = vsel %vm2865_vm12, %v9370_v15, %v9371_v63  ;;  %v9426_v63 = vunpack.i.h.bf16 %v11664_v21 }
 0x7e8   :  { %v11718_v2 = vpop.permute.xlu1 %9473  ;;  %8522 = vmatpush3.bf16.msra.mxu1 %v11111_v39  ;;  %7662 = vmatprep.mubr.f32.mxu1 %v1917_v28  ;;  %v1920_v39 = vld [vmem:[%s13245_s14 + $0xa8] sm:$0xff]  ;;  %v9411_v28 = vunpack.i.h.bf16 %v11654_v19 }
 0x7e9   :  { %v11724_v58 = vpop.permute.xlu0 %9478  ;;  %8524 = vmatprep.subr.bf16.mxu1 %v11115_v40 }
 0x7eb   :  { %7663 = vmatmul.mubr.f32.gmra.mrb[54].mxu1 %v1918_v42  ;;  %v9410_v42 = vunpack.i.l.bf16 %v11654_v19  ;;  %v2637_v19 = vsel %vm2634_vm11, %v9385_v34, %v9386_v53  ;;  %v9451_v53 = vunpack.i.h.bf16 %v11701_v24  ;;  %v2150_v34 = vld [vmem:[%s13245_s14 + $0xe0] sm:$0xff]  ;;  %v9445_v24 = vunpack.i.l.bf16 %v11695_v27 }
 0x7ec   :  { %v11730_v33 = vpop.permute.xlu1 %9483  ;;  %8526 = vmatpush3.bf16.msra.mxu1 %v11115_v40  ;;  %7665 = vmatprep.mubr.f32.mxu1 %v1919_v10  ;;  %v1922_v40 = vld [vmem:[%s13245_s14 + $0xb8] sm:$0xff] }
 0x7ed   :  { %v11736_v32 = vpop.permute.xlu0 %9488  ;;  %8528 = vmatprep.subr.bf16.mxu1 %v11119_v43 }
 0x7ef   :  { %7666 = vmatmul.mubr.f32.gmra.mrb[56].mxu1 %v1920_v39 }
 0x7f0   :  { %v11742_v60 = vpop.permute.xlu1 %9493  ;;  %8530 = vmatpush3.bf16.msra.mxu1 %v11119_v43  ;;  %7668 = vmatprep.mubr.f32.mxu1 %v1921_v47  ;;  %v9366_v43 = vunpack.i.h.bf16 %v11573_v25  ;;  %v13284_v47 = vld [vmem:[#allocation7_spill] sm:$0xff] }
 0x7f1   :  { %v11748_v11 = vpop.permute.xlu0 %9498  ;;  %8532 = vmatprep.subr.bf16.mxu1 %v11123_v44 }
 0x7f2   :  { %v2636_v25 = vsel %vm2634_vm11, %v9365_v18, %v9366_v43  ;;  %v2148_v43 = vld [vmem:[%s13245_s14 + $0xd0] sm:$0xff]  ;;  %v2639_v18 = vsel %vm2634_vm11, %v9405_v52, %v9406_v7  ;;  %v2871_v7 = vsel %vm2865_vm12, %v9420_v50, %v9421_v36 }
 0x7f3   :  { %7669 = vmatmul.mubr.f32.gmra.mrb[58].mxu1 %v1922_v40 }
 0x7f4   :  { %v11754_v62 = vpop.permute.xlu1 %9503  ;;  %8534 = vmatpush3.bf16.msra.mxu1 %v11123_v44  ;;  %7747 = vmatprep.mubr.f32.mxu1 %v2377_v51  ;;  %v2868_v51 = vsel %vm2865_vm12, %v9395_v31, %v9396_v56  ;;  %v9446_v56 = vunpack.i.h.bf16 %v11695_v27 }
 0x7f5   :  { %v11759_v0 = vpop.permute.xlu0 %9518  ;;  %8536 = vmatprep.subr.bf16.mxu1 %v11127_v45 }
 0x7f8   :  { %v11766_v29 = vpop.permute.xlu1 %9508  ;;  %8538 = vmatpush3.bf16.msra.mxu1 %v11127_v45  ;;  %v2635_v45 = vsel %vm2634_vm11, %v9360_v17, %v9361_v3  ;;  %v2640_v3 = vsel %vm2634_vm11, %v9410_v42, %v9411_v28  ;;  %v2869_v17 = vsel %vm2865_vm12, %v9400_v57, %v9401_v13  ;;  %v9466_v13 = vunpack.i.h.bf16 %v11707_v1 }
 0x7f9   :  { %v9529_v44 = vpop.permute.xlu0 %9528  ;;  %8540 = vmatprep.subr.bf16.mxu1 %v11131_v46  ;;  %v8551_v55 = vpack.c.bf16 %v2636_v25, %v2635_v45  ;;  %v9430_v25 = vunpack.i.l.bf16 %v11688_v6  ;;  %v9440_v45 = vunpack.i.l.bf16 %v11699_v49  ;;  %v9465_v57 = vunpack.i.l.bf16 %v11707_v1 }
 0x7fa   :  { %v9531_v38 = vunpack.i.h.bf16 %v9529_v44  ;;  %v9530_v12 = vunpack.i.l.bf16 %v9529_v44  ;;  %v9431_v44 = vunpack.i.h.bf16 %v11688_v6  ;;  %v9425_v6 = vunpack.i.l.bf16 %v11664_v21 }
 0x7fb   :  { %v8559_v21 = vpack.c.bf16 %v2640_v3, %v2639_v18  ;;  %v2644_v28 = vsel %vm2634_vm11, %v9450_v35, %v9451_v53  ;;  %v9476_v1 = vunpack.i.h.bf16 %v11718_v2  ;;  %v9461_v3 = vunpack.i.h.bf16 %v11705_v37 }
 0x7fc   :  { %v11780_v41 = vpop.permute.xlu1 %9513  ;;  %8542 = vmatpush3.bf16.msra.mxu1 %v11131_v46  ;;  %v2233_v14 = vsel %vm2218_vm9, %v9530_v12, %v9531_v38  ;;  %v2867_v46 = vsel %vm2865_vm12, %v9375_v22, %v9376_v5  ;;  %v2149_v22 = vld [vmem:[%s13245_s14 + $0xd8] sm:$0xff]  ;;  %v2378_v38 = vld [vmem:[%s13245_s14 + $0x108] sm:$0xff]  ;;  %v9416_v12 = vunpack.i.h.bf16 %v11642_v59  ;;  %v9435_v59 = vunpack.i.l.bf16 %v11683_v30 }
 0x7fd   :  { %v11786_v54 = vpop.permute.xlu0 %9533  ;;  %8544 = vmatprep.subr.bf16.mxu1 %v11136_v48  ;;  %v8515_v26 = vpack.c.bf16 %v2234_v61, %v2233_v14  ;;  %v8583_v40 = vpack.c.bf16 %v2867_v46, %v2866_v9  ;;  %v9441_v61 = vunpack.i.h.bf16 %v11699_v49  ;;  %v8587_v14 = vpack.c.bf16 %v2869_v17, %v2868_v51  ;;  %v2379_v49 = vld [vmem:[%s13245_s14 + $0x110] sm:$0xff]  ;;  %v2151_v30 = vld [vmem:[%s13245_s14 + $0xe8] sm:$0xff]  ;;  %v2381_v9 = vld [vmem:[%s13245_s14 + $0x120] sm:$0xff] }
 0x7fe   :  { %v2642_v31 = vsel %vm2634_vm11, %v9430_v25, %v9431_v44  ;;  %v2641_v27 = vsel %vm2634_vm11, %v9425_v6, %v9426_v63  ;;  %v2870_v46 = vsel %vm2865_vm12, %v9415_v8, %v9416_v12  ;;  %v2153_v51 = vld [vmem:[%s13245_s14 + $0xf8] sm:$0xff]  ;;  %v2872_v18 = vsel %vm2865_vm12, %v9435_v59, %v9436_v4  ;;  %v2530_v6 = vld [vmem:[%s13245_s14 + $0x140] sm:$0xff] }
 0x7ff   :  { %8516 = vmatprep.subr.bf16.mxu0 %v8515_v26  ;;  %v2873_v42 = vsel %vm2865_vm12, %v9440_v45, %v9441_v61  ;;  %v9471_v44 = vunpack.i.h.bf16 %v11712_v16  ;;  %v9470_v25 = vunpack.i.l.bf16 %v11712_v16  ;;  %v9486_v12 = vunpack.i.h.bf16 %v11730_v33  ;;  %v2383_v16 = vld [vmem:[%s13245_s14 + $0x130] sm:$0xff] }
 0x800   :  { %v11797_v10 = vpop.permute.xlu1 %9523  ;;  %8518 = vmatpush3.bf16.msra.mxu0 %v8515_v26  ;;  %8546 = vmatpush3.bf16.msra.mxu1 %v11136_v48  ;;  %v8555_v48 = vpack.c.bf16 %v2638_v20, %v2637_v19  ;;  %v8591_v20 = vpack.c.bf16 %v2871_v7, %v2870_v46  ;;  %v9475_v19 = vunpack.i.l.bf16 %v11718_v2  ;;  %v9460_v2 = vunpack.i.l.bf16 %v11705_v37 }
 0x801   :  { %v11804_v39 = vpop.permute.xlu0 %9543  ;;  %8548 = vmatprep.subr.bf16.mxu1 %v13284_v47  ;;  %8552 = vmatprep.subr.bf16.mxu0 %v8551_v55  ;;  %v8595_v50 = vpack.c.bf16 %v2873_v42, %v2872_v18  ;;  %v9485_v37 = vunpack.i.l.bf16 %v11730_v33  ;;  %v9496_v8 = vunpack.i.h.bf16 %v11742_v60  ;;  %v9495_v63 = vunpack.i.l.bf16 %v11742_v60  ;;  %v2384_v60 = vld [vmem:[%s13245_s14 + $0x138] sm:$0xff] }
 0x802   :  { %v9480_v61 = vunpack.i.l.bf16 %v11724_v58  ;;  %v9491_v45 = vunpack.i.h.bf16 %v11736_v32  ;;  %v9490_v33 = vunpack.i.l.bf16 %v11736_v32  ;;  %v2646_v35 = vsel %vm2634_vm11, %v9475_v19, %v9476_v1 }
 0x803   :  { %7704 = vmatmul.mubr.f32.vlgmr.msra.gmra.mrb[4].mxu0 %v2147_v23  ;;  %v8563_v23 = vpack.c.bf16 %v2642_v31, %v2641_v27  ;;  %v9505_v59 = vunpack.i.l.bf16 %v11754_v62  ;;  %v2645_v32 = vsel %vm2634_vm11, %v9470_v25, %v9471_v44  ;;  %v9521_v27 = vunpack.i.h.bf16 %v11759_v0 }
 0x804   :  { %v11820_v5 = vpop.permute.xlu1 %9538  ;;  %8550 = vmatpush3.bf16.msra.mxu1 %v13284_v47  ;;  %8554 = vmatpush3.bf16.msra.mxu0 %v8551_v55  ;;  %v2380_v55 = vld [vmem:[%s13245_s14 + $0x118] sm:$0xff]  ;;  %v2152_v47 = vld [vmem:[%s13245_s14 + $0xf0] sm:$0xff]  ;;  %v2647_v31 = vsel %vm2634_vm11, %v9490_v33, %v9491_v45  ;;  %v9520_v46 = vunpack.i.l.bf16 %v11759_v0  ;;  %v9516_v0 = vunpack.i.h.bf16 %v11780_v41  ;;  %v9535_v1 = vunpack.i.l.bf16 %v11786_v54 }
 0x805   :  { %v11833_v15 = vpop.permute.xlu0 %9553  ;;  %8556 = vmatprep.subr.bf16.mxu0 %v8555_v48  ;;  %8584 = vmatprep.subr.bf16.mxu1 %v8583_v40 }
 0x806   :  { %7706 = vmatprep.mubr.f32.mxu0 %v2148_v43  ;;  %v2643_v43 = vsel %vm2634_vm11, %v9445_v24, %v9446_v56  ;;  %v2877_v56 = vsel %vm2865_vm12, %v9485_v37, %v9486_v12  ;;  %v2793_v24 = vld [vmem:[%s13245_s14 + $0x180] sm:$0xff] }
 0x807   :  { %7707 = vmatmul.mubr.f32.gmra.mrb[6].mxu0 %v2149_v22  ;;  %7748 = vmatmul.mubr.f32.vlgmr.msra.gmra.mrb[60].mxu1 %v2378_v38  ;;  %v8567_v36 = vpack.c.bf16 %v2644_v28, %v2643_v43  ;;  %v9481_v22 = vunpack.i.h.bf16 %v11724_v58  ;;  %v2875_v38 = vsel %vm2865_vm12, %v9465_v57, %v9466_v13  ;;  %v9506_v58 = vunpack.i.h.bf16 %v11754_v62 }
 0x808   :  { %v11849_v26 = vpop.permute.xlu1 %9548  ;;  %8558 = vmatpush3.bf16.msra.mxu0 %v8555_v48  ;;  %8586 = vmatpush3.bf16.msra.mxu1 %v8583_v40  ;;  %v2382_v48 = vld [vmem:[%s13245_s14 + $0x128] sm:$0xff]  ;;  %v9500_v62 = vunpack.i.l.bf16 %v11748_v11  ;;  %v9526_v13 = vunpack.i.h.bf16 %v11797_v10  ;;  %v9525_v57 = vunpack.i.l.bf16 %v11797_v10  ;;  %v9536_v10 = vunpack.i.h.bf16 %v11786_v54 }
 0x809   :  { %v11859_v52 = vpop.permute.xlu0 %9563  ;;  %8560 = vmatprep.subr.bf16.mxu0 %v8559_v21  ;;  %8588 = vmatprep.subr.bf16.mxu1 %v8587_v14  ;;  %v2876_v7 = vsel %vm2865_vm12, %v9480_v61, %v9481_v22  ;;  %v9546_v22 = vunpack.i.h.bf16 %v11804_v39 }
 0x80a   :  { %7709 = vmatprep.mubr.f32.mxu0 %v2150_v34  ;;  %7750 = vmatprep.mubr.f32.mxu1 %v2379_v49  ;;  %v2648_v49 = vsel %vm2634_vm11, %v9495_v63, %v9496_v8  ;;  %v8603_v42 = vpack.c.bf16 %v2877_v56, %v2876_v7  ;;  %v3098_v18 = vsel %vm3096_vm13, %v9525_v57, %v9526_v13  ;;  %v9556_v8 = vunpack.i.h.bf16 %v11833_v15 }
 0x80b   :  { %7710 = vmatmul.mubr.f32.gmra.mrb[8].mxu0 %v2151_v30  ;;  %7751 = vmatmul.mubr.f32.gmra.mrb[62].mxu1 %v2380_v55  ;;  %v9501_v30 = vunpack.i.h.bf16 %v11748_v11  ;;  %v8575_v11 = vpack.c.bf16 %v2648_v49, %v2647_v31  ;;  %v3328_v37 = vsel %vm3327_vm14, %v9535_v1, %v9536_v10  ;;  %v9566_v61 = vunpack.i.h.bf16 %v11859_v52 }
 0x80c   :  { %v11875_v40 = vpop.permute.xlu1 %9558  ;;  %8562 = vmatpush3.bf16.msra.mxu0 %v8559_v21  ;;  %8590 = vmatpush3.bf16.msra.mxu1 %v8587_v14  ;;  %v2874_v21 = vsel %vm2865_vm12, %v9460_v2, %v9461_v3  ;;  %v8571_v14 = vpack.c.bf16 %v2646_v35, %v2645_v32  ;;  %v9540_v3 = vunpack.i.l.bf16 %v11820_v5 }
 0x80d   :  { %v11887_v17 = vpop.permute.xlu0 %9573  ;;  %8564 = vmatprep.subr.bf16.mxu0 %v8563_v23  ;;  %8592 = vmatprep.subr.bf16.mxu1 %v8591_v20  ;;  %v8599_v34 = vpack.c.bf16 %v2875_v38, %v2874_v21  ;;  %v9545_v38 = vunpack.i.l.bf16 %v11804_v39  ;;  %v9561_v35 = vunpack.i.h.bf16 %v11875_v40 }
 0x80e   :  { %7712 = vmatprep.mubr.f32.mxu0 %v2152_v47  ;;  %7753 = vmatprep.mubr.f32.mxu1 %v2381_v9  ;;  %v9510_v47 = vunpack.i.l.bf16 %v11766_v29  ;;  %v9515_v9 = vunpack.i.l.bf16 %v11780_v41  ;;  %v9541_v41 = vunpack.i.h.bf16 %v11820_v5  ;;  %v9576_v7 = vunpack.i.h.bf16 %v11887_v17 }
 0x80f   :  { %7713 = vmatmul.mubr.f32.gmra.mrb[10].mxu0 %v2153_v51  ;;  %7754 = vmatmul.mubr.f32.gmra.mrb[64].mxu1 %v2382_v48  ;;  %v2878_v51 = vsel %vm2865_vm12, %v9500_v62, %v9501_v30  ;;  %v3099_v30 = vsel %vm3096_vm13, %v9545_v38, %v9546_v22 }
 0x810   :  { %v11906_v53 = vpop.permute.xlu1 %9568  ;;  %8566 = vmatpush3.bf16.msra.mxu0 %v8563_v23  ;;  %8594 = vmatpush3.bf16.msra.mxu1 %v8591_v20  ;;  %v2879_v23 = vsel %vm2865_vm12, %v9505_v59, %v9506_v58  ;;  %v9511_v20 = vunpack.i.h.bf16 %v11766_v29  ;;  %v3097_v29 = vsel %vm3096_vm13, %v9520_v46, %v9521_v27  ;;  %v2881_v25 = vsel %vm2865_vm12, %v9515_v9, %v9516_v0 }
 0x811   :  { %v11912_v4 = vpop.permute.xlu0 %9583  ;;  %8568 = vmatprep.subr.bf16.mxu0 %v8567_v36  ;;  %8596 = vmatprep.subr.bf16.mxu1 %v8595_v50  ;;  %v8607_v43 = vpack.c.bf16 %v2879_v23, %v2878_v51  ;;  %v3329_v33 = vsel %vm3327_vm14, %v9540_v3, %v9541_v41  ;;  %v9560_v58 = vunpack.i.l.bf16 %v11875_v40  ;;  %v9570_v32 = vunpack.i.l.bf16 %v11906_v53  ;;  %v2794_v23 = vld [vmem:[%s13245_s14 + $0x188] sm:$0xff]  ;;  %v2534_v41 = vld [vmem:[%s13245_s14 + $0x160] sm:$0xff]  ;;  %v2795_v3 = vld [vmem:[%s13245_s14 + $0x190] sm:$0xff] }
 0x812   :  { %7756 = vmatprep.mubr.f32.mxu1 %v2383_v16  ;;  %7791 = vmatprep.mubr.f32.mxu0 %v2530_v6  ;;  %v2650_v44 = vsel %vm2634_vm11, %v9510_v47, %v9511_v20  ;;  %v8615_v6 = vpack.c.bf16 %v3098_v18, %v3097_v29  ;;  %v8647_v62 = vpack.c.bf16 %v3329_v33, %v3328_v37  ;;  %v9575_v27 = vunpack.i.l.bf16 %v11887_v17  ;;  %v2533_v17 = vld [vmem:[%s13245_s14 + $0x158] sm:$0xff] }
 0x813   :  { %7757 = vmatmul.mubr.f32.gmra.mrb[66].mxu1 %v2384_v60  ;;  %v9565_v60 = vunpack.i.l.bf16 %v11859_v52  ;;  %v2531_v52 = vld [vmem:[%s13245_s14 + $0x148] sm:$0xff]  ;;  %v9586_v57 = vunpack.i.h.bf16 %v11912_v4  ;;  %v3331_v47 = vsel %vm3327_vm14, %v9560_v58, %v9561_v35 }
 0x814   :  { %v11925_v55 = vpop.permute.xlu1 %9578  ;;  %8570 = vmatpush3.bf16.msra.mxu0 %v8567_v36  ;;  %8598 = vmatpush3.bf16.msra.mxu1 %v8595_v50  ;;  %v9551_v36 = vunpack.i.h.bf16 %v11849_v26  ;;  %v9550_v50 = vunpack.i.l.bf16 %v11849_v26  ;;  %v9555_v26 = vunpack.i.l.bf16 %v11833_v15  ;;  %v9571_v15 = vunpack.i.h.bf16 %v11906_v53 }
 0x815   :  { %v11933_v28 = vpop.permute.xlu0 %9593  ;;  %8572 = vmatprep.subr.bf16.mxu0 %v8571_v14  ;;  %8600 = vmatprep.subr.bf16.mxu1 %v8599_v34  ;;  %v9581_v21 = vunpack.i.h.bf16 %v11925_v55  ;;  %v9580_v40 = vunpack.i.l.bf16 %v11925_v55  ;;  %v2532_v55 = vld [vmem:[%s13245_s14 + $0x150] sm:$0xff]  ;;  %v3101_v13 = vsel %vm3096_vm13, %v9565_v60, %v9566_v61 }
 0x816   :  { %7835 = vmatprep.mubr.f32.mxu1 %v2793_v24  ;;  %v3100_v59 = vsel %vm3096_vm13, %v9550_v50, %v9551_v36  ;;  %v3330_v31 = vsel %vm3327_vm14, %v9555_v26, %v9556_v8  ;;  %v3102_v20 = vsel %vm3096_vm13, %v9570_v32, %v9571_v15  ;;  %v2796_v36 = vld [vmem:[%s13245_s14 + $0x198] sm:$0xff]  ;;  %v9595_v22 = vunpack.i.l.bf16 %v11933_v28  ;;  %v2536_v61 = vld [vmem:[%s13245_s14 + $0x170] sm:$0xff]  ;;  %v2798_v15 = vld [vmem:[%s13245_s14 + $0x1a8] sm:$0xff] }
 0x817   :  { %v8619_v46 = vpack.c.bf16 %v3100_v59, %v3099_v30  ;;  %v3333_v1 = vsel %vm3327_vm14, %v9580_v40, %v9581_v21  ;;  %v8623_v29 = vpack.c.bf16 %v3102_v20, %v3101_v13  ;;  %v8651_v18 = vpack.c.bf16 %v3331_v47, %v3330_v31  ;;  %v2537_v59 = vld [vmem:[%s13245_s14 + $0x178] sm:$0xff]  ;;  %v3255_v47 = vld [vmem:[%s13245_s14 + $0x200] sm:$0xff] }
 0x818   :  { %v11942_v19 = vpop.permute.xlu1 %9588  ;;  %8574 = vmatpush3.bf16.msra.mxu0 %v8571_v14  ;;  %8602 = vmatpush3.bf16.msra.mxu1 %v8599_v34 }
 0x819   :  { %v9604_v48 = vpop.permute.xlu0 %9603  ;;  %8576 = vmatprep.subr.bf16.mxu0 %v8575_v11  ;;  %8604 = vmatprep.subr.bf16.mxu1 %v8603_v42  ;;  %v9591_v49 = vunpack.i.h.bf16 %v11942_v19  ;;  %v9590_v56 = vunpack.i.l.bf16 %v11942_v19 }
 0x81a   :  { %v9606_v54 = vunpack.i.h.bf16 %v9604_v48  ;;  %v9605_v2 = vunpack.i.l.bf16 %v9604_v48 }
 0x81b   :  { %v3104_v10 = vsel %vm3096_vm13, %v9590_v56, %v9591_v49  ;;  %v2799_v49 = vld [vmem:[%s13245_s14 + $0x1b0] sm:$0xff] }
 0x81c   :  { %v11955_v12 = vpop.permute.xlu1 %9598  ;;  %8578 = vmatpush3.bf16.msra.mxu0 %v8575_v11  ;;  %8606 = vmatpush3.bf16.msra.mxu1 %v8603_v42  ;;  %v2649_v5 = vsel %vm2634_vm11, %v9605_v2, %v9606_v54  ;;  %v9585_v11 = vunpack.i.l.bf16 %v11912_v4  ;;  %v2535_v2 = vld [vmem:[%s13245_s14 + $0x168] sm:$0xff] }
 0x81d   :  { %v9609_v63 = vpop.permute.xlu0 %9608  ;;  %8608 = vmatprep.subr.bf16.mxu1 %v8607_v43  ;;  %v8579_v16 = vpack.c.bf16 %v2650_v44, %v2649_v5  ;;  %v9601_v0 = vunpack.i.h.bf16 %v11955_v12  ;;  %v9600_v4 = vunpack.i.l.bf16 %v11955_v12  ;;  %v3332_v44 = vsel %vm3327_vm14, %v9575_v27, %v9576_v7  ;;  %v2800_v7 = vld [vmem:[%s13245_s14 + $0x1b8] sm:$0xff] }
 0x81e   :  { %v9611_v45 = vunpack.i.h.bf16 %v9609_v63  ;;  %v9610_v39 = vunpack.i.l.bf16 %v9609_v63  ;;  %v3103_v50 = vsel %vm3096_vm13, %v9585_v11, %v9586_v57  ;;  %v8655_v5 = vpack.c.bf16 %v3333_v1, %v3332_v44 }
 0x81f   :  { %8580 = vmatprep.subr.bf16.mxu0 %v8579_v16  ;;  %v8627_v12 = vpack.c.bf16 %v3104_v10, %v3103_v50  ;;  %v3335_v26 = vsel %vm3327_vm14, %v9600_v4, %v9601_v0 }
 0x820   :  { %v11970_v14 = vpop.permute.xlu1 %9618  ;;  %8582 = vmatpush3.bf16.msra.mxu0 %v8579_v16  ;;  %8610 = vmatpush3.bf16.msra.mxu1 %v8607_v43  ;;  %v2880_v34 = vsel %vm2865_vm12, %v9610_v39, %v9611_v45  ;;  %v2797_v45 = vld [vmem:[%s13245_s14 + $0x1a0] sm:$0xff] }
 0x821   :  { %v9614_v24 = vpop.permute.xlu0 %9613  ;;  %8616 = vmatprep.subr.bf16.mxu0 %v8615_v6  ;;  %v8611_v53 = vpack.c.bf16 %v2881_v25, %v2880_v34  ;;  %v9621_v19 = vunpack.i.h.bf16 %v11970_v14  ;;  %v9620_v51 = vunpack.i.l.bf16 %v11970_v14  ;;  %v9596_v25 = vunpack.i.h.bf16 %v11933_v28 }
 0x822   :  { %v9616_v48 = vunpack.i.h.bf16 %v9614_v24  ;;  %v9615_v43 = vunpack.i.l.bf16 %v9614_v24 }
 0x823   :  { %7792 = vmatmul.mubr.f32.vlgmr.msra.gmra.mrb[12].mxu0 %v2531_v52  ;;  %8612 = vmatprep.subr.bf16.mxu1 %v8611_v53  ;;  %v3106_v8 = vsel %vm3096_vm13, %v9620_v51, %v9621_v19  ;;  %v3334_v21 = vsel %vm3327_vm14, %v9595_v22, %v9596_v25 }
 0x824   :  { %v11989_v42 = vpop.permute.xlu1 %9628  ;;  %8614 = vmatpush3.bf16.msra.mxu1 %v8611_v53  ;;  %8618 = vmatpush3.bf16.msra.mxu0 %v8615_v6  ;;  %v3105_v37 = vsel %vm3096_vm13, %v9615_v43, %v9616_v48  ;;  %v8659_v52 = vpack.c.bf16 %v3335_v26, %v3334_v21  ;;  %v3024_v53 = vld [vmem:[%s13245_s14 + $0x1c0] sm:$0xff]  ;;  %v3030_v21 = vld [vmem:[%s13245_s14 + $0x1f0] sm:$0xff] }
 0x825   :  { %v12001_v9 = vpop.permute.xlu0 %9623  ;;  %8620 = vmatprep.subr.bf16.mxu0 %v8619_v46  ;;  %8648 = vmatprep.subr.bf16.mxu1 %v8647_v62  ;;  %v9631_v63 = vunpack.i.h.bf16 %v11989_v42  ;;  %v9630_v16 = vunpack.i.l.bf16 %v11989_v42  ;;  %v8631_v14 = vpack.c.bf16 %v3106_v8, %v3105_v37 }
 0x826   :  { %7794 = vmatprep.mubr.f32.mxu0 %v2532_v55  ;;  %v9626_v6 = vunpack.i.h.bf16 %v12001_v9  ;;  %v9625_v28 = vunpack.i.l.bf16 %v12001_v9 }
 0x827   :  { %7795 = vmatmul.mubr.f32.gmra.mrb[14].mxu0 %v2533_v17  ;;  %7836 = vmatmul.mubr.f32.vlgmr.msra.gmra.mrb[68].mxu1 %v2794_v23  ;;  %v3337_v24 = vsel %vm3327_vm14, %v9630_v16, %v9631_v63 }
 0x828   :  { %v9639_v54 = vpop.permute.xlu1 %9638  ;;  %8622 = vmatpush3.bf16.msra.mxu0 %v8619_v46  ;;  %8650 = vmatpush3.bf16.msra.mxu1 %v8647_v62  ;;  %v3336_v56 = vsel %vm3327_vm14, %v9625_v28, %v9626_v6 }
 0x829   :  { %v9634_v38 = vpop.permute.xlu0 %9633  ;;  %8624 = vmatprep.subr.bf16.mxu0 %v8623_v29  ;;  %8652 = vmatprep.subr.bf16.mxu1 %v8651_v18  ;;  %v9641_v39 = vunpack.i.h.bf16 %v9639_v54  ;;  %v9640_v33 = vunpack.i.l.bf16 %v9639_v54  ;;  %v8663_v23 = vpack.c.bf16 %v3337_v24, %v3336_v56 }
 0x82a   :  { %7797 = vmatprep.mubr.f32.mxu0 %v2534_v41  ;;  %7838 = vmatprep.mubr.f32.mxu1 %v2795_v3  ;;  %v9636_v60 = vunpack.i.h.bf16 %v9634_v38  ;;  %v9635_v35 = vunpack.i.l.bf16 %v9634_v38 }
 0x82b   :  { %7798 = vmatmul.mubr.f32.gmra.mrb[16].mxu0 %v2535_v2  ;;  %7839 = vmatmul.mubr.f32.gmra.mrb[70].mxu1 %v2796_v36  ;;  %v3108_v46 = vsel %vm3096_vm13, %v9640_v33, %v9641_v39  ;;  %v3026_v33 = vld [vmem:[%s13245_s14 + $0x1d0] sm:$0xff] }
 0x82c   :  { %v9649_v58 = vpop.permute.xlu1 %9648  ;;  %8626 = vmatpush3.bf16.msra.mxu0 %v8623_v29  ;;  %8654 = vmatpush3.bf16.msra.mxu1 %v8651_v18  ;;  %v3107_v27 = vsel %vm3096_vm13, %v9635_v35, %v9636_v60  ;;  %v3027_v60 = vld [vmem:[%s13245_s14 + $0x1d8] sm:$0xff]  ;;  %v3256_v35 = vld [vmem:[%s13245_s14 + $0x208] sm:$0xff] }
 0x82d   :  { %v9644_v32 = vpop.permute.xlu0 %9643  ;;  %8628 = vmatprep.subr.bf16.mxu0 %v8627_v12  ;;  %8656 = vmatprep.subr.bf16.mxu1 %v8655_v5  ;;  %v9651_v34 = vunpack.i.h.bf16 %v9649_v58  ;;  %v9650_v40 = vunpack.i.l.bf16 %v9649_v58  ;;  %v8635_v17 = vpack.c.bf16 %v3108_v46, %v3107_v27  ;;  %v3028_v58 = vld [vmem:[%s13245_s14 + $0x1e0] sm:$0xff] }
 0x82e   :  { %7800 = vmatprep.mubr.f32.mxu0 %v2536_v61  ;;  %7841 = vmatprep.mubr.f32.mxu1 %v2797_v45  ;;  %v9646_v30 = vunpack.i.h.bf16 %v9644_v32  ;;  %v9645_v62 = vunpack.i.l.bf16 %v9644_v32  ;;  %v3025_v61 = vld [vmem:[%s13245_s14 + $0x1c8] sm:$0xff]  ;;  %v3258_v32 = vld [vmem:[%s13245_s14 + $0x218] sm:$0xff]  ;;  %v6969_v46 = vld [vmem:[%s13247_s16] ss:$0 sm:$0xff] }
 0x82f   :  { %7801 = vmatmul.mubr.f32.gmra.mrb[18].mxu0 %v2537_v59  ;;  %7842 = vmatmul.mubr.f32.gmra.mrb[72].mxu1 %v2798_v15  ;;  %v3339_v20 = vsel %vm3327_vm14, %v9650_v40, %v9651_v34  ;;  %v3257_v59 = vld [vmem:[%s13245_s14 + $0x210] sm:$0xff]  ;;  %v3029_v15 = vld [vmem:[%s13245_s14 + $0x1e8] sm:$0xff] }
 0x830   :  { %v9659_v31 = vpop.permute.xlu1 %9658  ;;  %8630 = vmatpush3.bf16.msra.mxu0 %v8627_v12  ;;  %8658 = vmatpush3.bf16.msra.mxu1 %v8655_v5  ;;  %v3338_v10 = vsel %vm3327_vm14, %v9645_v62, %v9646_v30  ;;  %v3260_v34 = vld [vmem:[%s13245_s14 + $0x228] sm:$0xff]  ;;  %v3261_v40 = vld [vmem:[%s13245_s14 + $0x230] sm:$0xff] }
 0x831   :  { %v9661_v55 = vunpack.i.h.bf16 %v9659_v31  ;;  %v9660_v13 = vunpack.i.l.bf16 %v9659_v31  ;;  %v9654_v57 = vpop.permute.xlu0 %9653  ;;  %8632 = vmatprep.subr.bf16.mxu0 %v8631_v14  ;;  %8660 = vmatprep.subr.bf16.mxu1 %v8659_v52  ;;  %v8667_v18 = vpack.c.bf16 %v3339_v20, %v3338_v10 }
 0x832   :  { %v9656_v11 = vunpack.i.h.bf16 %v9654_v57  ;;  %v9655_v42 = vunpack.i.l.bf16 %v9654_v57  ;;  %7844 = vmatprep.mubr.f32.mxu1 %v2799_v49  ;;  %7879 = vmatprep.mubr.f32.mxu0 %v3024_v53  ;;  %v3262_v49 = vld [vmem:[%s13245_s14 + $0x238] sm:$0xff] }
 0x833   :  { %7845 = vmatmul.mubr.f32.gmra.mrb[74].mxu1 %v2800_v7  ;;  %v3110_v9 = vsel %vm3096_vm13, %v9660_v13, %v9661_v55  ;;  %v6970_v55 = vld [vmem:[%s13247_s16 + $0x1] ss:$0 sm:$0xff] }
 0x834   :  { %v9669_v0 = vpop.permute.xlu1 %9668  ;;  %8634 = vmatpush3.bf16.msra.mxu0 %v8631_v14  ;;  %8662 = vmatpush3.bf16.msra.mxu1 %v8659_v52  ;;  %v3109_v4 = vsel %vm3096_vm13, %v9655_v42, %v9656_v11  ;;  %v3259_v14 = vld [vmem:[%s13245_s14 + $0x220] sm:$0xff]  ;;  %v3031_v52 = vld [vmem:[%s13245_s14 + $0x1f8] sm:$0xff] }
 0x835   :  { %v9671_v1 = vunpack.i.h.bf16 %v9669_v0  ;;  %v9670_v19 = vunpack.i.l.bf16 %v9669_v0  ;;  %v9664_v51 = vpop.permute.xlu0 %9663  ;;  %8636 = vmatprep.subr.bf16.mxu0 %v8635_v17  ;;  %8664 = vmatprep.subr.bf16.mxu1 %v8663_v23  ;;  %v8639_v29 = vpack.c.bf16 %v3110_v9, %v3109_v4 }
 0x836   :  { %v9666_v48 = vunpack.i.h.bf16 %v9664_v51  ;;  %v9665_v43 = vunpack.i.l.bf16 %v9664_v51  ;;  %7923 = vmatprep.mubr.f32.mxu1 %v3255_v47 }
 0x837   :  { %v3341_v54 = vsel %vm3327_vm14, %v9670_v19, %v9671_v1 }
 0x838   :  { %v9674_v41 = vpop.permute.xlu1 %9673  ;;  %8638 = vmatpush3.bf16.msra.mxu0 %v8635_v17  ;;  %8666 = vmatpush3.bf16.msra.mxu1 %v8663_v23  ;;  %v3340_v3 = vsel %vm3327_vm14, %v9665_v43, %v9666_v48 }
 0x839   :  { %v9676_v2 = vunpack.i.h.bf16 %v9674_v41  ;;  %v9675_v36 = vunpack.i.l.bf16 %v9674_v41  ;;  %v9679_v50 = vpop.permute.xlu0 %9678  ;;  %8640 = vmatprep.subr.bf16.mxu0 %v8639_v29  ;;  %8668 = vmatprep.subr.bf16.mxu1 %v8667_v18  ;;  %v8671_v22 = vpack.c.bf16 %v3341_v54, %v3340_v3 }
 0x83a   :  { %v9681_v44 = vunpack.i.h.bf16 %v9679_v50  ;;  %v9680_v25 = vunpack.i.l.bf16 %v9679_v50 }
 0x83b   :  { %v3112_v38 = vsel %vm3096_vm13, %v9675_v36, %v9676_v2 }
 0x83c   :  { %v9689_v12 = vpop.permute.xlu1 %9688  ;;  %8642 = vmatpush3.bf16.msra.mxu0 %v8639_v29  ;;  %8670 = vmatpush3.bf16.msra.mxu1 %v8667_v18  ;;  %v3111_v5 = vsel %vm3096_vm13, %v9680_v25, %v9681_v44 }
 0x83d   :  { %v9691_v37 = vunpack.i.h.bf16 %v9689_v12  ;;  %v9690_v8 = vunpack.i.l.bf16 %v9689_v12  ;;  %v9684_v26 = vpop.permute.xlu0 %9683  ;;  %8672 = vmatprep.subr.bf16.mxu1 %v8671_v22  ;;  %v8643_v63 = vpack.c.bf16 %v3112_v38, %v3111_v5 }
 0x83e   :  { %v9686_v16 = vunpack.i.h.bf16 %v9684_v26  ;;  %v9685_v6 = vunpack.i.l.bf16 %v9684_v26 }
 0x83f   :  { %8644 = vmatprep.subr.bf16.mxu0 %v8643_v63  ;;  %v3343_v28 = vsel %vm3327_vm14, %v9690_v8, %v9691_v37  ;;  %v6971_v8 = vld [vmem:[%s13247_s16 + $0x2] ss:$0 sm:$0xff] }
 0x840   :  { %8646 = vmatpush3.bf16.msra.mxu0 %v8643_v63  ;;  %8674 = vmatpush3.bf16.msra.mxu1 %v8671_v22  ;;  %v3342_v45 = vsel %vm3327_vm14, %v9685_v6, %v9686_v16 }
 0x841   :  { %v8675_v39 = vpack.c.bf16 %v3343_v28, %v3342_v45 }
 0x843   :  { %7880 = vmatmul.mubr.f32.vlgmr.msra.gmra.mrb[20].mxu0 %v3025_v61  ;;  %8676 = vmatprep.subr.bf16.mxu1 %v8675_v39 }
 0x844   :  { %8678 = vmatpush3.bf16.msra.mxu1 %v8675_v39  ;;  %7882 = vmatprep.mubr.f32.mxu0 %v3026_v33 }
 0x847   :  { %7883 = vmatmul.mubr.f32.gmra.mrb[22].mxu0 %v3027_v60  ;;  %7924 = vmatmul.mubr.f32.vlgmr.msra.gmra.mrb[76].mxu1 %v3256_v35 }
 0x848   :  { %7885 = vmatprep.mubr.f32.mxu0 %v3028_v58  ;;  %7926 = vmatprep.mubr.f32.mxu1 %v3257_v59 }
 0x84b   :  { %7886 = vmatmul.mubr.f32.gmra.mrb[24].mxu0 %v3029_v15  ;;  %7927 = vmatmul.mubr.f32.gmra.mrb[78].mxu1 %v3258_v32 }
 0x84c   :  { %7888 = vmatprep.mubr.f32.mxu0 %v3030_v21  ;;  %7929 = vmatprep.mubr.f32.mxu1 %v3259_v14 }
 0x84f   :  { %7889 = vmatmul.mubr.f32.gmra.mrb[26].mxu0 %v3031_v52  ;;  %7930 = vmatmul.mubr.f32.gmra.mrb[80].mxu1 %v3260_v34 }
 0x850   :  { %7932 = vmatprep.mubr.f32.mxu1 %v3261_v40 }
 0x853   :  { %7933 = vmatmul.mubr.f32.gmra.mrb[82].mxu1 %v3262_v49 }
 0x87a   :  { %v7573_v56 = vpop.f32.mrb[36].mxu1 }
 0x87b   :  { %v1633_v24 = vpop.f32.mrb[37].mxu1  ;;  %v1678_v57 = vmul.f32 %v7573_v56, %v6969_v46 }
 0x87c   :  { %v1677_v17 = vmul.f32 %v6969_v46, %v1633_v24 }
 0x87e   :  { %v7576_v53 = vpop.f32.mrb[38].mxu1 }
 0x87f   :  { %v1643_v30 = vpop.f32.mrb[39].mxu1  ;;  %v1680_v4 = vmul.f32 %v7576_v53, %v6969_v46 }
 0x880   :  { %v1679_v1 = vmul.f32 %v6969_v46, %v1643_v30  ;;  %v6972_v30 = vld [vmem:[%s13247_s16 + $0x3] ss:$0 sm:$0xff] }
 0x884   :  { %v7579_v62 = vpop.f32.mrb[40].mxu1 }
 0x885   :  { %v1653_v31 = vpop.f32.mrb[41].mxu1  ;;  %v1682_v29 = vmul.f32 %v7579_v62, %v6969_v46 }
 0x886   :  { %v1681_v3 = vmul.f32 %v6969_v46, %v1653_v31 }
 0x888   :  { %v7582_v7 = vpop.f32.mrb[42].mxu1 }
 0x889   :  { %v1663_v27 = vpop.f32.mrb[43].mxu1  ;;  %v1684_v44 = vmul.f32 %v7582_v7, %v6969_v46 }
 0x88a   :  { %v1683_v38 = vmul.f32 %v6969_v46, %v1663_v27 }
 0x89a   :  { %v7617_v13 = vpop.f32.mrb[44].mxu1 }
 0x89b   :  { %v1900_v11 = vmul.f32 %v7617_v13, %v6970_v55  ;;  %v1855_v42 = vpop.f32.mrb[45].mxu1 }
 0x89c   :  { %v1899_v23 = vmul.f32 %v6970_v55, %v1855_v42 }
 0x89d   :  { %v1908_v20 = vadd.f32 %v1900_v11, %v1678_v57 }
 0x89e   :  { %v1907_v47 = vadd.f32 %v1899_v23, %v1677_v17  ;;  %v7620_v0 = vpop.f32.mrb[46].mxu1 }
 0x89f   :  { %v1902_v9 = vmul.f32 %v7620_v0, %v6970_v55  ;;  %v1865_v10 = vpop.f32.mrb[47].mxu1 }
 0x8a0   :  { %v1901_v19 = vmul.f32 %v6970_v55, %v1865_v10 }
 0x8a1   :  { %v1910_v51 = vadd.f32 %v1902_v9, %v1680_v4 }
 0x8a2   :  { %v1909_v48 = vadd.f32 %v1901_v19, %v1679_v1  ;;  %v7623_v43 = vpop.f32.mrb[48].mxu1 }
 0x8a3   :  { %v1904_v18 = vmul.f32 %v7623_v43, %v6970_v55  ;;  %v1875_v41 = vpop.f32.mrb[49].mxu1 }
 0x8a4   :  { %v1903_v54 = vmul.f32 %v6970_v55, %v1875_v41 }
 0x8a5   :  { %v1912_v2 = vadd.f32 %v1904_v18, %v1682_v29 }
 0x8a6   :  { %v1911_v36 = vadd.f32 %v1903_v54, %v1681_v3  ;;  %v7626_v50 = vpop.f32.mrb[50].mxu1 }
 0x8a7   :  { %v1906_v25 = vmul.f32 %v7626_v50, %v6970_v55  ;;  %v1885_v22 = vpop.f32.mrb[51].mxu1 }
 0x8a8   :  { %v1905_v12 = vmul.f32 %v6970_v55, %v1885_v22 }
 0x8a9   :  { %v1914_v5 = vadd.f32 %v1906_v25, %v1684_v44 }
 0x8aa   :  { %v1913_v37 = vadd.f32 %v1905_v12, %v1683_v38 }
 0x8ba   :  { %v7661_v26 = vpop.f32.mrb[52].mxu1 }
 0x8bb   :  { %v2131_v63 = vmul.f32 %v7661_v26, %v6971_v8  ;;  %v2086_v16 = vpop.f32.mrb[53].mxu1 }
 0x8bc   :  { %v2130_v6 = vmul.f32 %v6971_v8, %v2086_v16 }
 0x8bd   :  { %v2139_v28 = vadd.f32 %v2131_v63, %v1908_v20  ;;  %v6973_v63 = vld [vmem:[%s13247_s16 + $0x5] ss:$0 sm:$0xff] }
 0x8be   :  { %v2138_v61 = vadd.f32 %v2130_v6, %v1907_v47  ;;  %v7664_v45 = vpop.f32.mrb[54].mxu1 }
 0x8bf   :  { %v2133_v39 = vmul.f32 %v7664_v45, %v6971_v8  ;;  %v2096_v33 = vpop.f32.mrb[55].mxu1  ;;  %v6974_v45 = vld [vmem:[%s13247_s16 + $0x6] ss:$0 sm:$0xff] }
 0x8c0   :  { %v2132_v60 = vmul.f32 %v6971_v8, %v2096_v33 }
 0x8c1   :  { %v2141_v35 = vadd.f32 %v2133_v39, %v1910_v51 }
 0x8c2   :  { %v2140_v58 = vadd.f32 %v2132_v60, %v1909_v48  ;;  %v7667_v59 = vpop.f32.mrb[56].mxu1 }
 0x8c3   :  { %v2135_v15 = vmul.f32 %v7667_v59, %v6971_v8  ;;  %v2106_v32 = vpop.f32.mrb[57].mxu1 }
 0x8c4   :  { %v2134_v21 = vmul.f32 %v6971_v8, %v2106_v32 }
 0x8c5   :  { %v2143_v14 = vadd.f32 %v2135_v15, %v1912_v2 }
 0x8c6   :  { %v2142_v52 = vadd.f32 %v2134_v21, %v1911_v36  ;;  %v7670_v34 = vpop.f32.mrb[58].mxu1 }
 0x8c7   :  { %v2137_v40 = vmul.f32 %v7670_v34, %v6971_v8  ;;  %v2116_v49 = vpop.f32.mrb[59].mxu1 }
 0x8c8   :  { %v2136_v56 = vmul.f32 %v6971_v8, %v2116_v49 }
 0x8c9   :  { %v2145_v24 = vadd.f32 %v2137_v40, %v1914_v5 }
 0x8ca   :  { %v2144_v53 = vadd.f32 %v2136_v56, %v1913_v37 }
 0x8d6   :  { %v7705_v62 = vpop.f32.mrb[4].mxu0 }
 0x8d7   :  { %v2362_v31 = vmul.f32 %v7705_v62, %v6972_v30  ;;  %v2317_v7 = vpop.f32.mrb[5].mxu0 }
 0x8d8   :  { %v2361_v27 = vmul.f32 %v6972_v30, %v2317_v7 }
 0x8d9   :  { %v2370_v46 = vadd.f32 %v2362_v31, %v2139_v28 }
 0x8da   :  { %v7708_v55 = vpop.f32.mrb[6].mxu0  ;;  %v7749_v13 = vpop.f32.mrb[60].mxu1  ;;  %v2369_v57 = vadd.f32 %v2361_v27, %v2138_v61 }
 0x8db   :  { %v2364_v11 = vmul.f32 %v7708_v55, %v6972_v30  ;;  %v2491_v42 = vadd.f32 %v7749_v13, %v2370_v46  ;;  %v2327_v17 = vpop.f32.mrb[7].mxu0  ;;  %v2451_v23 = vpop.f32.mrb[61].mxu1 }
 0x8dc   :  { %v2363_v20 = vmul.f32 %v6972_v30, %v2327_v17  ;;  %v2490_v47 = vadd.f32 %v2451_v23, %v2369_v57 }
 0x8dd   :  { %v2372_v0 = vadd.f32 %v2364_v11, %v2141_v35 }
 0x8de   :  { %v7711_v4 = vpop.f32.mrb[8].mxu0  ;;  %v7752_v9 = vpop.f32.mrb[62].mxu1  ;;  %v2371_v10 = vadd.f32 %v2363_v20, %v2140_v58 }
 0x8df   :  { %v2366_v1 = vmul.f32 %v7711_v4, %v6972_v30  ;;  %v2493_v19 = vadd.f32 %v7752_v9, %v2372_v0  ;;  %v2337_v51 = vpop.f32.mrb[9].mxu0  ;;  %v2461_v48 = vpop.f32.mrb[63].mxu1 }
 0x8e0   :  { %v2365_v43 = vmul.f32 %v6972_v30, %v2337_v51  ;;  %v2492_v29 = vadd.f32 %v2461_v48, %v2371_v10 }
 0x8e1   :  { %v2374_v18 = vadd.f32 %v2366_v1, %v2143_v14 }
 0x8e2   :  { %v7714_v41 = vpop.f32.mrb[10].mxu0  ;;  %v7755_v3 = vpop.f32.mrb[64].mxu1  ;;  %v2373_v54 = vadd.f32 %v2365_v43, %v2142_v52 }
 0x8e3   :  { %v2368_v2 = vmul.f32 %v7714_v41, %v6972_v30  ;;  %v2495_v36 = vadd.f32 %v7755_v3, %v2374_v18  ;;  %v2347_v50 = vpop.f32.mrb[11].mxu0  ;;  %v2471_v44 = vpop.f32.mrb[65].mxu1  ;;  %v6975_v3 = vld [vmem:[%s13247_s16 + $0x7] ss:$0 sm:$0xff] }
 0x8e4   :  { %v2367_v25 = vmul.f32 %v6972_v30, %v2347_v50  ;;  %v2494_v22 = vadd.f32 %v2471_v44, %v2373_v54  ;;  %v6976_v44 = vld [vmem:[%s13247_s16 + $0x8] ss:$0 sm:$0xff] }
 0x8e5   :  { %v2376_v38 = vadd.f32 %v2368_v2, %v2145_v24 }
 0x8e6   :  { %v7758_v12 = vpop.f32.mrb[66].mxu1  ;;  %v2375_v5 = vadd.f32 %v2367_v25, %v2144_v53 }
 0x8e7   :  { %v2497_v37 = vadd.f32 %v7758_v12, %v2376_v38  ;;  %v2481_v8 = vpop.f32.mrb[67].mxu1 }
 0x8e8   :  { %v2496_v26 = vadd.f32 %v2481_v8, %v2375_v5 }
 0x8f6   :  { %v7793_v16 = vpop.f32.mrb[12].mxu0 }
 0x8f7   :  { %v2778_v6 = vmul.f32 %v7793_v16, %v6973_v63  ;;  %v2733_v28 = vpop.f32.mrb[13].mxu0 }
 0x8f8   :  { %v2777_v61 = vmul.f32 %v6973_v63, %v2733_v28  ;;  %v3497_v28 = vpop.permute.xlu0 %3496 }
 0x8f9   :  { %v2786_v39 = vadd.f32 %v2778_v6, %v2491_v42  ;;  %v3502_v6 = vpop.permute.xlu1 %3501 }
 0x8fa   :  { %v2785_v33 = vadd.f32 %v2777_v61, %v2490_v47  ;;  %v7796_v60 = vpop.f32.mrb[14].mxu0  ;;  %v7837_v35 = vpop.f32.mrb[68].mxu1 }
 0x8fb   :  { %v2780_v58 = vmul.f32 %v7796_v60, %v6973_v63  ;;  %v3009_v59 = vmul.f32 %v7837_v35, %v6974_v45  ;;  %v2743_v15 = vpop.f32.mrb[15].mxu0  ;;  %v2964_v32 = vpop.f32.mrb[69].mxu1 }
 0x8fc   :  { %v2779_v21 = vmul.f32 %v6973_v63, %v2743_v15  ;;  %v3008_v14 = vmul.f32 %v6974_v45, %v2964_v32 }
 0x8fd   :  { %v2788_v52 = vadd.f32 %v2780_v58, %v2493_v19  ;;  %v3017_v34 = vadd.f32 %v3009_v59, %v2786_v39 }
 0x8fe   :  { %v2787_v40 = vadd.f32 %v2779_v21, %v2492_v29  ;;  %v3016_v49 = vadd.f32 %v3008_v14, %v2785_v33  ;;  %v7799_v56 = vpop.f32.mrb[16].mxu0  ;;  %v7840_v24 = vpop.f32.mrb[70].mxu1 }
 0x8ff   :  { %v2782_v53 = vmul.f32 %v7799_v56, %v6973_v63  ;;  %v3011_v30 = vmul.f32 %v7840_v24, %v6974_v45  ;;  %v2753_v62 = vpop.f32.mrb[17].mxu0  ;;  %v2974_v31 = vpop.f32.mrb[71].mxu1 }
 0x900   :  { %v2781_v7 = vmul.f32 %v6973_v63, %v2753_v62  ;;  %v3010_v27 = vmul.f32 %v6974_v45, %v2974_v31 }
 0x901   :  { %v2790_v46 = vadd.f32 %v2782_v53, %v2495_v36  ;;  %v3019_v55 = vadd.f32 %v3011_v30, %v2788_v52 }
 0x902   :  { %v2789_v13 = vadd.f32 %v2781_v7, %v2494_v22  ;;  %v3018_v57 = vadd.f32 %v3010_v27, %v2787_v40  ;;  %v7802_v11 = vpop.f32.mrb[18].mxu0  ;;  %v7843_v42 = vpop.f32.mrb[72].mxu1 }
 0x903   :  { %v2784_v17 = vmul.f32 %v7802_v11, %v6973_v63  ;;  %v3013_v23 = vmul.f32 %v7843_v42, %v6974_v45  ;;  %v2763_v20 = vpop.f32.mrb[19].mxu0  ;;  %v2984_v47 = vpop.f32.mrb[73].mxu1 }
 0x904   :  { %v2783_v0 = vmul.f32 %v6973_v63, %v2763_v20  ;;  %v3012_v4 = vmul.f32 %v6974_v45, %v2984_v47  ;;  %v3512_v11 = vpop.permute.xlu1 %3511  ;;  %v3507_v42 = vpop.permute.xlu0 %3506 }
 0x905   :  { %v2792_v9 = vadd.f32 %v2784_v17, %v2497_v37  ;;  %v3021_v10 = vadd.f32 %v3013_v23, %v2790_v46 }
 0x906   :  { %v2791_v1 = vadd.f32 %v2783_v0, %v2496_v26  ;;  %v3020_v19 = vadd.f32 %v3012_v4, %v2789_v13  ;;  %v7846_v51 = vpop.f32.mrb[74].mxu1  ;;  %v13285_v13 = vmov 0.0  }
 0x907   :  { %v3015_v48 = vmul.f32 %v7846_v51, %v6974_v45  ;;  %v2994_v43 = vpop.f32.mrb[75].mxu1 }
 0x908   :  { %v3014_v29 = vmul.f32 %v6974_v45, %v2994_v43  ;;  %v3522_v43 = vpop.permute.xlu1 %3521 }
 0x909   :  { %v3023_v18 = vadd.f32 %v3015_v48, %v2792_v9 }
 0x90a   :  { %v3022_v41 = vadd.f32 %v3014_v29, %v2791_v1  ;;  %v3517_v29 = vpop.permute.xlu0 %3516 }
 0x916   :  { %v7881_v54 = vpop.f32.mrb[20].mxu0 }
 0x917   :  { %v3240_v2 = vmul.f32 %v7881_v54, %v6975_v3  ;;  %v3195_v36 = vpop.f32.mrb[21].mxu0 }
 0x918   :  { %v3239_v50 = vmul.f32 %v6975_v3, %v3195_v36 }
 0x919   :  { %v3248_v25 = vadd.f32 %v3240_v2, %v3017_v34 }
 0x91a   :  { %v3247_v22 = vadd.f32 %v3239_v50, %v3016_v49  ;;  %v7884_v38 = vpop.f32.mrb[22].mxu0  ;;  %v7925_v12 = vpop.f32.mrb[76].mxu1 }
 0x91b   :  { %v3242_v5 = vmul.f32 %v7884_v38, %v6975_v3  ;;  %v3471_v37 = vmul.f32 %v7925_v12, %v6976_v44  ;;  %v3205_v8 = vpop.f32.mrb[23].mxu0  ;;  %v3426_v26 = vpop.f32.mrb[77].mxu1 }
 0x91c   :  { %v3241_v63 = vmul.f32 %v6975_v3, %v3205_v8  ;;  %v3470_v16 = vmul.f32 %v6976_v44, %v3426_v26 }
 0x91d   :  { %v3250_v61 = vadd.f32 %v3242_v5, %v3019_v55  ;;  %v3479_v45 = vadd.f32 %v3471_v37, %v3248_v25 }
 0x91e   :  { %v3249_v39 = vadd.f32 %v3241_v63, %v3018_v57  ;;  %v3478_v33 = vadd.f32 %v3470_v16, %v3247_v22  ;;  %v7887_v60 = vpop.f32.mrb[24].mxu0  ;;  %v7928_v35 = vpop.f32.mrb[78].mxu1 }
 0x91f   :  { %v3535_v58 = vadd.f32 %v3502_v6, %v3479_v45  ;;  %v3244_v59 = vmul.f32 %v7887_v60, %v6975_v3  ;;  %v3473_v15 = vmul.f32 %v7928_v35, %v6976_v44  ;;  %v3215_v32 = vpop.f32.mrb[25].mxu0  ;;  %v3436_v21 = vpop.f32.mrb[79].mxu1 }
 0x920   :  { %v3534_v14 = vadd.f32 %v3497_v28, %v3478_v33  ;;  %v3243_v52 = vmul.f32 %v6975_v3, %v3215_v32  ;;  %v3472_v34 = vmul.f32 %v6976_v44, %v3436_v21 }
 0x921   :  { %v3543_v40 = vmax.f32 %v3535_v58, 0.0  ;;  %v3252_v49 = vadd.f32 %v3244_v59, %v3021_v10  ;;  %v3481_v56 = vadd.f32 %v3473_v15, %v3250_v61  ;;  %v3574_v59 = vld [vmem:[%s13248_s17] sm:$0xff] }
 0x922   :  { %v3542_v24 = vmax.f32 %v3534_v14, 0.0  ;;  %v3251_v53 = vadd.f32 %v3243_v52, %v3020_v19  ;;  %v3480_v30 = vadd.f32 %v3472_v34, %v3249_v39  ;;  %v7890_v62 = vpop.f32.mrb[26].mxu0  ;;  %v7931_v31 = vpop.f32.mrb[80].mxu1  ;;  %7951 = vmatprep.mubr.msk.f32.mxu0 %vm3642_vm15, %v3574_v59  ;;  %v3749_v14 = vld [vmem:[%s13248_s17 + $0x20] sm:$0xff] }
 0x923   :  { %v3246_v7 = vmul.f32 %v7890_v62, %v6975_v3  ;;  %v3475_v27 = vmul.f32 %v7931_v31, %v6976_v44  ;;  %v3225_v46 = vpop.f32.mrb[27].mxu0  ;;  %v3446_v55 = vpop.f32.mrb[81].mxu1  ;;  %v9692_v57 = vpack.i.bf16 %v3543_v40, %v13285_v13  ;;  %v3537_v54 = vadd.f32 %v3512_v11, %v3481_v56  ;;  %7973 = vmatprep.mubr.msk.f32.mxu1 %vm3642_vm15, %v3749_v14 }
 0x924   :  { %v3245_v17 = vmul.f32 %v6975_v3, %v3225_v46  ;;  %v3474_v23 = vmul.f32 %v6976_v44, %v3446_v55  ;;  %v9722_v20 = vpack.i.bf16 %v3542_v24, %v13285_v13  ;;  %v3536_v2 = vadd.f32 %v3507_v42, %v3480_v30 }
 0x925   :  { %v3254_v47 = vadd.f32 %v3246_v7, %v3023_v18  ;;  %v3483_v0 = vadd.f32 %v3475_v27, %v3252_v49  ;;  %9693 = vrot.lane.b32.xlu1 %v9692_v57, %s10210_s10  ;;  %v3532_v18 = vpop.permute.xlu1 %3531  ;;  %v12146_v22 = vpack.i.bf16 %v13285_v13, %v3543_v40  ;;  %v3545_v38 = vmax.f32 %v3537_v54, 0.0 }
 0x926   :  { %v3253_v4 = vadd.f32 %v3245_v17, %v3022_v41  ;;  %v3482_v9 = vadd.f32 %v3474_v23, %v3251_v53  ;;  %9723 = vrot.lane.b32.xlu0 %v9722_v20, %s10210_s10  ;;  %v7934_v10 = vpop.f32.mrb[82].mxu1  ;;  %v3527_v41 = vpop.permute.xlu0 %3526  ;;  %v3544_v12 = vmax.f32 %v3536_v2, 0.0  ;;  %v12149_v5 = vpack.i.bf16 %v13285_v13, %v3542_v24 }
 0x927   :  { %v3477_v1 = vmul.f32 %v7934_v10, %v6976_v44  ;;  %v3456_v19 = vpop.f32.mrb[83].mxu1  ;;  %v3539_v36 = vadd.f32 %v3522_v43, %v3483_v0  ;;  %v12159_v16 = vpack.c.bf16 %v3543_v40, %v3542_v24  ;;  %v9752_v45 = vpack.i.bf16 %v3545_v38, %v13285_v13  ;;  %v5022_v43 = vld [vmem:[%s13249_s18 + $0x10] sm:$0xff] }
 0x928   :  { %v3476_v51 = vmul.f32 %v6976_v44, %v3456_v19  ;;  %v3538_v50 = vadd.f32 %v3517_v29, %v3482_v9  ;;  %v12161_v6 = vpack.c.bf16 %v3545_v38, %v3544_v12  ;;  %v9777_v39 = vpack.i.bf16 %v3544_v12, %v13285_v13  ;;  %v5021_v9 = vld [vmem:[%s13249_s18 + $0x8] sm:$0xff] }
 0x929   :  { %v3485_v48 = vadd.f32 %v3477_v1, %v3254_v47  ;;  %9698 = vrot.lane.b32.xlu1 %v9692_v57, %s10211_s11  ;;  %v3547_v37 = vmax.f32 %v3539_v36, 0.0  ;;  %v9772_v33 = vpack.i.bf16 %v13285_v13, %v3545_v38  ;;  %v9797_v60 = vpack.i.bf16 %v13285_v13, %v3544_v12  ;;  %v5020_v1 = vld [vmem:[%s13249_s18] sm:$0xff] }
 0x92a   :  { %v3484_v3 = vadd.f32 %v3476_v51, %v3253_v4  ;;  %9728 = vrot.lane.b32.xlu0 %v9722_v20, %s10211_s11  ;;  %v3546_v8 = vmax.f32 %v3538_v50, 0.0  ;;  %v5023_v51 = vld [vmem:[%s13249_s18 + $0x18] sm:$0xff]  ;;  %s10176_s18 = scalar_lea.vmem %s6924_s0, 32 }
 0x92b   :  { %v3541_v25 = vadd.f32 %v3532_v18, %v3485_v48  ;;  %v9802_v35 = vpack.i.bf16 %v3547_v37, %v13285_v13  ;;  %v9882_v52 = vpack.i.bf16 %v13285_v13, %v3547_v37  ;;  %p10177_p0 = scmp.ne.s32.totalorder %s6924_s0, %s10176_s18  ;;  %p10182_p2 = scmp.lt.s32.totalorder %s10176_s18, %s10176_s18 }
 0x92c   :  { %v3540_v44 = vadd.f32 %v3527_v41, %v3484_v3  ;;  %v12163_v28 = vpack.c.bf16 %v3547_v37, %v3546_v8  ;;  %v9822_v58 = vpack.i.bf16 %v3546_v8, %v13285_v13  ;;  %v9877_v21 = vpack.i.bf16 %v13285_v13, %v3546_v8 }
 0x92d   :  { %9703 = vrot.lane.b32.xlu1 %v9692_v57, %s10212_s9  ;;  %v3549_v26 = vmax.f32 %v3541_v25, 0.0  ;;  %p10183_p3 = por %p10182_p2, %p10181_p1 }
 0x92e   :  { %9733 = vrot.lane.b32.xlu0 %v9722_v20, %s10212_s9  ;;  %v12151_v63 = vmax.f32 %v3540_v44, 0.0 }
 0x92f   :  { %v9842_v15 = vpack.i.bf16 %v3549_v26, %v13285_v13  ;;  %v9907_v34 = vpack.i.bf16 %v13285_v13, %v3549_v26  ;;  %p10184_p4 = pnand %p10183_p3, %p10177_p0 }
 0x930   :  { %v12166_v61 = vpack.c.bf16 %v3549_v26, %v12151_v63  ;;  %v9862_v32 = vpack.i.bf16 %v12151_v63, %v13285_v13  ;;  %v9962_v40 = vpack.i.bf16 %v13285_v13, %v12151_v63 }
 0x931   :  { %9708 = vrot.lane.b32.xlu1 %v9692_v57, %s10213_s27 }
 0x932   :  { %9738 = vrot.lane.b32.xlu0 %v9722_v20, %s10213_s27 }
 0x935   :  { %9713 = vrot.lane.b32.xlu1 %v12146_v22, %s10214_s5 }
 0x936   :  { %9743 = vrot.lane.b32.xlu0 %v12149_v5, %s10214_s5 }
 0x939   :  { %9718 = vrot.lane.b32.xlu1 %v12146_v22, %s10215_s13 }
 0x93a   :  { %9748 = vrot.lane.b32.xlu0 %v12149_v5, %s10215_s13 }
 0x93d   :  { %9753 = vrot.lane.b32.xlu1 %v9752_v45, %s10210_s10 }
 0x93e   :  { %9778 = vrot.lane.b32.xlu0 %v9777_v39, %s10210_s10 }
 0x941   :  { %9758 = vrot.lane.b32.xlu1 %v9752_v45, %s10211_s11 }
 0x942   :  { %9783 = vrot.lane.b32.xlu0 %v9777_v39, %s10211_s11 }
 0x945   :  { %9763 = vrot.lane.b32.xlu1 %v9752_v45, %s10212_s9 }
 0x946   :  { %9788 = vrot.lane.b32.xlu0 %v9777_v39, %s10212_s9 }
 0x949   :  { %9768 = vrot.lane.b32.xlu1 %v9752_v45, %s10213_s27 }
 0x94a   :  { %9793 = vrot.lane.b32.xlu0 %v9777_v39, %s10213_s27 }
 0x94d   :  { %9773 = vrot.lane.b32.xlu1 %v9772_v33, %s10214_s5 }
 0x94e   :  { %9798 = vrot.lane.b32.xlu0 %v9797_v60, %s10214_s5 }
 0x951   :  { %9803 = vrot.lane.b32.xlu1 %v9802_v35, %s10210_s10 }
 0x952   :  { %9823 = vrot.lane.b32.xlu0 %v9822_v58, %s10210_s10 }
 0x955   :  { %9808 = vrot.lane.b32.xlu1 %v9802_v35, %s10211_s11 }
 0x956   :  { %9828 = vrot.lane.b32.xlu0 %v9822_v58, %s10211_s11 }
 0x959   :  { %9813 = vrot.lane.b32.xlu1 %v9802_v35, %s10212_s9 }
 0x95a   :  { %9833 = vrot.lane.b32.xlu0 %v9822_v58, %s10212_s9 }
 0x95d   :  { %9818 = vrot.lane.b32.xlu1 %v9802_v35, %s10213_s27 }
 0x95e   :  { %9838 = vrot.lane.b32.xlu0 %v9822_v58, %s10213_s27 }
 0x961   :  { %9843 = vrot.lane.b32.xlu1 %v9842_v15, %s10210_s10 }
 0x962   :  { %9863 = vrot.lane.b32.xlu0 %v9862_v32, %s10210_s10 }
 0x965   :  { %9848 = vrot.lane.b32.xlu1 %v9842_v15, %s10211_s11 }
 0x966   :  { %9868 = vrot.lane.b32.xlu0 %v9797_v60, %s10215_s13 }
 0x969   :  { %9853 = vrot.lane.b32.xlu1 %v9842_v15, %s10212_s9 }
 0x96a   :  { %9878 = vrot.lane.b32.xlu0 %v9877_v21, %s10214_s5 }
 0x96d   :  { %9858 = vrot.lane.b32.xlu1 %v9842_v15, %s10213_s27 }
 0x96e   :  { %9888 = vrot.lane.b32.xlu0 %v9862_v32, %s10211_s11 }
 0x971   :  { %9873 = vrot.lane.b32.xlu1 %v9772_v33, %s10215_s13 }
 0x972   :  { %9893 = vrot.lane.b32.xlu0 %v9862_v32, %s10212_s9 }
 0x975   :  { %9883 = vrot.lane.b32.xlu1 %v9882_v52, %s10214_s5 }
 0x976   :  { %9898 = vrot.lane.b32.xlu0 %v9877_v21, %s10215_s13 }
 0x979   :  { %9903 = vrot.lane.b32.xlu1 %v9882_v52, %s10215_s13 }
 0x97a   :  { %9918 = vrot.lane.b32.xlu0 %v12149_v5, %s10216_s12 }
 0x97d   :  { %9908 = vrot.lane.b32.xlu1 %v9907_v34, %s10214_s5 }
 0x97e   :  { %9928 = vrot.lane.b32.xlu0 %v9862_v32, %s10213_s27 }
 0x981   :  { %9913 = vrot.lane.b32.xlu1 %v9907_v34, %s10215_s13 }
 0x982   :  { %9933 = vrot.lane.b32.xlu0 %v12149_v5, %s10217_s2 }
 0x985   :  { %9923 = vrot.lane.b32.xlu1 %v12146_v22, %s10216_s12 }
 0x986   :  { %9943 = vrot.lane.b32.xlu0 %v9797_v60, %s10216_s12 }
 0x989   :  { %9938 = vrot.lane.b32.xlu1 %v12146_v22, %s10217_s2 }
 0x98a   :  { %9953 = vrot.lane.b32.xlu0 %v9797_v60, %s10217_s2 }
 0x98d   :  { %9948 = vrot.lane.b32.xlu1 %v9772_v33, %s10216_s12 }
 0x98e   :  { %9963 = vrot.lane.b32.xlu0 %v9962_v40, %s10214_s5 }
 0x991   :  { %9958 = vrot.lane.b32.xlu1 %v9772_v33, %s10217_s2 }
 0x992   :  { %9968 = vrot.lane.b32.xlu0 %v9962_v40, %s10215_s13 }
 0x995   :  { %9978 = vrot.lane.b32.xlu1 %v9882_v52, %s10216_s12 }
 0x996   :  { %9973 = vrot.lane.b32.xlu0 %v9877_v21, %s10216_s12 }
 0x997   :  { %v9694_v49 = vpop.permute.xlu1 %9693 }
 0x998   :  { %v9696_v56 = vunpack.i.h.bf16 %v9694_v49  ;;  %v9695_v24 = vunpack.i.l.bf16 %v9694_v49  ;;  %v9724_v53 = vpop.permute.xlu0 %9723 }
 0x999   :  { %v9726_v30 = vunpack.i.h.bf16 %v9724_v53  ;;  %v9725_v62 = vunpack.i.l.bf16 %v9724_v53  ;;  %9988 = vrot.lane.b32.xlu1 %v9882_v52, %s10217_s2 }
 0x99a   :  { %9983 = vrot.lane.b32.xlu0 %v9877_v21, %s10217_s2  ;;  %v3627_v31 = vsel %vm1534_vm8, %v9695_v24, %v9696_v56 }
 0x99b   :  { %v9699_v7 = vpop.permute.xlu1 %9698  ;;  %v3626_v27 = vsel %vm1534_vm8, %v9725_v62, %v9726_v30 }
 0x99c   :  { %v9701_v46 = vunpack.i.h.bf16 %v9699_v7  ;;  %v9700_v55 = vunpack.i.l.bf16 %v9699_v7  ;;  %v9729_v57 = vpop.permute.xlu0 %9728  ;;  %v8679_v11 = vpack.c.bf16 %v3627_v31, %v3626_v27 }
 0x99d   :  { %v9731_v42 = vunpack.i.h.bf16 %v9729_v57  ;;  %v9730_v17 = vunpack.i.l.bf16 %v9729_v57  ;;  %9993 = vrot.lane.b32.xlu1 %v9907_v34, %s10216_s12 }
 0x99e   :  { %8680 = vmatprep.subr.bf16.mxu0 %v8679_v11  ;;  %9998 = vrot.lane.b32.xlu0 %v9962_v40, %s10216_s12  ;;  %v3786_v23 = vsel %vm699_vm4, %v9700_v55, %v9701_v46 }
 0x99f   :  { %v12249_v20 = vpop.permute.xlu1 %9703  ;;  %8682 = vmatpush3.bf16.msra.mxu0 %v8679_v11  ;;  %v3785_v47 = vsel %vm699_vm4, %v9730_v17, %v9731_v42 }
 0x9a0   :  { %v12252_v0 = vpop.permute.xlu0 %9733  ;;  %v8695_v4 = vpack.c.bf16 %v3786_v23, %v3785_v47 }
 0x9a1   :  { %10008 = vrot.lane.b32.xlu1 %v9907_v34, %s10217_s2 }
 0x9a2   :  { %8696 = vmatprep.subr.bf16.mxu1 %v8695_v4  ;;  %10003 = vrot.lane.b32.xlu0 %v9962_v40, %s10217_s2 }
 0x9a3   :  { %v12259_v10 = vpop.permute.xlu1 %9708  ;;  %8698 = vmatpush3.bf16.msra.mxu1 %v8695_v4 }
 0x9a4   :  { %v12264_v19 = vpop.permute.xlu0 %9738 }
 0x9a5   :  { %5031 = vperm.xlu1 %9050, %v5021_v9  }
 0x9a6   :  { %5026 = vperm.xlu0 %9051, %v5020_v1  }
 0x9a7   :  { %v9714_v48 = vpop.permute.xlu1 %9713 }
 0x9a8   :  { %v9716_v29 = vunpack.i.h.bf16 %v9714_v48  ;;  %v9715_v3 = vunpack.i.l.bf16 %v9714_v48  ;;  %v9744_v18 = vpop.permute.xlu0 %9743 }
 0x9a9   :  { %v9746_v41 = vunpack.i.h.bf16 %v9744_v18  ;;  %v9745_v54 = vunpack.i.l.bf16 %v9744_v18  ;;  %5041 = vperm.xlu1 %9050, %v5023_v51  }
 0x9aa   :  { %5036 = vperm.xlu0 %9051, %v5022_v43   ;;  %v4409_v2 = vsel %vm2634_vm11, %v9715_v3, %v9716_v29 }
 0x9ab   :  { %v9719_v36 = vpop.permute.xlu1 %9718  ;;  %v4408_v50 = vsel %vm2634_vm11, %v9745_v54, %v9746_v41 }
 0x9ac   :  { %v9721_v25 = vunpack.i.h.bf16 %v9719_v36  ;;  %v9720_v44 = vunpack.i.l.bf16 %v9719_v36  ;;  %v9749_v22 = vpop.permute.xlu0 %9748  ;;  %v12274_v38 = vpack.c.bf16 %v4409_v2, %v4408_v50 }
 0x9ad   :  { %v9751_v12 = vunpack.i.h.bf16 %v9749_v22  ;;  %v9750_v5 = vunpack.i.l.bf16 %v9749_v22  ;;  %v9736_v22 = vunpack.i.h.bf16 %v12252_v0 }
 0x9ae   :  { %v4571_v37 = vsel %vm2865_vm12, %v9720_v44, %v9721_v25  ;;  %v9706_v25 = vunpack.i.h.bf16 %v12249_v20  ;;  %v9705_v44 = vunpack.i.l.bf16 %v12249_v20 }
 0x9af   :  { %v9754_v8 = vpop.permute.xlu1 %9753  ;;  %v4570_v26 = vsel %vm2865_vm12, %v9750_v5, %v9751_v12  ;;  %v9735_v12 = vunpack.i.l.bf16 %v12252_v0 }
 0x9b0   :  { %v9756_v63 = vunpack.i.h.bf16 %v9754_v8  ;;  %v9755_v45 = vunpack.i.l.bf16 %v9754_v8  ;;  %v9779_v39 = vpop.permute.xlu0 %9778  ;;  %v12278_v33 = vpack.c.bf16 %v4571_v37, %v4570_v26  ;;  %v3948_v0 = vsel %vm1987_vm10, %v9705_v44, %v9706_v25 }
 0x9b1   :  { %v9781_v60 = vunpack.i.h.bf16 %v9779_v39  ;;  %v9780_v35 = vunpack.i.l.bf16 %v9779_v39 }
 0x9b2   :  { %v3629_v58 = vsel %vm1534_vm8, %v9755_v45, %v9756_v63 }
 0x9b3   :  { %v9759_v59 = vpop.permute.xlu1 %9758  ;;  %v3628_v15 = vsel %vm1534_vm8, %v9780_v35, %v9781_v60 }
 0x9b4   :  { %v9761_v32 = vunpack.i.h.bf16 %v9759_v59  ;;  %v9760_v21 = vunpack.i.l.bf16 %v9759_v59  ;;  %v9784_v14 = vpop.permute.xlu0 %9783  ;;  %v8683_v52 = vpack.c.bf16 %v3629_v58, %v3628_v15 }
 0x9b5   :  { %v9786_v34 = vunpack.i.h.bf16 %v9784_v14  ;;  %v9785_v40 = vunpack.i.l.bf16 %v9784_v14 }
 0x9b6   :  { %8684 = vmatprep.subr.bf16.mxu0 %v8683_v52  ;;  %v3788_v49 = vsel %vm699_vm4, %v9760_v21, %v9761_v32  ;;  %v3947_v32 = vsel %vm1987_vm10, %v9735_v12, %v9736_v22 }
 0x9b7   :  { %v12283_v56 = vpop.permute.xlu1 %9763  ;;  %8686 = vmatpush3.bf16.msra.mxu0 %v8683_v52  ;;  %v3787_v24 = vsel %vm699_vm4, %v9785_v40, %v9786_v34  ;;  %v8711_v52 = vpack.c.bf16 %v3948_v0, %v3947_v32  ;;  %v3750_v0 = vld [vmem:[%s13248_s17 + $0x28] sm:$0xff] }
 0x9b8   :  { %v9789_v53 = vpop.permute.xlu0 %9788  ;;  %v8699_v30 = vpack.c.bf16 %v3788_v49, %v3787_v24  ;;  %v9766_v63 = vunpack.i.h.bf16 %v12283_v56  ;;  %v9765_v60 = vunpack.i.l.bf16 %v12283_v56 }
 0x9b9   :  { %v9791_v35 = vunpack.i.h.bf16 %v9789_v53  ;;  %v9790_v58 = vunpack.i.l.bf16 %v9789_v53 }
 0x9ba   :  { %8700 = vmatprep.subr.bf16.mxu1 %v8699_v30  ;;  %v3950_v40 = vsel %vm1987_vm10, %v9765_v60, %v9766_v63 }
 0x9bb   :  { %v12286_v62 = vpop.permute.xlu1 %9768  ;;  %8702 = vmatpush3.bf16.msra.mxu1 %v8699_v30  ;;  %v3949_v34 = vsel %vm1987_vm10, %v9790_v58, %v9791_v35 }
 0x9bc   :  { %v12288_v31 = vpop.permute.xlu0 %9793 }
 0x9bd   :  { %v9796_v25 = vunpack.i.h.bf16 %v12288_v31  ;;  %v9795_v44 = vunpack.i.l.bf16 %v12288_v31 }
 0x9bf   :  { %v12290_v7 = vpop.permute.xlu1 %9773  ;;  %v4111_v58 = vsel %vm2218_vm9, %v9795_v44, %v9796_v25 }
 0x9c0   :  { %v12292_v27 = vpop.permute.xlu0 %9798 }
 0x9c3   :  { %v9804_v46 = vpop.permute.xlu1 %9803 }
 0x9c4   :  { %v9806_v55 = vunpack.i.h.bf16 %v9804_v46  ;;  %v9805_v57 = vunpack.i.l.bf16 %v9804_v46  ;;  %v9824_v11 = vpop.permute.xlu0 %9823  ;;  %v3575_v46 = vld [vmem:[%s13248_s17 + $0x8] sm:$0xff] }
 0x9c5   :  { %v9826_v42 = vunpack.i.h.bf16 %v9824_v11  ;;  %v9825_v17 = vunpack.i.l.bf16 %v9824_v11 }
 0x9c6   :  { %v3631_v23 = vsel %vm1534_vm8, %v9805_v57, %v9806_v55  ;;  %v9711_v55 = vunpack.i.h.bf16 %v12259_v10  ;;  %v9710_v57 = vunpack.i.l.bf16 %v12259_v10 }
 0x9c7   :  { %v9809_v47 = vpop.permute.xlu1 %9808  ;;  %v3630_v4 = vsel %vm1534_vm8, %v9825_v17, %v9826_v42  ;;  %v3576_v42 = vld [vmem:[%s13248_s17 + $0x10] sm:$0xff]  ;;  %v9741_v17 = vunpack.i.h.bf16 %v12264_v19 }
 0x9c8   :  { %v9811_v9 = vunpack.i.h.bf16 %v9809_v47  ;;  %v9810_v1 = vunpack.i.l.bf16 %v9809_v47  ;;  %v9829_v51 = vpop.permute.xlu0 %9828  ;;  %v8687_v48 = vpack.c.bf16 %v3631_v23, %v3630_v4  ;;  %v9740_v23 = vunpack.i.l.bf16 %v12264_v19 }
 0x9c9   :  { %v9831_v43 = vunpack.i.h.bf16 %v9829_v51  ;;  %v9830_v29 = vunpack.i.l.bf16 %v9829_v51  ;;  %v8715_v47 = vpack.c.bf16 %v3950_v40, %v3949_v34  ;;  %v4110_v19 = vsel %vm2218_vm9, %v9710_v57, %v9711_v55  ;;  %v3751_v40 = vld [vmem:[%s13248_s17 + $0x30] sm:$0xff] }
 0x9ca   :  { %8688 = vmatprep.subr.bf16.mxu0 %v8687_v48  ;;  %v3790_v3 = vsel %vm699_vm4, %v9810_v1, %v9811_v9  ;;  %v3913_v57 = vld [vmem:[%s13248_s17 + $0x50] sm:$0xff] }
 0x9cb   :  { %v9814_v18 = vpop.permute.xlu1 %9813  ;;  %8690 = vmatpush3.bf16.msra.mxu0 %v8687_v48  ;;  %v3789_v41 = vsel %vm699_vm4, %v9830_v29, %v9831_v43  ;;  %v3577_v48 = vld [vmem:[%s13248_s17 + $0x18] sm:$0xff]  ;;  %v3911_v29 = vld [vmem:[%s13248_s17 + $0x40] sm:$0xff] }
 0x9cc   :  { %v9834_v54 = vpop.permute.xlu0 %9833  ;;  %v8703_v2 = vpack.c.bf16 %v3790_v3, %v3789_v41  ;;  %v9816_v49 = vunpack.i.h.bf16 %v9814_v18  ;;  %v9815_v56 = vunpack.i.l.bf16 %v9814_v18  ;;  %v9771_v3 = vunpack.i.h.bf16 %v12286_v62 }
 0x9cd   :  { %v9836_v24 = vunpack.i.h.bf16 %v9834_v54  ;;  %v9835_v53 = vunpack.i.l.bf16 %v9834_v54  ;;  %v4109_v54 = vsel %vm2218_vm9, %v9740_v23, %v9741_v17 }
 0x9ce   :  { %8704 = vmatprep.subr.bf16.mxu1 %v8703_v2  ;;  %v3952_v51 = vsel %vm1987_vm10, %v9815_v56, %v9816_v49  ;;  %v8727_v31 = vpack.c.bf16 %v4110_v19, %v4109_v54  ;;  %v3752_v56 = vld [vmem:[%s13248_s17 + $0x38] sm:$0xff]  ;;  %v9800_v19 = vunpack.i.l.bf16 %v12292_v27 }
 0x9cf   :  { %v12298_v36 = vpop.permute.xlu1 %9818  ;;  %8706 = vmatpush3.bf16.msra.mxu1 %v8703_v2  ;;  %v3951_v10 = vsel %vm1987_vm10, %v9835_v53, %v9836_v24  ;;  %v9770_v2 = vunpack.i.l.bf16 %v12286_v62  ;;  %v3912_v24 = vld [vmem:[%s13248_s17 + $0x48] sm:$0xff] }
 0x9d0   :  { %v12300_v50 = vpop.permute.xlu0 %9838  ;;  %v8719_v22 = vpack.c.bf16 %v3952_v51, %v3951_v10  ;;  %v9821_v60 = vunpack.i.h.bf16 %v12298_v36  ;;  %v9820_v35 = vunpack.i.l.bf16 %v12298_v36 }
 0x9d3   :  { %v9844_v5 = vpop.permute.xlu1 %9843 }
 0x9d4   :  { %v9846_v37 = vunpack.i.h.bf16 %v9844_v5  ;;  %v9845_v8 = vunpack.i.l.bf16 %v9844_v5  ;;  %v9864_v26 = vpop.permute.xlu0 %9863 }
 0x9d5   :  { %v9866_v45 = vunpack.i.h.bf16 %v9864_v26  ;;  %v9865_v39 = vunpack.i.l.bf16 %v9864_v26 }
 0x9d6   :  { %v3633_v59 = vsel %vm1534_vm8, %v9845_v8, %v9846_v37 }
 0x9d7   :  { %v9849_v15 = vpop.permute.xlu1 %9848  ;;  %v3632_v20 = vsel %vm1534_vm8, %v9865_v39, %v9866_v45 }
 0x9d8   :  { %v12312_v21 = vpop.permute.xlu0 %9868  ;;  %v8691_v14 = vpack.c.bf16 %v3633_v59, %v3632_v20  ;;  %v9851_v4 = vunpack.i.h.bf16 %v9849_v15  ;;  %v9850_v9 = vunpack.i.l.bf16 %v9849_v15  ;;  %v4112_v59 = vsel %vm2218_vm9, %v9770_v2, %v9771_v3 }
 0x9d9   :  { %v9841_v15 = vunpack.i.h.bf16 %v12300_v50  ;;  %v9840_v20 = vunpack.i.l.bf16 %v12300_v50  ;;  %v8731_v50 = vpack.c.bf16 %v4112_v59, %v4111_v58 }
 0x9da   :  { %8692 = vmatprep.subr.bf16.mxu0 %v8691_v14  ;;  %v3792_v26 = vsel %vm699_vm4, %v9850_v9, %v9851_v4  ;;  %v3914_v4 = vld [vmem:[%s13248_s17 + $0x58] sm:$0xff] }
 0x9db   :  { %v9854_v30 = vpop.permute.xlu1 %9853  ;;  %8694 = vmatpush3.bf16.msra.mxu0 %v8691_v14  ;;  %v4113_v53 = vsel %vm2218_vm9, %v9840_v20, %v9841_v15 }
 0x9dc   :  { %v12321_v11 = vpop.permute.xlu0 %9878  ;;  %8712 = vmatprep.subr.bf16.mxu0 %v8711_v52  ;;  %v9856_v12 = vunpack.i.h.bf16 %v9854_v30  ;;  %v9855_v5 = vunpack.i.l.bf16 %v9854_v30  ;;  %v4114_v30 = vsel %vm2218_vm9, %v9820_v35, %v9821_v60  ;;  %v4236_v35 = vld [vmem:[%s13248_s17 + $0x88] sm:$0xff] }
 0x9dd   :  { %v8735_v55 = vpack.c.bf16 %v4114_v30, %v4113_v53 }
 0x9de   :  { %7952 = vmatmul.mubr.msk.f32.vlgmr.msra.gmra.mrb[28].mxu0 %vm3642_vm15, %v3575_v46  ;;  %v3954_v36 = vsel %vm1987_vm10, %v9855_v5, %v9856_v12  ;;  %v4074_v12 = vld [vmem:[%s13248_s17 + $0x68] sm:$0xff]  ;;  %v9871_v5 = vunpack.i.h.bf16 %v12312_v21 }
 0x9df   :  { %v12329_v1 = vpop.permute.xlu1 %9858  ;;  %8714 = vmatpush3.bf16.msra.mxu0 %v8711_v52  ;;  %7954 = vmatprep.mubr.msk.f32.mxu0 %vm3642_vm15, %v3576_v42  ;;  %v4073_v42 = vld [vmem:[%s13248_s17 + $0x60] sm:$0xff] }
 0x9e0   :  { %v9889_v43 = vpop.permute.xlu0 %9888  ;;  %8716 = vmatprep.subr.bf16.mxu0 %v8715_v47  ;;  %v9861_v17 = vunpack.i.h.bf16 %v12329_v1  ;;  %v9860_v23 = vunpack.i.l.bf16 %v12329_v1  ;;  %v4235_v1 = vld [vmem:[%s13248_s17 + $0x80] sm:$0xff] }
 0x9e1   :  { %v9891_v18 = vunpack.i.h.bf16 %v9889_v43  ;;  %v9890_v41 = vunpack.i.l.bf16 %v9889_v43  ;;  %v9801_v43 = vunpack.i.h.bf16 %v12292_v27 }
 0x9e2   :  { %7955 = vmatmul.mubr.msk.f32.gmra.mrb[30].mxu0 %vm3642_vm15, %v3577_v48  ;;  %v9775_v48 = vunpack.i.l.bf16 %v12290_v7 }
 0x9e3   :  { %v12347_v37 = vpop.permute.xlu1 %9873  ;;  %8718 = vmatpush3.bf16.msra.mxu0 %v8715_v47  ;;  %v3791_v8 = vsel %vm699_vm4, %v9890_v41, %v9891_v18  ;;  %7995 = vmatprep.mubr.msk.f32.mxu0 %vm3642_vm15, %v3911_v29  ;;  %v4116_v18 = vsel %vm2218_vm9, %v9860_v23, %v9861_v17  ;;  %v4410_v27 = vsel %vm2634_vm11, %v9800_v19, %v9801_v43 }
 0x9e4   :  { %v9894_v63 = vpop.permute.xlu0 %9893  ;;  %8720 = vmatprep.subr.bf16.mxu0 %v8719_v22  ;;  %v8707_v62 = vpack.c.bf16 %v3792_v26, %v3791_v8  ;;  %v9876_v2 = vunpack.i.h.bf16 %v12347_v37  ;;  %v9870_v8 = vunpack.i.l.bf16 %v12312_v21  ;;  %v4075_v21 = vld [vmem:[%s13248_s17 + $0x70] sm:$0xff] }
 0x9e5   :  { %v9896_v45 = vunpack.i.h.bf16 %v9894_v63  ;;  %v9895_v39 = vunpack.i.l.bf16 %v9894_v63  ;;  %v9880_v63 = vunpack.i.l.bf16 %v12321_v11 }
 0x9e6   :  { %8708 = vmatprep.subr.bf16.mxu1 %v8707_v62 }
 0x9e7   :  { %v12358_v32 = vpop.permute.xlu1 %9883  ;;  %8710 = vmatpush3.bf16.msra.mxu1 %v8707_v62  ;;  %8722 = vmatpush3.bf16.msra.mxu0 %v8719_v22  ;;  %v3953_v14 = vsel %vm1987_vm10, %v9895_v39, %v9896_v45 }
 0x9e8   :  { %v12365_v52 = vpop.permute.xlu0 %9898  ;;  %8728 = vmatprep.subr.bf16.mxu1 %v8727_v31  ;;  %v8723_v34 = vpack.c.bf16 %v3954_v36, %v3953_v14  ;;  %v9886_v25 = vunpack.i.h.bf16 %v12358_v32  ;;  %v9885_v44 = vunpack.i.l.bf16 %v12358_v32 }
 0x9e9   :  { %v9901_v39 = vunpack.i.h.bf16 %v12365_v52 }
 0x9ea   :  { %7974 = vmatmul.mubr.msk.f32.vlgmr.msra.gmra.mrb[84].mxu1 %vm3642_vm15, %v3750_v0  ;;  %8724 = vmatprep.subr.bf16.mxu0 %v8723_v34  ;;  %v4413_v58 = vsel %vm2634_vm11, %v9885_v44, %v9886_v25 }
 0x9eb   :  { %v12371_v49 = vpop.permute.xlu1 %9903  ;;  %8726 = vmatpush3.bf16.msra.mxu0 %v8723_v34  ;;  %8730 = vmatpush3.bf16.msra.mxu1 %v8727_v31  ;;  %v9900_v31 = vunpack.i.l.bf16 %v12365_v52  ;;  %v4237_v52 = vld [vmem:[%s13248_s17 + $0x90] sm:$0xff]  ;;  %v4356_v34 = vld [vmem:[%s13248_s17 + $0xa0] sm:$0xff] }
 0x9ec   :  { %v12381_v46 = vpop.permute.xlu0 %9918  ;;  %8732 = vmatprep.subr.bf16.mxu1 %v8731_v50  ;;  %8744 = vmatprep.subr.bf16.mxu0 %v12159_v16  ;;  %v9905_v62 = vunpack.i.l.bf16 %v12371_v49 }
 0x9ed   :  { %7976 = vmatprep.mubr.msk.f32.mxu1 %vm3642_vm15, %v3751_v40  ;;  %v9921_v53 = vunpack.i.h.bf16 %v12381_v46  ;;  %v9920_v30 = vunpack.i.l.bf16 %v12381_v46  ;;  %v4534_v46 = vld [vmem:[%s13248_s17 + $0xc0] sm:$0xff] }
 0x9ee   :  { %7977 = vmatmul.mubr.msk.f32.gmra.mrb[86].mxu1 %vm3642_vm15, %v3752_v56  ;;  %7996 = vmatmul.mubr.msk.f32.vlgmr.msra.gmra.mrb[32].mxu0 %vm3642_vm15, %v3912_v24  ;;  %v4238_v56 = vld [vmem:[%s13248_s17 + $0x98] sm:$0xff]  ;;  %v4574_v24 = vsel %vm2865_vm12, %v9900_v31, %v9901_v39 }
 0x9ef   :  { %v12395_v47 = vpop.permute.xlu1 %9908  ;;  %8734 = vmatpush3.bf16.msra.mxu1 %v8731_v50  ;;  %8746 = vmatpush3.bf16.msra.mxu0 %v12159_v16  ;;  %v9776_v16 = vunpack.i.h.bf16 %v12290_v7 }
 0x9f0   :  { %v9929_v9 = vpop.permute.xlu0 %9928  ;;  %8736 = vmatprep.subr.bf16.mxu1 %v8735_v55  ;;  %8748 = vmatprep.subr.bf16.mxu0 %v12161_v6  ;;  %v9911_v15 = vunpack.i.h.bf16 %v12395_v47  ;;  %v9910_v20 = vunpack.i.l.bf16 %v12395_v47 }
 0x9f1   :  { %v9931_v10 = vunpack.i.h.bf16 %v9929_v9  ;;  %v9930_v51 = vunpack.i.l.bf16 %v9929_v9  ;;  %7998 = vmatprep.mubr.msk.f32.mxu0 %vm3642_vm15, %v3913_v57  ;;  %8017 = vmatprep.mubr.msk.f32.mxu1 %vm3642_vm15, %v4073_v42  ;;  %v4411_v54 = vsel %vm2634_vm11, %v9775_v48, %v9776_v16 }
 0x9f2   :  { %7999 = vmatmul.mubr.msk.f32.gmra.mrb[34].mxu0 %vm3642_vm15, %v3914_v4  ;;  %v8763_v45 = vpack.c.bf16 %v4411_v54, %v4410_v27  ;;  %v4415_v42 = vsel %vm2634_vm11, %v9910_v20, %v9911_v15  ;;  %v4732_v54 = vsel %vm3096_vm13, %v9920_v30, %v9921_v53  ;;  %v4359_v20 = vld [vmem:[%s13248_s17 + $0xb8] sm:$0xff]  ;;  %v4696_v53 = vld [vmem:[%s13248_s17 + $0xe0] sm:$0xff] }
 0x9f3   :  { %v12412_v29 = vpop.permute.xlu1 %9913  ;;  %8738 = vmatpush3.bf16.msra.mxu1 %v8735_v55  ;;  %8750 = vmatpush3.bf16.msra.mxu0 %v12161_v6  ;;  %v4115_v3 = vsel %vm2218_vm9, %v9930_v51, %v9931_v10  ;;  %v9875_v6 = vunpack.i.l.bf16 %v12347_v37  ;;  %v9881_v37 = vunpack.i.h.bf16 %v12321_v11  ;;  %v4076_v11 = vld [vmem:[%s13248_s17 + $0x78] sm:$0xff] }
 0x9f4   :  { %v12417_v41 = vpop.permute.xlu0 %9933  ;;  %8752 = vmatprep.subr.bf16.mxu0 %v12163_v28  ;;  %v8739_v7 = vpack.c.bf16 %v4116_v18, %v4115_v3  ;;  %8039 = vmatprep.mubr.msk.f32.mxu0 %vm3642_vm15, %v4235_v1  ;;  %v9916_v17 = vunpack.i.h.bf16 %v12412_v29 }
 0x9f5   :  { %v4573_v59 = vsel %vm2865_vm12, %v9875_v6, %v9876_v2  ;;  %v9936_v4 = vunpack.i.h.bf16 %v12417_v41  ;;  %v9935_v9 = vunpack.i.l.bf16 %v12417_v41 }
 0x9f6   :  { %8740 = vmatprep.subr.bf16.mxu1 %v8739_v7 }
 0x9f7   :  { %v12427_v22 = vpop.permute.xlu1 %9923  ;;  %8742 = vmatpush3.bf16.msra.mxu1 %v8739_v7  ;;  %8754 = vmatpush3.bf16.msra.mxu0 %v12163_v28  ;;  %v9906_v28 = vunpack.i.h.bf16 %v12371_v49  ;;  %v4894_v25 = vsel %vm3327_vm14, %v9935_v9, %v9936_v4  ;;  %v4858_v4 = vld [vmem:[%s13248_s17 + $0x100] sm:$0xff] }
 0x9f8   :  { %v12435_v26 = vpop.permute.xlu0 %9943  ;;  %8756 = vmatprep.subr.bf16.mxu0 %v12166_v61  ;;  %8760 = vmatprep.subr.bf16.mxu1 %v12274_v38  ;;  %v9926_v50 = vunpack.i.h.bf16 %v12427_v22  ;;  %v9925_v40 = vunpack.i.l.bf16 %v12427_v22 }
 0x9f9   :  { %v4575_v0 = vsel %vm2865_vm12, %v9905_v62, %v9906_v28  ;;  %v9945_v3 = vunpack.i.l.bf16 %v12435_v26 }
 0x9fa   :  { %8018 = vmatmul.mubr.msk.f32.vlgmr.msra.gmra.mrb[88].mxu1 %vm3642_vm15, %v4074_v12  ;;  %v8783_v57 = vpack.c.bf16 %v4575_v0, %v4574_v24  ;;  %v4733_v19 = vsel %vm3096_vm13, %v9925_v40, %v9926_v50  ;;  %v4536_v24 = vld [vmem:[%s13248_s17 + $0xd0] sm:$0xff] }
 0x9fb   :  { %v12449_v60 = vpop.permute.xlu1 %9938  ;;  %8758 = vmatpush3.bf16.msra.mxu0 %v12166_v61  ;;  %8762 = vmatpush3.bf16.msra.mxu1 %v12274_v38  ;;  %v4412_v61 = vsel %vm2634_vm11, %v9880_v63, %v9881_v37  ;;  %v4572_v38 = vsel %vm2865_vm12, %v9870_v8, %v9871_v5  ;;  %v8791_v2 = vpack.c.bf16 %v4733_v19, %v4732_v54  ;;  %v4357_v8 = vld [vmem:[%s13248_s17 + $0xa8] sm:$0xff]  ;;  %v4698_v54 = vld [vmem:[%s13248_s17 + $0xf0] sm:$0xff] }
 0x9fc   :  { %v12463_v32 = vpop.permute.xlu0 %9953  ;;  %8764 = vmatprep.subr.bf16.mxu1 %v8763_v45  ;;  %8776 = vmatprep.subr.bf16.mxu0 %v12278_v33  ;;  %v8767_v14 = vpack.c.bf16 %v4413_v58, %v4412_v61  ;;  %v8779_v36 = vpack.c.bf16 %v4573_v59, %v4572_v38  ;;  %v9941_v10 = vunpack.i.h.bf16 %v12449_v60  ;;  %v9940_v51 = vunpack.i.l.bf16 %v12449_v60  ;;  %v4358_v59 = vld [vmem:[%s13248_s17 + $0xb0] sm:$0xff] }
 0x9fd   :  { %8020 = vmatprep.mubr.msk.f32.mxu1 %vm3642_vm15, %v4075_v21  ;;  %v9956_v39 = vunpack.i.h.bf16 %v12463_v32  ;;  %v9955_v31 = vunpack.i.l.bf16 %v12463_v32  ;;  %v4535_v32 = vld [vmem:[%s13248_s17 + $0xc8] sm:$0xff] }
 0x9fe   :  { %8021 = vmatmul.mubr.msk.f32.gmra.mrb[90].mxu1 %vm3642_vm15, %v4076_v11  ;;  %8040 = vmatmul.mubr.msk.f32.vlgmr.msra.gmra.mrb[36].mxu0 %vm3642_vm15, %v4236_v35  ;;  %v4895_v44 = vsel %vm3327_vm14, %v9940_v51, %v9941_v10 }
 0x9ff   :  { %v9949_v49 = vpop.permute.xlu1 %9948  ;;  %8766 = vmatpush3.bf16.msra.mxu1 %v8763_v45  ;;  %8778 = vmatpush3.bf16.msra.mxu0 %v12278_v33  ;;  %v9915_v33 = vunpack.i.l.bf16 %v12412_v29  ;;  %v9946_v29 = vunpack.i.h.bf16 %v12435_v26  ;;  %v8807_v58 = vpack.c.bf16 %v4895_v44, %v4894_v25  ;;  %v4896_v40 = vsel %vm3327_vm14, %v9955_v31, %v9956_v39  ;;  %v4860_v25 = vld [vmem:[%s13248_s17 + $0x110] sm:$0xff]  ;;  %v4861_v44 = vld [vmem:[%s13248_s17 + $0x118] sm:$0xff]  ;;  %v12597_v31 = vld [vmem:[%s13247_s16 + $0x2] ss:$0 sm:$0xff] }
 0xa00   :  { %v9964_v55 = vpop.permute.xlu0 %9963  ;;  %8768 = vmatprep.subr.bf16.mxu1 %v8767_v14  ;;  %8780 = vmatprep.subr.bf16.mxu0 %v8779_v36  ;;  %v9951_v1 = vunpack.i.h.bf16 %v9949_v49  ;;  %v9950_v16 = vunpack.i.l.bf16 %v9949_v49 }
 0xa01   :  { %v9966_v23 = vunpack.i.h.bf16 %v9964_v55  ;;  %v9965_v47 = vunpack.i.l.bf16 %v9964_v55  ;;  %8042 = vmatprep.mubr.msk.f32.mxu0 %vm3642_vm15, %v4237_v52  ;;  %8061 = vmatprep.mubr.msk.f32.mxu1 %vm3642_vm15, %v4356_v34  ;;  %v4577_v6 = vsel %vm2865_vm12, %v9915_v33, %v9916_v17  ;;  %v4734_v21 = vsel %vm3096_vm13, %v9945_v3, %v9946_v29  ;;  %v4537_v55 = vld [vmem:[%s13248_s17 + $0xd8] sm:$0xff] }
 0xa02   :  { %8043 = vmatmul.mubr.msk.f32.gmra.mrb[38].mxu0 %vm3642_vm15, %v4238_v56  ;;  %v4735_v37 = vsel %vm3096_vm13, %v9950_v16, %v9951_v1 }
 0xa03   :  { %v9959_v48 = vpop.permute.xlu1 %9958  ;;  %8770 = vmatpush3.bf16.msra.mxu1 %v8767_v14  ;;  %8782 = vmatpush3.bf16.msra.mxu0 %v8779_v36  ;;  %v4414_v43 = vsel %vm2634_vm11, %v9965_v47, %v9966_v23  ;;  %v8795_v35 = vpack.c.bf16 %v4735_v37, %v4734_v21  ;;  %v12588_v37 = vld [vmem:[%s13247_s16 + $0x1] ss:$0 sm:$0xff] }
 0xa04   :  { %v9969_v18 = vpop.permute.xlu0 %9968  ;;  %8784 = vmatprep.subr.bf16.mxu0 %v8783_v57  ;;  %v8771_v41 = vpack.c.bf16 %v4415_v42, %v4414_v43  ;;  %8083 = vmatprep.mubr.msk.f32.mxu0 %vm3642_vm15, %v4534_v46  ;;  %v9961_v22 = vunpack.i.h.bf16 %v9959_v48  ;;  %v9960_v12 = vunpack.i.l.bf16 %v9959_v48 }
 0xa05   :  { %v9971_v7 = vunpack.i.h.bf16 %v9969_v18  ;;  %v9970_v27 = vunpack.i.l.bf16 %v9969_v18 }
 0xa06   :  { %8772 = vmatprep.subr.bf16.mxu1 %v8771_v41  ;;  %v4897_v0 = vsel %vm3327_vm14, %v9960_v12, %v9961_v22 }
 0xa07   :  { %v9979_v5 = vpop.permute.xlu1 %9978  ;;  %8774 = vmatpush3.bf16.msra.mxu1 %v8771_v41  ;;  %8786 = vmatpush3.bf16.msra.mxu0 %v8783_v57  ;;  %v4576_v26 = vsel %vm2865_vm12, %v9970_v27, %v9971_v7  ;;  %v8811_v56 = vpack.c.bf16 %v4897_v0, %v4896_v40  ;;  %v4697_v41 = vld [vmem:[%s13248_s17 + $0xe8] sm:$0xff] }
 0xa08   :  { %v9981_v63 = vunpack.i.h.bf16 %v9979_v5  ;;  %v9980_v28 = vunpack.i.l.bf16 %v9979_v5  ;;  %v9974_v62 = vpop.permute.xlu0 %9973  ;;  %8792 = vmatprep.subr.bf16.mxu1 %v8791_v2  ;;  %v8787_v45 = vpack.c.bf16 %v4577_v6, %v4576_v26  ;;  %v4859_v6 = vld [vmem:[%s13248_s17 + $0x108] sm:$0xff]  ;;  %v12583_v26 = vld [vmem:[%s13247_s16] ss:$0 sm:$0xff] }
 0xa09   :  { %v9976_v60 = vunpack.i.h.bf16 %v9974_v62  ;;  %v9975_v11 = vunpack.i.l.bf16 %v9974_v62 }
 0xa0a   :  { %8062 = vmatmul.mubr.msk.f32.vlgmr.msra.gmra.mrb[92].mxu1 %vm3642_vm15, %v4357_v8  ;;  %8788 = vmatprep.subr.bf16.mxu0 %v8787_v45  ;;  %v4737_v38 = vsel %vm3096_vm13, %v9980_v28, %v9981_v63 }
 0xa0b   :  { %v9989_v15 = vpop.permute.xlu1 %9988  ;;  %8790 = vmatpush3.bf16.msra.mxu0 %v8787_v45  ;;  %8794 = vmatpush3.bf16.msra.mxu1 %v8791_v2  ;;  %v4736_v61 = vsel %vm3096_vm13, %v9975_v11, %v9976_v60  ;;  %v4699_v2 = vld [vmem:[%s13248_s17 + $0xf8] sm:$0xff] }
 0xa0c   :  { %v9991_v14 = vunpack.i.h.bf16 %v9989_v15  ;;  %v9990_v36 = vunpack.i.l.bf16 %v9989_v15  ;;  %v9984_v52 = vpop.permute.xlu0 %9983  ;;  %8796 = vmatprep.subr.bf16.mxu1 %v8795_v35  ;;  %8808 = vmatprep.subr.bf16.mxu0 %v8807_v58  ;;  %v8799_v49 = vpack.c.bf16 %v4737_v38, %v4736_v61 }
 0xa0d   :  { %v9986_v34 = vunpack.i.h.bf16 %v9984_v52  ;;  %v9985_v50 = vunpack.i.l.bf16 %v9984_v52  ;;  %8064 = vmatprep.mubr.msk.f32.mxu1 %vm3642_vm15, %v4358_v59 }
 0xa0e   :  { %8065 = vmatmul.mubr.msk.f32.gmra.mrb[94].mxu1 %vm3642_vm15, %v4359_v20  ;;  %8084 = vmatmul.mubr.msk.f32.vlgmr.msra.gmra.mrb[40].mxu0 %vm3642_vm15, %v4535_v32  ;;  %v4899_v42 = vsel %vm3327_vm14, %v9990_v36, %v9991_v14 }
 0xa0f   :  { %v9994_v30 = vpop.permute.xlu1 %9993  ;;  %8798 = vmatpush3.bf16.msra.mxu1 %v8795_v35  ;;  %8810 = vmatpush3.bf16.msra.mxu0 %v8807_v58  ;;  %v4898_v57 = vsel %vm3327_vm14, %v9985_v50, %v9986_v34 }
 0xa10   :  { %v9996_v17 = vunpack.i.h.bf16 %v9994_v30  ;;  %v9995_v33 = vunpack.i.l.bf16 %v9994_v30  ;;  %v9999_v23 = vpop.permute.xlu0 %9998  ;;  %8800 = vmatprep.subr.bf16.mxu1 %v8799_v49  ;;  %8812 = vmatprep.subr.bf16.mxu0 %v8811_v56  ;;  %v8815_v9 = vpack.c.bf16 %v4899_v42, %v4898_v57 }
 0xa11   :  { %v10001_v47 = vunpack.i.h.bf16 %v9999_v23  ;;  %v10000_v46 = vunpack.i.l.bf16 %v9999_v23  ;;  %8086 = vmatprep.mubr.msk.f32.mxu0 %vm3642_vm15, %v4536_v24  ;;  %8105 = vmatprep.mubr.msk.f32.mxu1 %vm3642_vm15, %v4696_v53 }
 0xa12   :  { %8087 = vmatmul.mubr.msk.f32.gmra.mrb[42].mxu0 %vm3642_vm15, %v4537_v55  ;;  %v4739_v10 = vsel %vm3096_vm13, %v9995_v33, %v9996_v17  ;;  %v12610_v55 = vld [vmem:[%s13247_s16 + $0x3] ss:$0 sm:$0xff] }
 0xa13   :  { %v10009_v51 = vpop.permute.xlu1 %10008  ;;  %8802 = vmatpush3.bf16.msra.mxu1 %v8799_v49  ;;  %8814 = vmatpush3.bf16.msra.mxu0 %v8811_v56  ;;  %v4738_v1 = vsel %vm3096_vm13, %v10000_v46, %v10001_v47 }
 0xa14   :  { %v10011_v16 = vunpack.i.h.bf16 %v10009_v51  ;;  %v10010_v48 = vunpack.i.l.bf16 %v10009_v51  ;;  %v10004_v43 = vpop.permute.xlu0 %10003  ;;  %8816 = vmatprep.subr.bf16.mxu0 %v8815_v9  ;;  %v8803_v19 = vpack.c.bf16 %v4739_v10, %v4738_v1  ;;  %8127 = vmatprep.mubr.msk.f32.mxu0 %vm3642_vm15, %v4858_v4 }
 0xa15   :  { %v10006_v29 = vunpack.i.h.bf16 %v10004_v43  ;;  %v10005_v3 = vunpack.i.l.bf16 %v10004_v43 }
 0xa16   :  { %8804 = vmatprep.subr.bf16.mxu1 %v8803_v19  ;;  %v4901_v18 = vsel %vm3327_vm14, %v10010_v48, %v10011_v16 }
 0xa17   :  { %8806 = vmatpush3.bf16.msra.mxu1 %v8803_v19  ;;  %8818 = vmatpush3.bf16.msra.mxu0 %v8815_v9  ;;  %v4900_v7 = vsel %vm3327_vm14, %v10005_v3, %v10006_v29 }
 0xa18   :  { %v8819_v27 = vpack.c.bf16 %v4901_v18, %v4900_v7  ;;  %v12619_v7 = vld [vmem:[%s13247_s16 + $0x5] ss:$0 sm:$0xff] }
 0xa1a   :  { %8106 = vmatmul.mubr.msk.f32.vlgmr.msra.gmra.mrb[96].mxu1 %vm3642_vm15, %v4697_v41  ;;  %8820 = vmatprep.subr.bf16.mxu0 %v8819_v27 }
 0xa1b   :  { %8822 = vmatpush3.bf16.msra.mxu0 %v8819_v27  ;;  %8108 = vmatprep.mubr.msk.f32.mxu1 %vm3642_vm15, %v4698_v54 }
 0xa1e   :  { %8109 = vmatmul.mubr.msk.f32.gmra.mrb[98].mxu1 %vm3642_vm15, %v4699_v2  ;;  %8128 = vmatmul.mubr.msk.f32.vlgmr.msra.gmra.mrb[44].mxu0 %vm3642_vm15, %v4859_v6 }
 0xa1f   :  { %8130 = vmatprep.mubr.msk.f32.mxu0 %vm3642_vm15, %v4860_v25  ;;  %v12626_v25 = vld [vmem:[%s13247_s16 + $0x6] ss:$0 sm:$0xff] }
 0xa22   :  { %8131 = vmatmul.mubr.msk.f32.gmra.mrb[46].mxu0 %vm3642_vm15, %v4861_v44 }
 0xab1   :  { %v7953_v22 = vpop.f32.mrb[28].mxu0 }
 0xab2   :  { %v3721_v12 = vpop.f32.mrb[29].mxu0  ;;  %v3746_v28 = vmul.f32 %v7953_v22, %v12583_v26 }
 0xab3   :  { %v3745_v21 = vmul.f32 %v12583_v26, %v3721_v12 }
 0xab5   :  { %v7956_v5 = vpop.f32.mrb[30].mxu0 }
 0xab6   :  { %v3731_v8 = vpop.f32.mrb[31].mxu0  ;;  %v3748_v59 = vmul.f32 %v7956_v5, %v12583_v26 }
 0xab7   :  { %v3747_v38 = vmul.f32 %v12583_v26, %v3731_v8 }
 0xabd   :  { %v7975_v63 = vpop.f32.mrb[84].mxu1 }
 0xabe   :  { %v3904_v62 = vmul.f32 %v7975_v63, %v12588_v37  ;;  %v3879_v45 = vpop.f32.mrb[85].mxu1 }
 0xabf   :  { %v3903_v39 = vmul.f32 %v12588_v37, %v3879_v45 }
 0xac0   :  { %v3908_v60 = vadd.f32 %v3904_v62, %v3746_v28 }
 0xac1   :  { %v3907_v11 = vadd.f32 %v3903_v39, %v3745_v21  ;;  %v7978_v35 = vpop.f32.mrb[86].mxu1  ;;  %v7997_v58 = vpop.f32.mrb[32].mxu0 }
 0xac2   :  { %v3906_v15 = vmul.f32 %v7978_v35, %v12588_v37  ;;  %v4066_v20 = vmul.f32 %v7997_v58, %v12597_v31  ;;  %v3889_v32 = vpop.f32.mrb[87].mxu1  ;;  %v4041_v61 = vpop.f32.mrb[33].mxu0 }
 0xac3   :  { %v3905_v0 = vmul.f32 %v12588_v37, %v3889_v32  ;;  %v4065_v14 = vmul.f32 %v12597_v31, %v4041_v61 }
 0xac4   :  { %v3910_v36 = vadd.f32 %v3906_v15, %v3748_v59  ;;  %v4070_v52 = vadd.f32 %v4066_v20, %v3908_v60 }
 0xac5   :  { %v3909_v34 = vadd.f32 %v3905_v0, %v3747_v38  ;;  %v4069_v50 = vadd.f32 %v4065_v14, %v3907_v11  ;;  %v8000_v40 = vpop.f32.mrb[34].mxu0  ;;  %v12637_v38 = vld [vmem:[%s13247_s16 + $0x7] ss:$0 sm:$0xff] }
 0xac6   :  { %v4068_v49 = vmul.f32 %v8000_v40, %v12597_v31  ;;  %v4051_v56 = vpop.f32.mrb[35].mxu0 }
 0xac7   :  { %v4067_v24 = vmul.f32 %v12597_v31, %v4051_v56 }
 0xac8   :  { %v4072_v53 = vadd.f32 %v4068_v49, %v3910_v36 }
 0xac9   :  { %v4071_v30 = vadd.f32 %v4067_v24, %v3909_v34  ;;  %v12644_v34 = vld [vmem:[%s13247_s16 + $0x8] ss:$0 sm:$0xff] }
 0xacd   :  { %v8019_v57 = vpop.f32.mrb[88].mxu1 }
 0xace   :  { %v4228_v42 = vmul.f32 %v8019_v57, %v12610_v55  ;;  %v4203_v17 = vpop.f32.mrb[89].mxu1 }
 0xacf   :  { %v4227_v33 = vmul.f32 %v12610_v55, %v4203_v17 }
 0xad0   :  { %v4232_v23 = vadd.f32 %v4228_v42, %v4070_v52  ;;  %v5032_v42 = vpop.permute.xlu1 %5031 }
 0xad1   :  { %v8022_v47 = vpop.f32.mrb[90].mxu1  ;;  %v8041_v46 = vpop.f32.mrb[36].mxu0  ;;  %v4231_v4 = vadd.f32 %v4227_v33, %v4069_v50 }
 0xad2   :  { %v4230_v9 = vmul.f32 %v8022_v47, %v12610_v55  ;;  %v4337_v10 = vadd.f32 %v8041_v46, %v4232_v23  ;;  %v4213_v51 = vpop.f32.mrb[91].mxu1  ;;  %v4317_v1 = vpop.f32.mrb[37].mxu0 }
 0xad3   :  { %v4229_v16 = vmul.f32 %v12610_v55, %v4213_v51  ;;  %v4336_v48 = vadd.f32 %v4317_v1, %v4231_v4  ;;  %v5027_v23 = vpop.permute.xlu0 %5026 }
 0xad4   :  { %v4234_v43 = vadd.f32 %v4230_v9, %v4072_v53 }
 0xad5   :  { %v8044_v19 = vpop.f32.mrb[38].mxu0  ;;  %v4233_v29 = vadd.f32 %v4229_v16, %v4071_v30 }
 0xad6   :  { %v4339_v3 = vadd.f32 %v8044_v19, %v4234_v43  ;;  %v4327_v18 = vpop.f32.mrb[39].mxu0 }
 0xad7   :  { %v4338_v41 = vadd.f32 %v4327_v18, %v4233_v29 }
 0xadd   :  { %v8063_v27 = vpop.f32.mrb[92].mxu1 }
 0xade   :  { %v4527_v54 = vmul.f32 %v8063_v27, %v12619_v7  ;;  %v4502_v2 = vpop.f32.mrb[93].mxu1  ;;  %v5037_v27 = vpop.permute.xlu0 %5036 }
 0xadf   :  { %v4526_v6 = vmul.f32 %v12619_v7, %v4502_v2 }
 0xae0   :  { %v4531_v44 = vadd.f32 %v4527_v54, %v4337_v10 }
 0xae1   :  { %v4530_v22 = vadd.f32 %v4526_v6, %v4336_v48  ;;  %v8066_v12 = vpop.f32.mrb[94].mxu1  ;;  %v8085_v5 = vpop.f32.mrb[40].mxu0 }
 0xae2   :  { %v4529_v8 = vmul.f32 %v8066_v12, %v12619_v7  ;;  %v4689_v63 = vmul.f32 %v8085_v5, %v12626_v25  ;;  %v4512_v28 = vpop.f32.mrb[95].mxu1  ;;  %v4664_v62 = vpop.f32.mrb[41].mxu0 }
 0xae3   :  { %v4528_v45 = vmul.f32 %v12619_v7, %v4512_v28  ;;  %v4688_v21 = vmul.f32 %v12626_v25, %v4664_v62  ;;  %v5064_v62 = vld [vmem:[%s13250_s19] sm:$0xff] }
 0xae4   :  { %v4533_v39 = vadd.f32 %v4529_v8, %v4339_v3  ;;  %v4693_v60 = vadd.f32 %v4689_v63, %v4531_v44  ;;  %v5042_v3 = vpop.permute.xlu1 %5041  ;;  %8141 = vmatprep.mubr.msk.f32.mxu1 %vm119_vm0, %v5064_v62 }
 0xae5   :  { %v4532_v11 = vadd.f32 %v4528_v45, %v4338_v41  ;;  %v4692_v35 = vadd.f32 %v4688_v21, %v4530_v22  ;;  %v8088_v58 = vpop.f32.mrb[42].mxu0 }
 0xae6   :  { %v4691_v59 = vmul.f32 %v8088_v58, %v12626_v25  ;;  %v4674_v15 = vpop.f32.mrb[43].mxu0  ;;  %v6099_v58 = vld [vmem:[%s13251_s20] sm:$0xff] }
 0xae7   :  { %v4690_v20 = vmul.f32 %v12626_v25, %v4674_v15 }
 0xae8   :  { %v4695_v32 = vadd.f32 %v4691_v59, %v4533_v39  ;;  %v5186_v39 = vld [vmem:[%s13250_s19 + $0x10] sm:$0xff]  ;;  %v6116_v59 = vld [vmem:[%s13253_s22] sm:$0xff] }
 0xae9   :  { %v4694_v61 = vadd.f32 %v4690_v20, %v4532_v11  ;;  %8152 = vmatprep.mubr.msk.f32.mxu0 %vm119_vm0, %v5186_v39 }
 0xaed   :  { %v8107_v0 = vpop.f32.mrb[96].mxu1 }
 0xaee   :  { %v4851_v14 = vmul.f32 %v8107_v0, %v12637_v38  ;;  %v4826_v36 = vpop.f32.mrb[97].mxu1 }
 0xaef   :  { %v4850_v52 = vmul.f32 %v12637_v38, %v4826_v36 }
 0xaf0   :  { %v4855_v50 = vadd.f32 %v4851_v14, %v4693_v60 }
 0xaf1   :  { %v4854_v40 = vadd.f32 %v4850_v52, %v4692_v35  ;;  %v8110_v49 = vpop.f32.mrb[98].mxu1  ;;  %v8129_v56 = vpop.f32.mrb[44].mxu0  ;;  %v6100_v35 = vld [vmem:[%s13251_s20 + $0x8] sm:$0xff] }
 0xaf2   :  { %v4853_v24 = vmul.f32 %v8110_v49, %v12637_v38  ;;  %v5013_v53 = vmul.f32 %v8129_v56, %v12644_v34  ;;  %v4836_v30 = vpop.f32.mrb[99].mxu1  ;;  %v4988_v57 = vpop.f32.mrb[45].mxu0 }
 0xaf3   :  { %v4852_v17 = vmul.f32 %v12637_v38, %v4836_v30  ;;  %v5012_v33 = vmul.f32 %v12644_v34, %v4988_v57 }
 0xaf4   :  { %v4857_v47 = vadd.f32 %v4853_v24, %v4695_v32  ;;  %v5017_v46 = vadd.f32 %v5013_v53, %v4855_v50 }
 0xaf5   :  { %v4856_v4 = vadd.f32 %v4852_v17, %v4694_v61  ;;  %v5016_v9 = vadd.f32 %v5012_v33, %v4854_v40  ;;  %v8132_v10 = vpop.f32.mrb[46].mxu0 }
 0xaf6   :  { %v5045_v51 = vadd.f32 %v5032_v42, %v5017_v46  ;;  %v5015_v1 = vmul.f32 %v8132_v10, %v12644_v34  ;;  %v4998_v16 = vpop.f32.mrb[47].mxu0 }
 0xaf7   :  { %v5044_v48 = vadd.f32 %v5027_v23, %v5016_v9  ;;  %v5014_v43 = vmul.f32 %v12644_v34, %v4998_v16 }
 0xaf8   :  { %v5049_v19 = vmax.f32 %v5045_v51, 0.0  ;;  %v5019_v29 = vadd.f32 %v5015_v1, %v4857_v47 }
 0xaf9   :  { %v5048_v18 = vmax.f32 %v5044_v48, 0.0  ;;  %v5018_v41 = vadd.f32 %v5014_v43, %v4856_v4 }
 0xafa   :  { %v5047_v54 = vadd.f32 %v5042_v3, %v5019_v29  ;;  %v10012_v2 = vpack.i.bf16 %v5049_v19, %v13285_v13  ;;  %v10032_v63 = vpack.i.bf16 %v13285_v13, %v5049_v19 }
 0xafb   :  { %v5046_v6 = vadd.f32 %v5037_v27, %v5018_v41  ;;  %v10047_v44 = vpack.i.bf16 %v5048_v18, %v13285_v13  ;;  %v12654_v22 = vpack.c.bf16 %v5049_v19, %v5048_v18  ;;  %v10067_v28 = vpack.i.bf16 %v13285_v13, %v5048_v18 }
 0xafc   :  { %v5051_v12 = vmax.f32 %v5047_v54, 0.0  ;;  %10013 = vrot.lane.b32.xlu1 %v10012_v2, %s10210_s10 }
 0xafd   :  { %v5050_v5 = vmax.f32 %v5046_v6, 0.0  ;;  %10048 = vrot.lane.b32.xlu0 %v10047_v44, %s10210_s10 }
 0xafe   :  { %v10082_v45 = vpack.i.bf16 %v5051_v12, %v13285_v13  ;;  %v10102_v60 = vpack.i.bf16 %v13285_v13, %v5051_v12 }
 0xaff   :  { %v12658_v8 = vpack.c.bf16 %v5051_v12, %v5050_v5  ;;  %v10112_v21 = vpack.i.bf16 %v5050_v5, %v13285_v13  ;;  %v10147_v11 = vpack.i.bf16 %v13285_v13, %v5050_v5 }
 0xb00   :  { %10018 = vrot.lane.b32.xlu1 %v10012_v2, %s10211_s11 }
 0xb01   :  { %10053 = vrot.lane.b32.xlu0 %v10047_v44, %s10211_s11 }
 0xb04   :  { %10023 = vrot.lane.b32.xlu1 %v10012_v2, %s10212_s9 }
 0xb05   :  { %10058 = vrot.lane.b32.xlu0 %v10047_v44, %s10212_s9 }
 0xb08   :  { %10028 = vrot.lane.b32.xlu1 %v10012_v2, %s10213_s27 }
 0xb09   :  { %10063 = vrot.lane.b32.xlu0 %v10047_v44, %s10213_s27 }
 0xb0c   :  { %10033 = vrot.lane.b32.xlu1 %v10032_v63, %s10214_s5 }
 0xb0d   :  { %10068 = vrot.lane.b32.xlu0 %v10067_v28, %s10214_s5 }
 0xb10   :  { %10038 = vrot.lane.b32.xlu1 %v10032_v63, %s10215_s13 }
 0xb11   :  { %10073 = vrot.lane.b32.xlu0 %v10067_v28, %s10215_s13 }
 0xb14   :  { %10043 = vrot.lane.b32.xlu1 %v10032_v63, %s10216_s12 }
 0xb15   :  { %10078 = vrot.lane.b32.xlu0 %v10067_v28, %s10216_s12 }
 0xb18   :  { %10083 = vrot.lane.b32.xlu1 %v10082_v45, %s10210_s10 }
 0xb19   :  { %10113 = vrot.lane.b32.xlu0 %v10112_v21, %s10210_s10 }
 0xb1c   :  { %10088 = vrot.lane.b32.xlu1 %v10082_v45, %s10211_s11 }
 0xb1d   :  { %10118 = vrot.lane.b32.xlu0 %v10112_v21, %s10211_s11 }
 0xb20   :  { %10093 = vrot.lane.b32.xlu1 %v10082_v45, %s10212_s9 }
 0xb21   :  { %10123 = vrot.lane.b32.xlu0 %v10112_v21, %s10212_s9 }
 0xb24   :  { %10098 = vrot.lane.b32.xlu1 %v10082_v45, %s10213_s27 }
 0xb25   :  { %10128 = vrot.lane.b32.xlu0 %v10112_v21, %s10213_s27 }
 0xb28   :  { %10103 = vrot.lane.b32.xlu1 %v10102_v60, %s10214_s5 }
 0xb29   :  { %10133 = vrot.lane.b32.xlu0 %v10067_v28, %s10217_s2 }
 0xb2c   :  { %10108 = vrot.lane.b32.xlu1 %v10102_v60, %s10215_s13 }
 0xb2d   :  { %10148 = vrot.lane.b32.xlu0 %v10147_v11, %s10214_s5 }
 0xb30   :  { %10138 = vrot.lane.b32.xlu1 %v10032_v63, %s10217_s2 }
 0xb31   :  { %10153 = vrot.lane.b32.xlu0 %v10147_v11, %s10215_s13 }
 0xb34   :  { %10143 = vrot.lane.b32.xlu1 %v10102_v60, %s10216_s12 }
 0xb35   :  { %10158 = vrot.lane.b32.xlu0 %v10147_v11, %s10216_s12 }
 0xb38   :  { %10168 = vrot.lane.b32.xlu1 %v10102_v60, %s10217_s2 }
 0xb39   :  { %10163 = vrot.lane.b32.xlu0 %v10147_v11, %s10217_s2 }
 0xb3c   :  { %6108 = vperm.xlu1 %9050, %v6100_v35  }
 0xb3d   :  { %6103 = vperm.xlu0 %9051, %v6099_v58  }
 0xb41   :  { %6119 = vperm.xlu0 %9051, %v6116_v59  }
 0xb6e   :  { %v10014_v15 = vpop.permute.xlu1 %10013 }
 0xb6f   :  { %v10016_v20 = vunpack.i.h.bf16 %v10014_v15  ;;  %v10015_v32 = vunpack.i.l.bf16 %v10014_v15  ;;  %v10049_v61 = vpop.permute.xlu0 %10048 }
 0xb70   :  { %v10051_v0 = vunpack.i.h.bf16 %v10049_v61  ;;  %v10050_v14 = vunpack.i.l.bf16 %v10049_v61 }
 0xb71   :  { %v5091_v36 = vsel %vm1534_vm8, %v10015_v32, %v10016_v20 }
 0xb72   :  { %v10019_v52 = vpop.permute.xlu1 %10018  ;;  %v5090_v50 = vsel %vm1534_vm8, %v10050_v14, %v10051_v0  ;;  %v5065_v0 = vld [vmem:[%s13250_s19 + $0x8] sm:$0xff] }
 0xb73   :  { %v10021_v40 = vunpack.i.h.bf16 %v10019_v52  ;;  %v10020_v49 = vunpack.i.l.bf16 %v10019_v52  ;;  %v10054_v56 = vpop.permute.xlu0 %10053  ;;  %v8823_v24 = vpack.c.bf16 %v5091_v36, %v5090_v50 }
 0xb74   :  { %v10056_v53 = vunpack.i.h.bf16 %v10054_v56  ;;  %v10055_v30 = vunpack.i.l.bf16 %v10054_v56 }
 0xb75   :  { %8824 = vmatprep.subr.bf16.mxu1 %v8823_v24  ;;  %v5205_v57 = vsel %vm699_vm4, %v10020_v49, %v10021_v40 }
 0xb76   :  { %v10024_v42 = vpop.permute.xlu1 %10023  ;;  %8826 = vmatpush3.bf16.msra.mxu1 %v8823_v24  ;;  %v5204_v17 = vsel %vm699_vm4, %v10055_v30, %v10056_v53 }
 0xb77   :  { %v10059_v33 = vpop.permute.xlu0 %10058  ;;  %v8831_v23 = vpack.c.bf16 %v5205_v57, %v5204_v17  ;;  %v10026_v48 = vunpack.i.h.bf16 %v10024_v42  ;;  %v10025_v43 = vunpack.i.l.bf16 %v10024_v42  ;;  %v5302_v57 = vld [vmem:[%s13250_s19 + $0x20] sm:$0xff] }
 0xb78   :  { %v10061_v19 = vunpack.i.h.bf16 %v10059_v33  ;;  %v10060_v29 = vunpack.i.l.bf16 %v10059_v33 }
 0xb79   :  { %8832 = vmatprep.subr.bf16.mxu0 %v8831_v23  ;;  %v5321_v5 = vsel %vm1987_vm10, %v10025_v43, %v10026_v48 }
 0xb7a   :  { %v10029_v47 = vpop.permute.xlu1 %10028  ;;  %8834 = vmatpush3.bf16.msra.mxu0 %v8831_v23  ;;  %v5320_v12 = vsel %vm1987_vm10, %v10060_v29, %v10061_v19 }
 0xb7b   :  { %v10064_v46 = vpop.permute.xlu0 %10063  ;;  %v10031_v6 = vunpack.i.h.bf16 %v10029_v47  ;;  %v10030_v63 = vunpack.i.l.bf16 %v10029_v47  ;;  %v8839_v15 = vpack.c.bf16 %v5321_v5, %v5320_v12 }
 0xb7c   :  { %v10066_v28 = vunpack.i.h.bf16 %v10064_v46  ;;  %v10065_v62 = vunpack.i.l.bf16 %v10064_v46  ;;  %v5187_v46 = vld [vmem:[%s13250_s19 + $0x18] sm:$0xff] }
 0xb7d   :  { %v5437_v36 = vsel %vm2218_vm9, %v10030_v63, %v10031_v6  ;;  %v5303_v63 = vld [vmem:[%s13250_s19 + $0x28] sm:$0xff] }
 0xb7e   :  { %v12717_v4 = vpop.permute.xlu1 %10033  ;;  %v5436_v14 = vsel %vm2218_vm9, %v10065_v62, %v10066_v28 }
 0xb7f   :  { %v12719_v9 = vpop.permute.xlu0 %10068  ;;  %v10036_v56 = vunpack.i.h.bf16 %v12717_v4  ;;  %v10035_v24 = vunpack.i.l.bf16 %v12717_v4  ;;  %v8847_v33 = vpack.c.bf16 %v5437_v36, %v5436_v14 }
 0xb80   :  { %v10071_v42 = vunpack.i.h.bf16 %v12719_v9  ;;  %v10070_v17 = vunpack.i.l.bf16 %v12719_v9 }
 0xb82   :  { %v12721_v10 = vpop.permute.xlu1 %10038 }
 0xb83   :  { %v12723_v51 = vpop.permute.xlu0 %10073  ;;  %v10040_v6 = vunpack.i.l.bf16 %v12721_v10 }
 0xb84   :  { %v10075_v12 = vunpack.i.l.bf16 %v12723_v51 }
 0xb86   :  { %v12725_v1 = vpop.permute.xlu1 %10043 }
 0xb87   :  { %v12727_v16 = vpop.permute.xlu0 %10078 }
 0xb8a   :  { %v10084_v3 = vpop.permute.xlu1 %10083 }
 0xb8b   :  { %v10086_v18 = vunpack.i.h.bf16 %v10084_v3  ;;  %v10085_v41 = vunpack.i.l.bf16 %v10084_v3  ;;  %v10114_v27 = vpop.permute.xlu0 %10113 }
 0xb8c   :  { %v10116_v54 = vunpack.i.h.bf16 %v10114_v27  ;;  %v10115_v2 = vunpack.i.l.bf16 %v10114_v27 }
 0xb8d   :  { %v5093_v44 = vsel %vm1534_vm8, %v10085_v41, %v10086_v18  ;;  %v5418_v18 = vld [vmem:[%s13250_s19 + $0x30] sm:$0xff]  ;;  %v10041_v41 = vunpack.i.h.bf16 %v12721_v10 }
 0xb8e   :  { %v10089_v45 = vpop.permute.xlu1 %10088  ;;  %v5092_v21 = vsel %vm1534_vm8, %v10115_v2, %v10116_v54  ;;  %v5653_v54 = vsel %vm2634_vm11, %v10070_v17, %v10071_v42  ;;  %v5654_v2 = vsel %vm2634_vm11, %v10035_v24, %v10036_v56 }
 0xb8f   :  { %v10091_v39 = vunpack.i.h.bf16 %v10089_v45  ;;  %v10090_v60 = vunpack.i.l.bf16 %v10089_v45  ;;  %v10119_v11 = vpop.permute.xlu0 %10118  ;;  %v8827_v35 = vpack.c.bf16 %v5093_v44, %v5092_v21  ;;  %v10076_v44 = vunpack.i.h.bf16 %v12723_v51 }
 0xb90   :  { %v10121_v58 = vunpack.i.h.bf16 %v10119_v11  ;;  %v10120_v59 = vunpack.i.l.bf16 %v10119_v11  ;;  %v8863_v10 = vpack.c.bf16 %v5654_v2, %v5653_v54  ;;  %v10046_v21 = vunpack.i.h.bf16 %v12725_v1  ;;  %v5534_v11 = vld [vmem:[%s13250_s19 + $0x40] sm:$0xff] }
 0xb91   :  { %8828 = vmatprep.subr.bf16.mxu1 %v8827_v35  ;;  %v5207_v20 = vsel %vm699_vm4, %v10090_v60, %v10091_v39  ;;  %v10045_v51 = vunpack.i.l.bf16 %v12725_v1  ;;  %v10081_v39 = vunpack.i.h.bf16 %v12727_v16  ;;  %v10080_v60 = vunpack.i.l.bf16 %v12727_v16  ;;  %v5419_v1 = vld [vmem:[%s13250_s19 + $0x38] sm:$0xff] }
 0xb92   :  { %v10094_v32 = vpop.permute.xlu1 %10093  ;;  %8830 = vmatpush3.bf16.msra.mxu1 %v8827_v35  ;;  %v5206_v61 = vsel %vm699_vm4, %v10120_v59, %v10121_v58  ;;  %v5770_v16 = vsel %vm2865_vm12, %v10040_v6, %v10041_v41  ;;  %v5867_v6 = vld [vmem:[%s13250_s19 + $0x70] sm:$0xff] }
 0xb93   :  { %v10096_v52 = vunpack.i.h.bf16 %v10094_v32  ;;  %v10095_v50 = vunpack.i.l.bf16 %v10094_v32  ;;  %v10124_v40 = vpop.permute.xlu0 %10123  ;;  %8840 = vmatprep.subr.bf16.mxu1 %v8839_v15  ;;  %v8835_v49 = vpack.c.bf16 %v5207_v20, %v5206_v61  ;;  %v5885_v14 = vsel %vm3096_vm13, %v10080_v60, %v10081_v39  ;;  %v5983_v60 = vld [vmem:[%s13250_s19 + $0x80] sm:$0xff] }
 0xb94   :  { %v10126_v53 = vunpack.i.h.bf16 %v10124_v40  ;;  %v10125_v30 = vunpack.i.l.bf16 %v10124_v40  ;;  %v5886_v36 = vsel %vm3096_vm13, %v10045_v51, %v10046_v21 }
 0xb95   :  { %8836 = vmatprep.subr.bf16.mxu0 %v8835_v49  ;;  %8142 = vmatmul.mubr.msk.f32.vlgmr.msra.gmra.mrb[100].mxu1 %vm119_vm0, %v5065_v0  ;;  %v5323_v23 = vsel %vm1987_vm10, %v10095_v50, %v10096_v52 }
 0xb96   :  { %v10099_v47 = vpop.permute.xlu1 %10098  ;;  %8838 = vmatpush3.bf16.msra.mxu0 %v8835_v49  ;;  %8842 = vmatpush3.bf16.msra.mxu1 %v8839_v15  ;;  %v5322_v4 = vsel %vm1987_vm10, %v10125_v30, %v10126_v53  ;;  %v5769_v15 = vsel %vm2865_vm12, %v10075_v12, %v10076_v44  ;;  %v5535_v49 = vld [vmem:[%s13250_s19 + $0x48] sm:$0xff] }
 0xb97   :  { %v10101_v48 = vunpack.i.h.bf16 %v10099_v47  ;;  %v10100_v43 = vunpack.i.l.bf16 %v10099_v47  ;;  %v10129_v19 = vpop.permute.xlu0 %10128  ;;  %8848 = vmatprep.subr.bf16.mxu0 %v8847_v33  ;;  %v8843_v9 = vpack.c.bf16 %v5323_v23, %v5322_v4  ;;  %8163 = vmatprep.mubr.msk.f32.mxu1 %vm119_vm0, %v5302_v57  ;;  %v8871_v0 = vpack.c.bf16 %v5770_v16, %v5769_v15  ;;  %v5751_v47 = vld [vmem:[%s13250_s19 + $0x60] sm:$0xff]  ;;  %v6197_v16 = vld [vmem:[%s13254_s23 + $0x8] sm:$0xff] }
 0xb98   :  { %v10131_v29 = vunpack.i.h.bf16 %v10129_v19  ;;  %v10130_v3 = vunpack.i.l.bf16 %v10129_v19  ;;  %v10218_v15 = vmov 0.0|0.0  }
 0xb99   :  { %8153 = vmatmul.mubr.msk.f32.vlgmr.msra.gmra.mrb[48].mxu0 %vm119_vm0, %v5187_v46  ;;  %8844 = vmatprep.subr.bf16.mxu1 %v8843_v9  ;;  %v5439_v27 = vsel %vm2218_vm9, %v10100_v43, %v10101_v48  ;;  %v8879_v46 = vpack.c.bf16 %v5886_v36, %v5885_v14  ;;  %v5628_v48 = vld [vmem:[%s13250_s19 + $0x58] sm:$0xff]  ;;  %v6213_v14 = vld [vmem:[%s13254_s23 + $0x88] sm:$0xff] }
 0xb9a   :  { %v10104_v5 = vpop.permute.xlu1 %10103  ;;  %8846 = vmatpush3.bf16.msra.mxu1 %v8843_v9  ;;  %8850 = vmatpush3.bf16.msra.mxu0 %v8847_v33  ;;  %v5438_v28 = vsel %vm2218_vm9, %v10130_v3, %v10131_v29  ;;  %v6221_v36 = vld [vmem:[%s13254_s23 + $0xc8] sm:$0xff] }
 0xb9b   :  { %v12769_v62 = vpop.permute.xlu0 %10133  ;;  %8856 = vmatprep.subr.bf16.mxu1 %v12654_v22  ;;  %v8851_v45 = vpack.c.bf16 %v5439_v27, %v5438_v28  ;;  %8174 = vmatprep.mubr.msk.f32.mxu0 %vm119_vm0, %v5418_v18  ;;  %v10106_v35 = vunpack.i.h.bf16 %v10104_v5  ;;  %v10105_v58 = vunpack.i.l.bf16 %v10104_v5 }
 0xb9c   :  { %v10136_v17 = vunpack.i.h.bf16 %v12769_v62 }
 0xb9d   :  { %8164 = vmatmul.mubr.msk.f32.vlgmr.msra.gmra.mrb[102].mxu1 %vm119_vm0, %v5303_v63  ;;  %8852 = vmatprep.subr.bf16.mxu0 %v8851_v45  ;;  %v5656_v24 = vsel %vm2634_vm11, %v10105_v58, %v10106_v35  ;;  %v5752_v63 = vld [vmem:[%s13250_s19 + $0x68] sm:$0xff]  ;;  %v5868_v35 = vld [vmem:[%s13250_s19 + $0x78] sm:$0xff] }
 0xb9e   :  { %v10109_v59 = vpop.permute.xlu1 %10108  ;;  %8854 = vmatpush3.bf16.msra.mxu0 %v8851_v45  ;;  %8858 = vmatpush3.bf16.msra.mxu1 %v12654_v22  ;;  %v5627_v22 = vld [vmem:[%s13250_s19 + $0x50] sm:$0xff] }
 0xb9f   :  { %v10149_v20 = vpop.permute.xlu0 %10148  ;;  %8860 = vmatprep.subr.bf16.mxu1 %v12658_v8  ;;  %8864 = vmatprep.subr.bf16.mxu0 %v8863_v10  ;;  %v10111_v52 = vunpack.i.h.bf16 %v10109_v59  ;;  %v10110_v50 = vunpack.i.l.bf16 %v10109_v59 }
 0xba0   :  { %v10151_v32 = vunpack.i.h.bf16 %v10149_v20  ;;  %v10150_v61 = vunpack.i.l.bf16 %v10149_v20  ;;  %8185 = vmatprep.mubr.msk.f32.mxu1 %vm119_vm0, %v5534_v11  ;;  %v6205_v20 = vld [vmem:[%s13254_s23 + $0x48] sm:$0xff] }
 0xba1   :  { %8175 = vmatmul.mubr.msk.f32.vlgmr.msra.gmra.mrb[50].mxu0 %vm119_vm0, %v5419_v1  ;;  %v5772_v19 = vsel %vm2865_vm12, %v10110_v50, %v10111_v52  ;;  %v5984_v1 = vld [vmem:[%s13250_s19 + $0x88] sm:$0xff]  ;;  %v12868_v52 = vpack.c.bf16 %v6221_v36, %v6213_v14  ;;  %v6212_v50 = vld [vmem:[%s13254_s23 + $0x80] sm:$0xff] }
 0xba2   :  { %v10139_v40 = vpop.permute.xlu1 %10138  ;;  %8862 = vmatpush3.bf16.msra.mxu1 %v12658_v8  ;;  %8866 = vmatpush3.bf16.msra.mxu0 %v8863_v10  ;;  %v5655_v56 = vsel %vm2634_vm11, %v10150_v61, %v10151_v32  ;;  %v10135_v8 = vunpack.i.l.bf16 %v12769_v62  ;;  %v12850_v32 = vpack.c.bf16 %v6205_v20, %v6197_v16  ;;  %v6196_v61 = vld [vmem:[%s13254_s23] sm:$0xff] }
 0xba3   :  { %v10141_v53 = vunpack.i.h.bf16 %v10139_v40  ;;  %v10140_v30 = vunpack.i.l.bf16 %v10139_v40  ;;  %v10154_v57 = vpop.permute.xlu0 %10153  ;;  %8872 = vmatprep.subr.bf16.mxu1 %v8871_v0  ;;  %v8867_v42 = vpack.c.bf16 %v5656_v24, %v5655_v56  ;;  %8196 = vmatprep.mubr.msk.f32.mxu0 %vm119_vm0, %v5627_v22  ;;  %v6204_v22 = vld [vmem:[%s13254_s23 + $0x40] sm:$0xff]  ;;  %v6229_v56 = vld [vmem:[%s13254_s23 + $0x108] sm:$0xff] }
 0xba4   :  { %v10156_v33 = vunpack.i.h.bf16 %v10154_v57  ;;  %v10155_v23 = vunpack.i.l.bf16 %v10154_v57  ;;  %v6001_v2 = vsel %vm3327_vm14, %v10135_v8, %v10136_v17  ;;  %v6220_v40 = vld [vmem:[%s13254_s23 + $0xc0] sm:$0xff]  ;;  %v6237_v24 = vld [vmem:[%s13254_s23 + $0x148] sm:$0xff] }
 0xba5   :  { %8186 = vmatmul.mubr.msk.f32.vlgmr.msra.gmra.mrb[104].mxu1 %vm119_vm0, %v5535_v49  ;;  %8868 = vmatprep.subr.bf16.mxu0 %v8867_v42  ;;  %v6002_v9 = vsel %vm3327_vm14, %v10140_v30, %v10141_v53  ;;  %v12876_v49 = vpack.c.bf16 %v6220_v40, %v6212_v50  ;;  %v12885_v53 = vpack.c.bf16 %v6237_v24, %v6229_v56  ;;  %v6228_v30 = vld [vmem:[%s13254_s23 + $0x100] sm:$0xff]  ;;  %v6245_v17 = vld [vmem:[%s13254_s23 + $0x188] sm:$0xff] }
 0xba6   :  { %v10144_v4 = vpop.permute.xlu1 %10143  ;;  %8870 = vmatpush3.bf16.msra.mxu0 %v8867_v42  ;;  %8874 = vmatpush3.bf16.msra.mxu1 %v8871_v0  ;;  %v5771_v43 = vsel %vm2865_vm12, %v10155_v23, %v10156_v33  ;;  %v8887_v44 = vpack.c.bf16 %v6002_v9, %v6001_v2  ;;  %v12858_v0 = vpack.c.bf16 %v6204_v22, %v6196_v61  ;;  %v6236_v57 = vld [vmem:[%s13254_s23 + $0x140] sm:$0xff]  ;;  %v6253_v8 = vld [vmem:[%s13254_s23 + $0x1c8] sm:$0xff] }
 0xba7   :  { %v10146_v29 = vunpack.i.h.bf16 %v10144_v4  ;;  %v10145_v3 = vunpack.i.l.bf16 %v10144_v4  ;;  %v10159_v18 = vpop.permute.xlu0 %10158  ;;  %8880 = vmatprep.subr.bf16.mxu0 %v8879_v46  ;;  %v8875_v41 = vpack.c.bf16 %v5772_v19, %v5771_v43  ;;  %8207 = vmatprep.mubr.msk.f32.mxu1 %vm119_vm0, %v5751_v47  ;;  %v12894_v42 = vpack.c.bf16 %v6236_v57, %v6228_v30  ;;  %v6244_v23 = vld [vmem:[%s13254_s23 + $0x180] sm:$0xff] }
 0xba8   :  { %v10161_v27 = vunpack.i.h.bf16 %v10159_v18  ;;  %v10160_v54 = vunpack.i.l.bf16 %v10159_v18  ;;  %v12903_v33 = vpack.c.bf16 %v6253_v8, %v6245_v17  ;;  %v6252_v47 = vld [vmem:[%s13254_s23 + $0x1c0] sm:$0xff] }
 0xba9   :  { %8197 = vmatmul.mubr.msk.f32.vlgmr.msra.gmra.mrb[52].mxu0 %vm119_vm0, %v5628_v48  ;;  %8876 = vmatprep.subr.bf16.mxu1 %v8875_v41  ;;  %v5888_v12 = vsel %vm3096_vm13, %v10145_v3, %v10146_v29 }
 0xbaa   :  { %v10169_v5 = vpop.permute.xlu1 %10168  ;;  %8878 = vmatpush3.bf16.msra.mxu1 %v8875_v41  ;;  %8882 = vmatpush3.bf16.msra.mxu0 %v8879_v46  ;;  %v5887_v28 = vsel %vm3096_vm13, %v10160_v54, %v10161_v27  ;;  %v12912_v46 = vpack.c.bf16 %v6252_v47, %v6244_v23 }
 0xbab   :  { %v10171_v62 = vunpack.i.h.bf16 %v10169_v5  ;;  %v10170_v45 = vunpack.i.l.bf16 %v10169_v5  ;;  %v10164_v10 = vpop.permute.xlu0 %10163  ;;  %8888 = vmatprep.subr.bf16.mxu1 %v8887_v44  ;;  %v8883_v21 = vpack.c.bf16 %v5888_v12, %v5887_v28  ;;  %8218 = vmatprep.mubr.msk.f32.mxu0 %vm119_vm0, %v5867_v6 }
 0xbac   :  { %v10166_v51 = vunpack.i.h.bf16 %v10164_v10  ;;  %v10165_v39 = vunpack.i.l.bf16 %v10164_v10 }
 0xbad   :  { %8208 = vmatmul.mubr.msk.f32.vlgmr.msra.gmra.mrb[106].mxu1 %vm119_vm0, %v5752_v63  ;;  %8884 = vmatprep.subr.bf16.mxu0 %v8883_v21  ;;  %v6004_v11 = vsel %vm3327_vm14, %v10170_v45, %v10171_v62 }
 0xbae   :  { %8886 = vmatpush3.bf16.msra.mxu0 %v8883_v21  ;;  %8890 = vmatpush3.bf16.msra.mxu1 %v8887_v44  ;;  %v6003_v58 = vsel %vm3327_vm14, %v10165_v39, %v10166_v51 }
 0xbaf   :  { %v8891_v59 = vpack.c.bf16 %v6004_v11, %v6003_v58  ;;  %8229 = vmatprep.mubr.msk.f32.mxu1 %vm119_vm0, %v5983_v60  ;;  %8895 = vmatprep.subr.bf16.mxu0 %v10218_v15 }
 0xbb1   :  { %8219 = vmatmul.mubr.msk.f32.vlgmr.msra.gmra.mrb[54].mxu0 %vm119_vm0, %v5868_v35  ;;  %8892 = vmatprep.subr.bf16.mxu1 %v8891_v59 }
 0xbb2   :  { %8894 = vmatpush3.bf16.msra.mxu1 %v8891_v59  ;;  %8236 = vmatprep.mubr.msk.f32.mxu0 %vm10201_vm3, %v13285_v13 }
 0xbb3   :  { %8899 = vmatprep.subr.bf16.mxu1 %v12850_v32 }
 0xbb5   :  { %8230 = vmatmul.mubr.msk.f32.vlgmr.msra.gmra.mrb[108].mxu1 %vm119_vm0, %v5984_v1  ;;  %vm6122_vm0 = vcmask 130048  }
 0xbb6   :  { %6327 = vmatprep.mubr.f32.mxu1 %v13285_v13  ;;  %8901 = vmatpush1.bf16.msra.mxu1 %v12858_v0 }
 0xbb7   :  { %8903 = vmatprep.subr.bf16.mxu1 %v12868_v52 }
 0xbba   :  { %8905 = vmatpush1.bf16.msra.mxu1 %v12876_v49 }
 0xbbb   :  { %8907 = vmatprep.subr.bf16.mxu1 %v12885_v53  ;;  %v6109_v8 = vpop.permute.xlu1 %6108 }
 0xbbe   :  { %8909 = vmatpush1.bf16.msra.mxu1 %v12894_v42 }
 0xbbf   :  { %8911 = vmatprep.subr.bf16.mxu1 %v12903_v33 }
 0xbc2   :  { %8913 = vmatpush1.bf16.msra.mxu1 %v12912_v46 }
 0xc68   :  { %v8143_v4 = vpop.f32.mrb[100].mxu1 }
 0xc69   :  { %v5170_v48 = vpop.f32.mrb[101].mxu1  ;;  %v5185_v19 = vmul.f32 %v8143_v4, %v12583_v26 }
 0xc6a   :  { %v5184_v3 = vmul.f32 %v12583_v26, %v5170_v48  ;;  %v6199_v48 = vld [vmem:[%s13254_s23 + $0x18] sm:$0xff] }
 0xc6c   :  { %v8154_v43 = vpop.f32.mrb[48].mxu0 }
 0xc6d   :  { %v5299_v9 = vmul.f32 %v8154_v43, %v12588_v37  ;;  %v5284_v29 = vpop.f32.mrb[49].mxu0 }
 0xc6e   :  { %v5298_v18 = vmul.f32 %v12588_v37, %v5284_v29  ;;  %v6206_v29 = vld [vmem:[%s13254_s23 + $0x50] sm:$0xff] }
 0xc6f   :  { %v5301_v41 = vadd.f32 %v5299_v9, %v5185_v19 }
 0xc70   :  { %v5300_v27 = vadd.f32 %v5298_v18, %v5184_v3  ;;  %v8165_v54 = vpop.f32.mrb[102].mxu1  ;;  %v6215_v18 = vld [vmem:[%s13254_s23 + $0x98] sm:$0xff] }
 0xc71   :  { %v5415_v2 = vmul.f32 %v8165_v54, %v12597_v31  ;;  %v5400_v6 = vpop.f32.mrb[103].mxu1 }
 0xc72   :  { %v5414_v44 = vmul.f32 %v12597_v31, %v5400_v6  ;;  %v6214_v6 = vld [vmem:[%s13254_s23 + $0x90] sm:$0xff] }
 0xc73   :  { %v5417_v12 = vadd.f32 %v5415_v2, %v5301_v41  ;;  %v6223_v41 = vld [vmem:[%s13254_s23 + $0xd8] sm:$0xff] }
 0xc74   :  { %v5416_v5 = vadd.f32 %v5414_v44, %v5300_v27  ;;  %v8176_v63 = vpop.f32.mrb[50].mxu0  ;;  %v6115_v27 = vld [vmem:[%s13252_s21] sm:$0xff]  ;;  %v12958_v2 = vpack.c.bf16 %v6223_v41, %v6215_v18  ;;  %v6222_v44 = vld [vmem:[%s13254_s23 + $0xd0] sm:$0xff] }
 0xc75   :  { %v5531_v28 = vmul.f32 %v8176_v63, %v12610_v55  ;;  %v5516_v62 = vpop.f32.mrb[51].mxu0  ;;  %v12973_v63 = vpack.c.bf16 %v6222_v44, %v6214_v6  ;;  %v6240_v18 = vld [vmem:[%s13254_s23 + $0x160] sm:$0xff]  ;;  %v6234_v41 = vld [vmem:[%s13254_s23 + $0x130] sm:$0xff]  ;;  %v6249_v44 = vld [vmem:[%s13254_s23 + $0x1a8] sm:$0xff] }
 0xc76   :  { %v5530_v45 = vmul.f32 %v12610_v55, %v5516_v62  ;;  %v6230_v62 = vld [vmem:[%s13254_s23 + $0x110] sm:$0xff] }
 0xc77   :  { %v5533_v10 = vadd.f32 %v5531_v28, %v5417_v12  ;;  %v6231_v12 = vld [vmem:[%s13254_s23 + $0x118] sm:$0xff]  ;;  %v6242_v6 = vld [vmem:[%s13254_s23 + $0x170] sm:$0xff] }
 0xc78   :  { %v8187_v26 = vpop.f32.mrb[104].mxu1  ;;  %v5532_v21 = vadd.f32 %v5530_v45, %v5416_v5  ;;  %v6239_v5 = vld [vmem:[%s13254_s23 + $0x158] sm:$0xff]  ;;  %v6238_v45 = vld [vmem:[%s13254_s23 + $0x150] sm:$0xff] }
 0xc79   :  { %v5618_v37 = vadd.f32 %v8187_v26, %v5533_v10  ;;  %v5608_v51 = vpop.f32.mrb[105].mxu1  ;;  %v12977_v28 = vpack.c.bf16 %v6239_v5, %v6231_v12  ;;  %v6247_v10 = vld [vmem:[%s13254_s23 + $0x198] sm:$0xff]  ;;  %v6257_v12 = vld [vmem:[%s13254_s23 + $0x1e8] sm:$0xff] }
 0xc7a   :  { %v5617_v39 = vadd.f32 %v5608_v51, %v5532_v21  ;;  %v6255_v26 = vld [vmem:[%s13254_s23 + $0x1d8] sm:$0xff]  ;;  %v12992_v21 = vpack.c.bf16 %v6238_v45, %v6230_v62  ;;  %v6246_v51 = vld [vmem:[%s13254_s23 + $0x190] sm:$0xff] }
 0xc7b   :  { %v6251_v5 = vld [vmem:[%s13254_s23 + $0x1b8] sm:$0xff] }
 0xc7c   :  { %v8198_v60 = vpop.f32.mrb[52].mxu0  ;;  %v6259_v62 = vld [vmem:[%s13254_s23 + $0x1f8] sm:$0xff] }
 0xc7d   :  { %v5748_v11 = vmul.f32 %v8198_v60, %v12619_v7  ;;  %v5733_v35 = vpop.f32.mrb[53].mxu0 }
 0xc7e   :  { %v5747_v31 = vmul.f32 %v12619_v7, %v5733_v35  ;;  %v6209_v35 = vld [vmem:[%s13254_s23 + $0x68] sm:$0xff] }
 0xc7f   :  { %v5750_v58 = vadd.f32 %v5748_v11, %v5618_v37  ;;  %v12995_v37 = vpack.c.bf16 %v6255_v26, %v6247_v10  ;;  %v6201_v11 = vld [vmem:[%s13254_s23 + $0x28] sm:$0xff]  ;;  %v8956_v10 = vpack.c.bf16 %v6242_v6, %v6234_v41  ;;  %v8942_v26 = vpack.c.bf16 %v6257_v12, %v6249_v44 }
 0xc80   :  { %v5749_v59 = vadd.f32 %v5747_v31, %v5617_v39  ;;  %v8209_v1 = vpop.f32.mrb[106].mxu1  ;;  %v6254_v39 = vld [vmem:[%s13254_s23 + $0x1d0] sm:$0xff]  ;;  %v6203_v31 = vld [vmem:[%s13254_s23 + $0x38] sm:$0xff] }
 0xc81   :  { %v5864_v15 = vmul.f32 %v8209_v1, %v12626_v25  ;;  %v5849_v16 = vpop.f32.mrb[107].mxu1  ;;  %v13004_v60 = vpack.c.bf16 %v6254_v39, %v6246_v51  ;;  %v6248_v51 = vld [vmem:[%s13254_s23 + $0x1a0] sm:$0xff] }
 0xc82   :  { %v5863_v55 = vmul.f32 %v12626_v25, %v5849_v16  ;;  %v6104_v25 = vpop.permute.xlu0 %6103  ;;  %v6208_v16 = vld [vmem:[%s13254_s23 + $0x60] sm:$0xff] }
 0xc83   :  { %v5866_v20 = vadd.f32 %v5864_v15, %v5750_v58  ;;  %v13017_v58 = vpack.c.bf16 %v6209_v35, %v6201_v11  ;;  %v6200_v15 = vld [vmem:[%s13254_s23 + $0x20] sm:$0xff]  ;;  %v8958_v11 = vpack.c.bf16 %v6259_v62, %v6251_v5  ;;  %v6250_v35 = vld [vmem:[%s13254_s23 + $0x1b0] sm:$0xff] }
 0xc84   :  { %v5865_v61 = vadd.f32 %v5863_v55, %v5749_v59  ;;  %v8220_v22 = vpop.f32.mrb[54].mxu0  ;;  %v6211_v59 = vld [vmem:[%s13254_s23 + $0x78] sm:$0xff]  ;;  %v6202_v55 = vld [vmem:[%s13254_s23 + $0x30] sm:$0xff]  ;;  %v6256_v39 = vld [vmem:[%s13254_s23 + $0x1e0] sm:$0xff] }
 0xc85   :  { %v5980_v14 = vmul.f32 %v8220_v22, %v12637_v38  ;;  %v5965_v36 = vpop.f32.mrb[55].mxu0  ;;  %v13022_v1 = vpack.c.bf16 %v6211_v59, %v6203_v31  ;;  %8931 = vmatprep.subr.bf16.mxu1 %v13017_v58  ;;  %v6225_v22 = vld [vmem:[%s13254_s23 + $0xe8] sm:$0xff]  ;;  %v6258_v31 = vld [vmem:[%s13254_s23 + $0x1f0] sm:$0xff]  ;;  %v8944_v59 = vpack.c.bf16 %v6256_v39, %v6248_v51 }
 0xc86   :  { %v5979_v50 = vmul.f32 %v12637_v38, %v5965_v36  ;;  %v6207_v38 = vld [vmem:[%s13254_s23 + $0x58] sm:$0xff] }
 0xc87   :  { %v5982_v40 = vadd.f32 %v5980_v14, %v5866_v20  ;;  %v12938_v9 = vpack.c.bf16 %v6207_v38, %v6199_v48  ;;  %v6210_v20 = vld [vmem:[%s13254_s23 + $0x70] sm:$0xff]  ;;  %v6219_v14 = vld [vmem:[%s13254_s23 + $0xb8] sm:$0xff]  ;;  %v6241_v48 = vld [vmem:[%s13254_s23 + $0x168] sm:$0xff] }
 0xc88   :  { %v5981_v56 = vadd.f32 %v5979_v50, %v5865_v61  ;;  %v8231_v24 = vpop.f32.mrb[108].mxu1  ;;  %v6217_v61 = vld [vmem:[%s13254_s23 + $0xa8] sm:$0xff]  ;;  %v6227_v36 = vld [vmem:[%s13254_s23 + $0xf8] sm:$0xff]  ;;  %v6120_v50 = vpop.permute.xlu0 %6119 }
 0xc89   :  { %v6096_v7 = vmul.f32 %v8231_v24, %v12644_v34  ;;  %v6081_v30 = vpop.f32.mrb[109].mxu1  ;;  %v6235_v38 = vld [vmem:[%s13254_s23 + $0x138] sm:$0xff] }
 0xc8a   :  { %v6095_v57 = vmul.f32 %v12644_v34, %v6081_v30  ;;  %v6198_v34 = vld [vmem:[%s13254_s23 + $0x10] sm:$0xff]  ;;  %v13052_v30 = vpack.c.bf16 %v6210_v20, %v6202_v55 }
 0xc8b   :  { %v6098_v17 = vadd.f32 %v6096_v7, %v5982_v40  ;;  %v12955_v54 = vpack.c.bf16 %v6206_v29, %v6198_v34 }
 0xc8c   :  { %v6097_v23 = vadd.f32 %v6095_v57, %v5981_v56  ;;  %v13050_v56 = vpack.c.bf16 %v6208_v16, %v6200_v15  ;;  %v13054_v57 = vpack.c.bf16 %v6225_v22, %v6217_v61  ;;  %v8960_v15 = vpack.c.bf16 %v6258_v31, %v6250_v35 }
 0xc8d   :  { %v6112_v47 = vadd.f32 %v6109_v8, %v6098_v17  ;;  %v6216_v17 = vld [vmem:[%s13254_s23 + $0xa0] sm:$0xff] }
 0xc8e   :  { %v6111_v4 = vadd.f32 %v6104_v25, %v6097_v23  ;;  %v6224_v8 = vld [vmem:[%s13254_s23 + $0xe0] sm:$0xff]  ;;  %v6218_v23 = vld [vmem:[%s13254_s23 + $0xb0] sm:$0xff]  ;;  %v13065_v25 = vpack.c.bf16 %v6227_v36, %v6219_v14 }
 0xc8f   :  { %v6114_v43 = vmax.f32 %v6112_v47, 0.0  ;;  %v6226_v47 = vld [vmem:[%s13254_s23 + $0xf0] sm:$0xff] }
 0xc90   :  { %v6113_v19 = vmax.f32 %v6111_v4, 0.0  ;;  %v6233_v4 = vld [vmem:[%s13254_s23 + $0x128] sm:$0xff]  ;;  %v13090_v34 = vpack.c.bf16 %v6226_v47, %v6218_v23 }
 0xc91   :  { %v13092_v29 = vpack.c.bf16 %v6241_v48, %v6233_v4 }
 0xc92   :  { %v8896_v3 = vpack.c.bf16 %v6114_v43, %v6113_v19  ;;  %v6243_v43 = vld [vmem:[%s13254_s23 + $0x178] sm:$0xff]  ;;  %v13086_v19 = vpack.c.bf16 %v6224_v8, %v6216_v17 }
 0xc94   :  { %8897 = vmatpush3.bf16.msra.mxu0 %v8896_v3  ;;  %v6232_v3 = vld [vmem:[%s13254_s23 + $0x120] sm:$0xff] }
 0xc95   :  { %8915 = vmatprep.subr.bf16.mxu0 %v12938_v9  ;;  %v8940_v45 = vpack.c.bf16 %v6240_v18, %v6232_v3 }
 0xc97   :  { %8237 = vmatmul.mubr.msk.f32.vlgmr.msra.gmra.mrb[56].mxu0 %vm6122_vm0, %v6115_v27  ;;  %v8954_v27 = vpack.c.bf16 %v6243_v43, %v6235_v38 }
 0xc98   :  { %8917 = vmatpush1.bf16.msra.mxu0 %v12955_v54  ;;  %6398 = vmatprep.mubr.f32.mxu0 %v13285_v13 }
 0xc99   :  { %8919 = vmatprep.subr.bf16.mxu0 %v12958_v2 }
 0xc9c   :  { %8921 = vmatpush1.bf16.msra.mxu0 %v12973_v63 }
 0xc9d   :  { %8923 = vmatprep.subr.bf16.mxu0 %v12977_v28 }
 0xca0   :  { %8925 = vmatpush1.bf16.msra.mxu0 %v12992_v21 }
 0xca1   :  { %8927 = vmatprep.subr.bf16.mxu0 %v12995_v37 }
 0xca4   :  { %8929 = vmatpush1.bf16.msra.mxu0 %v13004_v60 }
 0xca5   :  { %8947 = vmatprep.subr.bf16.mxu0 %v13022_v1 }
 0xd6a   :  { %v6192_v40 = vpop.f32.mrb[56].mxu0 }
 0xd6b   :  { %v6193_v24 = vadd.f32 %v6192_v40, %v6120_v50  ;;  %v8238_v7 = vpop.f32.mrb[57].mxu0 }
 0xd6d   :  { %6619 = vrot.lane.b32.xlu1 %v6193_v24, %s10206_s6  ;;  %7048 = vmatmul.mubr.msk.f32.vlgmr.msra.gmra.mrb[110].mxu1 %vm3642_vm15, %v6193_v24 }
 0xd6e   :  { %7049 = vmatmul.mubr.msk.f32.vlgmr.msra.gmra.mrb[58].mxu0 %vm3642_vm15, %v6193_v24  ;;  %8933 = vmatpush1.bf16.msra.mxu1 %v13050_v56 }
 0xd6f   :  { %8949 = vmatpush1.bf16.msra.mxu0 %v13052_v30  ;;  %8935 = vmatprep.subr.bf16.mxu1 %v13054_v57 }
 0xd70   :  { %8951 = vmatprep.subr.bf16.mxu0 %v13065_v25  ;;  %6469 = vmatprep.mubr.f32.mxu1 %v13285_v13 }
 0xd71   :  { %6540 = vmatprep.mubr.f32.mxu0 %v13285_v13 }
 0xd72   :  { %8937 = vmatpush1.bf16.msra.mxu1 %v13086_v19 }
 0xd73   :  { %8953 = vmatpush1.bf16.msra.mxu0 %v13090_v34  ;;  %8939 = vmatprep.subr.bf16.mxu1 %v13092_v29 }
 0xd74   :  { %8955 = vmatprep.subr.bf16.mxu0 %v8954_v27 }
 0xd76   :  { %8941 = vmatpush1.bf16.msra.mxu1 %v8940_v45 }
 0xd77   :  { %8957 = vmatpush1.bf16.msra.mxu0 %v8956_v10  ;;  %8943 = vmatprep.subr.bf16.mxu1 %v8942_v26 }
 0xd78   :  { %8959 = vmatprep.subr.bf16.mxu0 %v8958_v11 }
 0xd7a   :  { %8945 = vmatpush1.bf16.msra.mxu1 %v8944_v59 }
 0xd7b   :  { %8961 = vmatpush1.bf16.msra.mxu0 %v8960_v15  ;;  %8963 = vmatprep.subr.bf16.mxu1 %v12850_v32 }
 0xd7c   :  { %8979 = vmatprep.subr.bf16.mxu0 %v12938_v9 }
 0xd7d   :  { %7050 = vmatmul.mubr.msk.f32.vlgmr.msra.gmra.mrb[112].mxu1 %vm3642_vm15, %v6193_v24 }
 0xd7e   :  { %7051 = vmatmul.mubr.msk.f32.vlgmr.msra.gmra.mrb[60].mxu0 %vm3642_vm15, %v6193_v24  ;;  %8965 = vmatpush1.bf16.msra.mxu1 %v12858_v0 }
 0xd7f   :  { %8981 = vmatpush1.bf16.msra.mxu0 %v12955_v54  ;;  %8967 = vmatprep.subr.bf16.mxu1 %v12868_v52 }
 0xd80   :  { %8983 = vmatprep.subr.bf16.mxu0 %v12958_v2  ;;  %6687 = vmatprep.mubr.f32.mxu1 %v13285_v13 }
 0xd81   :  { %6758 = vmatprep.mubr.f32.mxu0 %v13285_v13 }
 0xd82   :  { %8969 = vmatpush1.bf16.msra.mxu1 %v12876_v49 }
 0xd83   :  { %8985 = vmatpush1.bf16.msra.mxu0 %v12973_v63  ;;  %8971 = vmatprep.subr.bf16.mxu1 %v12885_v53 }
 0xd84   :  { %8987 = vmatprep.subr.bf16.mxu0 %v12977_v28 }
 0xd86   :  { %8973 = vmatpush1.bf16.msra.mxu1 %v12894_v42 }
 0xd87   :  { %8989 = vmatpush1.bf16.msra.mxu0 %v12992_v21  ;;  %8975 = vmatprep.subr.bf16.mxu1 %v12903_v33 }
 0xd88   :  { %8991 = vmatprep.subr.bf16.mxu0 %v12995_v37 }
 0xd8a   :  { %8977 = vmatpush1.bf16.msra.mxu1 %v12912_v46 }
 0xd8b   :  { %8993 = vmatpush1.bf16.msra.mxu0 %v13004_v60  ;;  %8995 = vmatprep.subr.bf16.mxu1 %v13017_v58 }
 0xd8c   :  { %9011 = vmatprep.subr.bf16.mxu0 %v13022_v1 }
 0xddf   :  { %v6620_v32 = vpop.permute.xlu1 %6619 }
 0xde0   :  { %7052 = vmatmul.mubr.msk.f32.vlgmr.msra.gmra.mrb[114].mxu1 %vm3642_vm15, %v6620_v32  ;;  %7053 = vmatmul.mubr.msk.f32.vlgmr.msra.gmra.mrb[62].mxu0 %vm3642_vm15, %v6620_v32 }
 0xde1   :  { %8997 = vmatpush1.bf16.msra.mxu1 %v13050_v56  ;;  %9013 = vmatpush1.bf16.msra.mxu0 %v13052_v30 }
 0xde2   :  { %8999 = vmatprep.subr.bf16.mxu1 %v13054_v57  ;;  %9015 = vmatprep.subr.bf16.mxu0 %v13065_v25 }
 0xde3   :  { %6829 = vmatprep.mubr.f32.mxu1 %v13285_v13  ;;  %6900 = vmatprep.mubr.f32.mxu0 %v13285_v13 }
 0xde5   :  { %9001 = vmatpush1.bf16.msra.mxu1 %v13086_v19  ;;  %9017 = vmatpush1.bf16.msra.mxu0 %v13090_v34 }
 0xde6   :  { %9003 = vmatprep.subr.bf16.mxu1 %v13092_v29  ;;  %9019 = vmatprep.subr.bf16.mxu0 %v8954_v27 }
 0xde9   :  { %9005 = vmatpush1.bf16.msra.mxu1 %v8940_v45  ;;  %9021 = vmatpush1.bf16.msra.mxu0 %v8956_v10 }
 0xdea   :  { %9007 = vmatprep.subr.bf16.mxu1 %v8942_v26  ;;  %9023 = vmatprep.subr.bf16.mxu0 %v8958_v11 }
 0xded   :  { %9009 = vmatpush1.bf16.msra.mxu1 %v8944_v59  ;;  %9025 = vmatpush1.bf16.msra.mxu0 %v8960_v15 }
 0xdf0   :  { %7054 = vmatmul.mubr.msk.f32.vlgmr.msra.gmra.mrb[116].mxu1 %vm3642_vm15, %v6620_v32  ;;  %7055 = vmatmul.mubr.msk.f32.vlgmr.msra.gmra.mrb[64].mxu0 %vm3642_vm15, %v6620_v32 }
 0xe40   :  { %v6329_v0 = vpop.f32.mrb[110].mxu1 }
 0xe41   :  { %6547 = vst [vmem:[%s13255_s24] sm:$0xff] %v6329_v0  ;;  %v6400_v13 = vpop.f32.mrb[58].mxu0  ;;  %v6331_v52 = vpop.f32.mrb[111].mxu1 }
 0xe42   :  { %6549 = vst [vmem:[%s13255_s24 + $0x10] sm:$0xff] %v6400_v13  ;;  %6548 = vst [vmem:[%s13255_s24 + $0x8] sm:$0xff] %v6331_v52  ;;  %v6402_v49 = vpop.f32.mrb[59].mxu0 }
 0xe43   :  { %6550 = vst [vmem:[%s13255_s24 + $0x18] sm:$0xff] %v6402_v49 }
 0xe44   :  { %10187 = shalt.err (!%p10184_p4)
}
 0xe45   :  { %s10188_s29 = scalar_lea.hbm %s13256_s25, 32 }
 0xe46   :  { %p10189_p5 = scmp.ne.s32.totalorder %s13256_s25, %s10188_s29  ;;  %p10192_p6 = scmp.lt.u32.totalorder %s10188_s29, %s13256_s25 }
 0xe48   :  { %p10194_p7 = pnand %p10192_p6, %p10189_p5 }
 0xe4a   :  { %10197 = shalt.err (!%p10194_p7)
}
 0xe4b   :  { %6926 = dma.vmem_to_hbm [thread:$0]  %s6924_s0, 32, %s13256_s25, [#allocation5]  }
 0xe50   :  { %v6471_v53 = vpop.f32.mrb[112].mxu1 }
 0xe51   :  { %6551 = vst [vmem:[%s13255_s24 + $0x20] sm:$0xff] %v6471_v53  ;;  %v6542_v42 = vpop.f32.mrb[60].mxu0  ;;  %v6473_v33 = vpop.f32.mrb[113].mxu1 }
 0xe52   :  { %6553 = vst [vmem:[%s13255_s24 + $0x30] sm:$0xff] %v6542_v42  ;;  %6552 = vst [vmem:[%s13255_s24 + $0x28] sm:$0xff] %v6473_v33  ;;  %v6544_v46 = vpop.f32.mrb[61].mxu0 }
 0xe53   :  { %6554 = vst [vmem:[%s13255_s24 + $0x38] sm:$0xff] %v6544_v46 }
 0xeb3   :  { %v6689_v9 = vpop.f32.mrb[114].mxu1  ;;  %v6760_v54 = vpop.f32.mrb[62].mxu0 }
 0xeb4   :  { %6907 = vst [vmem:[%s13255_s24 + $0x40] sm:$0xff] %v6689_v9  ;;  %6909 = vst [vmem:[%s13255_s24 + $0x50] sm:$0xff] %v6760_v54  ;;  %v6691_v2 = vpop.f32.mrb[115].mxu1  ;;  %v6762_v63 = vpop.f32.mrb[63].mxu0 }
 0xeb5   :  { %6908 = vst [vmem:[%s13255_s24 + $0x48] sm:$0xff] %v6691_v2  ;;  %6910 = vst [vmem:[%s13255_s24 + $0x58] sm:$0xff] %v6762_v63 }
 0xec3   :  { %v6831_v28 = vpop.f32.mrb[116].mxu1  ;;  %v6902_v21 = vpop.f32.mrb[64].mxu0 }
 0xec4   :  { %6911 = vst [vmem:[%s13255_s24 + $0x60] sm:$0xff] %v6831_v28  ;;  %6913 = vst [vmem:[%s13255_s24 + $0x70] sm:$0xff] %v6902_v21  ;;  %v6833_v37 = vpop.f32.mrb[117].mxu1  ;;  %v6904_v60 = vpop.f32.mrb[65].mxu0 }
 0xec5   :  { %6912 = vst [vmem:[%s13255_s24 + $0x68] sm:$0xff] %v6833_v37  ;;  %6914 = vst [vmem:[%s13255_s24 + $0x78] sm:$0xff] %v6904_v60 }
 0xec6   :  { %10198 = dma.done.wait [#allocation5], 32  }
 0xec7   :  { %10199 = vsyncadd [#allocation5], 4294967264 }
 0xec8   :  { %6932 = vsyncpa [#allocation5], 1 }

</bundles_post_ra>
